<compile_context>
chip_gen: v5e
topology: v5e:2x2
jax: 0.10.0
libtpu: 0.0.40
codegen_flags: <defaults>
</compile_context>

<pallas_src>
import functools

import jax
import jax.numpy as jnp
from jax import lax
from jax.experimental import pallas as pl
from jax.experimental.pallas import tpu as pltpu


# OGB's get_atom_feature_dims() (ogb.utils.features), hard-coded so we don't
# need the ogb package.  The module overwrites the first entry with
# num_atom_type + 1.
_OGB_ATOM_FEATURE_DIMS = [119, 4, 12, 12, 10, 6, 6, 2, 2]


def get_atom_feature_dims():
    return list(_OGB_ATOM_FEATURE_DIMS)


def _round_up(x, m):
    return (x + m - 1) // m * m


# ----------------------------------------------------------------------------
# Pallas kernel: per node tile, OR-accumulated multi-hot over the concatenated
# vocab, then one MXU matmul against the concatenated embedding slab.
# ----------------------------------------------------------------------------
def _atom_encoder_kernel(x_ref, w_ref, o_ref, *, offsets):
    x = x_ref[...]                                    # (TN, F) int32 raw indices
    tn = x.shape[0]
    v_pad = w_ref.shape[0]

    iota = lax.broadcasted_iota(jnp.int32, (tn, v_pad), 1)

    # OR of boolean equality masks (vocab ranges are disjoint): 9 compares +
    # 8 ORs, no per-feature float casts or adds.
    hits = None
    for f, off in enumerate(offsets):                 # static unroll; off is a Python int
        eq = iota == (x[:, f][:, None] + off)
        hits = eq if hits is None else jnp.logical_or(hits, eq)

    # Single cast straight to the matmul dtype (f32 on v5e, bf16 on v6e/v7x).
    multi_hot = hits.astype(w_ref.dtype)

    # sum_i Emb_i(x[:, i]) == multi_hot @ W   (f32 accumulate on the MXU)
    o_ref[...] = jnp.dot(multi_hot, w_ref[...],
                         preferred_element_type=jnp.float32).astype(o_ref.dtype)


def atom_encoder_forward(x, weight, feature_dims, *, tile_n=1024):
    """x: [N, F] int32 raw feature indices; weight: [V_pad, D] concatenated
    embedding table (f32, or bf16 on v6e/v7x for the fast MXU path);
    feature_dims: static per-feature vocab sizes (offsets folded at trace time).
    """
    n, f = x.shape
    assert f == len(feature_dims)
    v_pad, d = weight.shape

    # Static per-feature offsets into the concatenated vocab.
    offsets = []
    acc = 0
    for dim in feature_dims:
        offsets.append(acc)
        acc += dim
    offsets = tuple(offsets)
    assert acc <= v_pad

    # Node tiling: big tiles amortize per-grid-step overhead; prefer >= 2 grid
    # steps when N allows it so v7x megacore can shard the 'parallel' axis.
    n8 = _round_up(max(n, 1), 8)
    tile_n = _round_up(min(tile_n, n8), 8)
    if pl.cdiv(n8, tile_n) < 2 and n8 >= 16:
        tile_n = _round_up(pl.cdiv(n8, 2), 8)
    n_pad = _round_up(n, tile_n)
    if n_pad != n:
        x = jnp.pad(x, ((0, n_pad - n), (0, 0)))      # padded rows sliced off below

    kernel = functools.partial(_atom_encoder_kernel, offsets=offsets)
    out = pl.pallas_call(
        kernel,
        out_shape=jax.ShapeDtypeStruct((n_pad, d), jnp.float32),
        grid_spec=pltpu.PrefetchScalarGridSpec(
            num_scalar_prefetch=0,
            grid=(n_pad // tile_n,),
            in_specs=[
                pl.BlockSpec((tile_n, f), lambda i: (i, 0)),   # node index tile
                # Full weight slab, same block every step (~128 KiB at OGB
                # sizes), so the pipeline just reuses its buffer.
                pl.BlockSpec((v_pad, d), lambda i: (0, 0)),
            ],
            out_specs=pl.BlockSpec((tile_n, d), lambda i: (i, 0)),
        ),
        compiler_params=pltpu.CompilerParams(
            dimension_semantics=("parallel",),
        ),
    )(x.astype(jnp.int32), weight)
    return out[:n]


# ----------------------------------------------------------------------------
# Parameter construction (deterministic xavier_uniform, like the nn.Module).
# ----------------------------------------------------------------------------
def init_atom_encoder_params(key, emb_dim, num_atom_type, dtype=jnp.float32):
    dims = get_atom_feature_dims()
    dims[0] = num_atom_type + 1

    tables = []
    for i, dim in enumerate(dims):
        k = jax.random.fold_in(key, i)
        bound = (6.0 / (dim + emb_dim)) ** 0.5        # xavier_uniform_
        tables.append(jax.random.uniform(k, (dim, emb_dim), jnp.float32,
                                         minval=-bound, maxval=bound))

    v_total = sum(dims)
    v_pad = _round_up(v_total, 128)
    weight = jnp.zeros((v_pad, emb_dim), jnp.float32)
    weight = weight.at[:v_total].set(jnp.concatenate(tables, axis=0))
    return weight.astype(dtype), dims, tables


def atom_encoder_ref(x, tables):
    """Pure-JAX reference matching the PyTorch forward."""
    out = 0
    for i in range(x.shape[1]):
        out = out + jnp.take(tables[i], x[:, i], axis=0)
    return out


if __name__ == "__main__":
    key = jax.random.PRNGKey(0)

    emb_dim = 128            # lane-dense output
    num_atom_type = 100      # -> V_total = 155, V_pad = 256
    n_nodes = 512            # small demo; splits into a grid of 2 tiles of 256

    weight_f32, dims, tables = init_atom_encoder_params(
        jax.random.fold_in(key, 1), emb_dim, num_atom_type)

    # Random valid categorical features, one column per feature table.
    fkeys = jax.random.split(jax.random.fold_in(key, 2), len(dims))
    cols = [jax.random.randint(fkeys[i], (n_nodes, 1), 0, dims[i], jnp.int32)
            for i in range(len(dims))]
    x = jnp.concatenate(cols, axis=1)                 # [N, 9] int32

    # --- f32 weight path (matches the PyTorch module's numerics) ---
    out = jax.block_until_ready(atom_encoder_forward(x, weight_f32, dims))
    ref = atom_encoder_ref(x, tables)
    assert out.shape == (n_nodes, emb_dim), out.shape
    assert jnp.allclose(out, ref, atol=1e-5, rtol=1e-5), \
        float(jnp.max(jnp.abs(out - ref)))

    # --- bf16 weight path (v6e/v7x fast path); compare vs. bf16-quantized ref ---
    weight_bf16 = weight_f32.astype(jnp.bfloat16)
    out_bf = jax.block_until_ready(atom_encoder_forward(x, weight_bf16, dims))
    tables_bf = [t.astype(jnp.bfloat16).astype(jnp.float32) for t in tables]
    ref_bf = atom_encoder_ref(x, tables_bf)
    assert jnp.allclose(out_bf, ref_bf, atol=1e-3, rtol=1e-3), \
        float(jnp.max(jnp.abs(out_bf - ref_bf)))

    print("KERNEL_OK")
</pallas_src>

<mosaic_0001>
module attributes {stable_mosaic.version = 11 : i64} {
  func.func @_atom_encoder_kernel(%arg0: i32, %arg1: memref<256x9xi32, #tpu.memory_space<vmem>>, %arg2: memref<256x128xf32, #tpu.memory_space<vmem>>, %arg3: memref<256x128xf32, #tpu.memory_space<vmem>>) attributes {dimension_semantics = [#tpu.dimension_semantics<parallel>], iteration_bounds = array<i64: 2>, scalar_prefetch = 0 : i64, scratch_operands = 0 : i64, tpu.core_type = #tpu.core_type<tc>, window_params = [{transform_indices = @transform_0, window_bounds = array<i64: 256, 9>}, {pipeline_mode = #tpu.pipeline_mode<synchronous>, transform_indices = @transform_1, window_bounds = array<i64: 256, 128>}, {transform_indices = @transform_2, window_bounds = array<i64: 256, 128>}]} {
    %c0 = arith.constant 0 : index
    %c0_0 = arith.constant 0 : index
    %0 = vector.load %arg1[%c0, %c0_0] : memref<256x9xi32, #tpu.memory_space<vmem>>, vector<256x9xi32>
    %1 = tpu.iota {dimensions = array<i32: 1>} : vector<256x256xi32>
    %2 = vector.extract_strided_slice %0 {offsets = [0, 0], sizes = [256, 1], strides = [1, 1]} : vector<256x9xi32> to vector<256x1xi32>
    %3 = vector.shape_cast %2 : vector<256x1xi32> to vector<256xi32>
    %4 = vector.shape_cast %3 : vector<256xi32> to vector<256x1xi32>
    %c0_i32 = arith.constant 0 : i32
    %5 = vector.broadcast %c0_i32 : i32 to vector<256x1xi32>
    %6 = arith.addi %4, %5 : vector<256x1xi32>
    %7 = vector.broadcast %6 : vector<256x1xi32> to vector<256x256xi32>
    %8 = arith.cmpi eq, %1, %7 : vector<256x256xi32>
    %9 = vector.extract_strided_slice %0 {offsets = [0, 1], sizes = [256, 1], strides = [1, 1]} : vector<256x9xi32> to vector<256x1xi32>
    %10 = vector.shape_cast %9 : vector<256x1xi32> to vector<256xi32>
    %11 = vector.shape_cast %10 : vector<256xi32> to vector<256x1xi32>
    %c101_i32 = arith.constant 101 : i32
    %12 = vector.broadcast %c101_i32 : i32 to vector<256x1xi32>
    %13 = arith.addi %11, %12 : vector<256x1xi32>
    %14 = vector.broadcast %13 : vector<256x1xi32> to vector<256x256xi32>
    %15 = arith.cmpi eq, %1, %14 : vector<256x256xi32>
    %16 = arith.ori %8, %15 : vector<256x256xi1>
    %17 = vector.extract_strided_slice %0 {offsets = [0, 2], sizes = [256, 1], strides = [1, 1]} : vector<256x9xi32> to vector<256x1xi32>
    %18 = vector.shape_cast %17 : vector<256x1xi32> to vector<256xi32>
    %19 = vector.shape_cast %18 : vector<256xi32> to vector<256x1xi32>
    %c105_i32 = arith.constant 105 : i32
    %20 = vector.broadcast %c105_i32 : i32 to vector<256x1xi32>
    %21 = arith.addi %19, %20 : vector<256x1xi32>
    %22 = vector.broadcast %21 : vector<256x1xi32> to vector<256x256xi32>
    %23 = arith.cmpi eq, %1, %22 : vector<256x256xi32>
    %24 = arith.ori %16, %23 : vector<256x256xi1>
    %25 = vector.extract_strided_slice %0 {offsets = [0, 3], sizes = [256, 1], strides = [1, 1]} : vector<256x9xi32> to vector<256x1xi32>
    %26 = vector.shape_cast %25 : vector<256x1xi32> to vector<256xi32>
    %27 = vector.shape_cast %26 : vector<256xi32> to vector<256x1xi32>
    %c117_i32 = arith.constant 117 : i32
    %28 = vector.broadcast %c117_i32 : i32 to vector<256x1xi32>
    %29 = arith.addi %27, %28 : vector<256x1xi32>
    %30 = vector.broadcast %29 : vector<256x1xi32> to vector<256x256xi32>
    %31 = arith.cmpi eq, %1, %30 : vector<256x256xi32>
    %32 = arith.ori %24, %31 : vector<256x256xi1>
    %33 = vector.extract_strided_slice %0 {offsets = [0, 4], sizes = [256, 1], strides = [1, 1]} : vector<256x9xi32> to vector<256x1xi32>
    %34 = vector.shape_cast %33 : vector<256x1xi32> to vector<256xi32>
    %35 = vector.shape_cast %34 : vector<256xi32> to vector<256x1xi32>
    %c129_i32 = arith.constant 129 : i32
    %36 = vector.broadcast %c129_i32 : i32 to vector<256x1xi32>
    %37 = arith.addi %35, %36 : vector<256x1xi32>
    %38 = vector.broadcast %37 : vector<256x1xi32> to vector<256x256xi32>
    %39 = arith.cmpi eq, %1, %38 : vector<256x256xi32>
    %40 = arith.ori %32, %39 : vector<256x256xi1>
    %41 = vector.extract_strided_slice %0 {offsets = [0, 5], sizes = [256, 1], strides = [1, 1]} : vector<256x9xi32> to vector<256x1xi32>
    %42 = vector.shape_cast %41 : vector<256x1xi32> to vector<256xi32>
    %43 = vector.shape_cast %42 : vector<256xi32> to vector<256x1xi32>
    %c139_i32 = arith.constant 139 : i32
    %44 = vector.broadcast %c139_i32 : i32 to vector<256x1xi32>
    %45 = arith.addi %43, %44 : vector<256x1xi32>
    %46 = vector.broadcast %45 : vector<256x1xi32> to vector<256x256xi32>
    %47 = arith.cmpi eq, %1, %46 : vector<256x256xi32>
    %48 = arith.ori %40, %47 : vector<256x256xi1>
    %49 = vector.extract_strided_slice %0 {offsets = [0, 6], sizes = [256, 1], strides = [1, 1]} : vector<256x9xi32> to vector<256x1xi32>
    %50 = vector.shape_cast %49 : vector<256x1xi32> to vector<256xi32>
    %51 = vector.shape_cast %50 : vector<256xi32> to vector<256x1xi32>
    %c145_i32 = arith.constant 145 : i32
    %52 = vector.broadcast %c145_i32 : i32 to vector<256x1xi32>
    %53 = arith.addi %51, %52 : vector<256x1xi32>
    %54 = vector.broadcast %53 : vector<256x1xi32> to vector<256x256xi32>
    %55 = arith.cmpi eq, %1, %54 : vector<256x256xi32>
    %56 = arith.ori %48, %55 : vector<256x256xi1>
    %57 = vector.extract_strided_slice %0 {offsets = [0, 7], sizes = [256, 1], strides = [1, 1]} : vector<256x9xi32> to vector<256x1xi32>
    %58 = vector.shape_cast %57 : vector<256x1xi32> to vector<256xi32>
    %59 = vector.shape_cast %58 : vector<256xi32> to vector<256x1xi32>
    %c151_i32 = arith.constant 151 : i32
    %60 = vector.broadcast %c151_i32 : i32 to vector<256x1xi32>
    %61 = arith.addi %59, %60 : vector<256x1xi32>
    %62 = vector.broadcast %61 : vector<256x1xi32> to vector<256x256xi32>
    %63 = arith.cmpi eq, %1, %62 : vector<256x256xi32>
    %64 = arith.ori %56, %63 : vector<256x256xi1>
    %65 = vector.extract_strided_slice %0 {offsets = [0, 8], sizes = [256, 1], strides = [1, 1]} : vector<256x9xi32> to vector<256x1xi32>
    %66 = vector.shape_cast %65 : vector<256x1xi32> to vector<256xi32>
    %67 = vector.shape_cast %66 : vector<256xi32> to vector<256x1xi32>
    %c153_i32 = arith.constant 153 : i32
    %68 = vector.broadcast %c153_i32 : i32 to vector<256x1xi32>
    %69 = arith.addi %67, %68 : vector<256x1xi32>
    %70 = vector.broadcast %69 : vector<256x1xi32> to vector<256x256xi32>
    %71 = arith.cmpi eq, %1, %70 : vector<256x256xi32>
    %72 = arith.ori %64, %71 : vector<256x256xi1>
    %73 = arith.extui %72 : vector<256x256xi1> to vector<256x256xi32>
    %74 = arith.sitofp %73 : vector<256x256xi32> to vector<256x256xf32>
    %c0_1 = arith.constant 0 : index
    %c0_2 = arith.constant 0 : index
    %75 = vector.load %arg2[%c0_1, %c0_2] : memref<256x128xf32, #tpu.memory_space<vmem>>, vector<256x128xf32>
    %cst = arith.constant dense<0.000000e+00> : vector<256x128xf32>
    %76 = tpu.matmul %74, %75, %cst {dimension_numbers = #tpu.dot_dimension_numbers<[1], [0], [0], [1], [0, 0, 1, 1], [], []>} : vector<256x256xf32>, vector<256x128xf32>, vector<256x128xf32> -> vector<256x128xf32>
    %c0_3 = arith.constant 0 : index
    %c0_4 = arith.constant 0 : index
    %77 = vector.load %arg3[%c0_3, %c0_4] : memref<256x128xf32, #tpu.memory_space<vmem>>, vector<256x128xf32>
    tpu.vector_store %arg3[%c0_3, %c0_4], %76 {strides = array<i32>} : memref<256x128xf32, #tpu.memory_space<vmem>>, vector<256x128xf32>,
    return
  }
  func.func @transform_0(%arg0: i32) -> (i32, i32) {
    %c0_i32 = arith.constant 0 : i32
    %c0_i32_0 = arith.constant 0 : i32
    return %arg0, %c0_i32 : i32, i32
  }
  func.func @transform_1(%arg0: i32) -> (i32, i32) {
    %c0_i32 = arith.constant 0 : i32
    %c0_i32_0 = arith.constant 0 : i32
    %c0_i32_1 = arith.constant 0 : i32
    return %c0_i32, %c0_i32_0 : i32, i32
  }
  func.func @transform_2(%arg0: i32) -> (i32, i32) {
    %c0_i32 = arith.constant 0 : i32
    %c0_i32_0 = arith.constant 0 : i32
    return %arg0, %c0_i32 : i32, i32
  }
}

</mosaic_0001>

<bundles_post_ra>
// kernel: tpu_custom_call.1
= control target key start
LH: loop header
LB: loop body
LE: loop exit
PB: predicated region body
PF: predicated region fallthrough
CT: control target
= control target key end

     0   :  { %7 = vsyncpa [#allocation3], 0  ;;  %s8704_s0 = inlined_call_operand.vmem [shape: s32[512,9], index: 0, kind: input, shape index: {}]   ;;  %s8705_s1 = inlined_call_operand.vmem [shape: f32[256,128], index: 1, kind: input, shape index: {}]   ;;  %s8706_s2 = inlined_call_operand.hbm [shape: f32[512,128], index: 2, kind: output, shape index: {}]  }
   0x1   :  { %9 = vsyncpa [#allocation3 + $0x1], 0  ;;  %s3227_s9 = smov 0   ;;  %s3229_s10 = smov 0  }
   0x2   :  { %s3231_s11 = smov 0   ;;  %s3233_s12 = smov 0  }
   0x3 LB: > { %s3248_s13 = sadd.s32 4294967295, %s3198_s12   ;;  %s2884_s14 = sadd.s32 4294967294, %s3198_s12   ;;  %s3198_s12 = sphi %s3233_s12, %s10670_s12   ;;  %s3194_s11 = sphi %s3231_s11, %s10669_s11   ;;  %s3190_s10 = sphi %s3229_s10, %s10668_s10   ;;  %s3186_s9 = sphi %s3227_s9, %s10667_s9  }
   0x4   : > { %s3252_s15 = sadd.s32 1, %s3198_s12   ;;  %s69_s16 = sadd.s32 1, %s3194_s11 }
   0x5   : > { %s66_s17 = ssub.s32 %s3198_s12, %s3252_s15  ;;  %p79_p0 = scmp.ne.s32.totalorder %s3194_s11, %s3190_s10 }
   0x6   : > { %p67_p1 = scmp.eq.s32.totalorder %s66_s17, 0  ;;  %p80_p2 = scmp.eq.s32.totalorder %s3248_s13, 1 }
   0x7   : > { %p85_p3 = scmp.ne.s32.totalorder %s3190_s10, %s3186_s9  ;;  %p86_p4 = scmp.eq.s32.totalorder %s2884_s14, 1 }
   0x8   : > { %s3263_s18 = scalar_select %p67_p1, %s3194_s11, %s69_s16  }
   0x9   : > { %p3265_p5 = por %p80_p2, %p79_p0  ;;  %p3269_p6 = por %p86_p4, %p85_p3 }
   0xa   : > { %p2887_p7 = scmp.ge.s32.totalorder %s3198_s12, 1  ;;  %p116_p8 = scmp.lt.s32.totalorder %s3198_s12, 3 }
   0xc   : > { %p117_p9 = pnand %p2887_p7, %p116_p8 }
   0xe   : > { %120 = sbr.rel (%p117_p9) target bundleno = 1277 (0x4fd), region = 28 }
  0x13   : > { %s2889_s21 = sshll.u32 %s3248_s13, 5  ;;  %v3200_v0 = vmov 0   ;;  %v3201_v34 = vmov 1   ;;  %s2960_s16 = sshll.u32 %s3248_s13, 8 }
  0x14   : > { %3046 = vset.pattern.permute.xlu2 %v3200_v0  ;;  %3045 = vset.pattern.permute.xlu1 %v3200_v0  ;;  %p139_p10 = scmp.lt.s32.totalorder %s2889_s21, 63  ;;  %s3156_s30 = scalar_lea.hbm %s8706_s2, 512 }
  0x15   : > { %3044 = vset.pattern.permute.xlu0 %v3200_v0 }
  0x16   : > { %s10672_s21 = smov (!%p139_p10, %s2889_s21), 63 }
  0x17   : > { %s2890_s22 = sshll.u32 %s10672_s21, 3 }
  0x18   : > { %s3279_s25 = scalar_lea.vmem %s8704_s0, %s2890_s22  ;;  %s2818_s22 = scalar_lea.hbm %s8706_s2, %s2960_s16 }
  0x19   : > { %v3282_v1 = vld [vmem:[%s3279_s25 + $0x20] sm:$0xff]  ;;  %v3285_v2 = vld [vmem:[%s3279_s25 + $0x10] sm:$0xff]  ;;  %v3294_v4 = vld [vmem:[%s3279_s25 + $0x28] sm:$0xff]  ;;  %s2821_s24 = sshll.u32 %s2818_s22, 4  ;;  %s2822_s24 = int_to_ptr.hbm [resolvable:$true] %s2821_s24 }
  0x1a   : > { %v3288_v3 = vld [vmem:[%s3279_s25] sm:$0xff]  ;;  %193 = vperm.xlu2 %3046, %v3282_v1   ;;  %187 = vperm.xlu1 %3045, %v3285_v2   ;;  %v3297_v5 = vld [vmem:[%s3279_s25 + $0x18] sm:$0xff]  ;;  %v3300_v6 = vld [vmem:[%s3279_s25 + $0x8] sm:$0xff]  ;;  %v342_v35 = vadd.s32 101, %v3285_v2  ;;  %v344_v39 = vadd.s32 101, %v3282_v1  ;;  %v345_v41 = vadd.s32 101, %v3294_v4 }
  0x1b   : > { %181 = vperm.xlu0 %3044, %v3288_v3   ;;  %v3306_v7 = vld [vmem:[%s3279_s25 + $0x40] sm:$0xff]  ;;  %v3309_v8 = vld [vmem:[%s3279_s25 + $0x38] sm:$0xff]  ;;  %v3312_v9 = vld [vmem:[%s3279_s25 + $0x30] sm:$0xff]  ;;  %v340_v32 = vadd.s32 101, %v3288_v3  ;;  %v341_v36 = vadd.s32 101, %v3300_v6  ;;  %v343_v37 = vadd.s32 101, %v3297_v5 }
  0x1c   : > { %v3318_v10 = vld [vmem:[%s3279_s25 + $0x58] sm:$0xff]  ;;  %v3321_v11 = vld [vmem:[%s3279_s25 + $0x50] sm:$0xff]  ;;  %v3324_v12 = vld [vmem:[%s3279_s25 + $0x48] sm:$0xff]  ;;  %v346_v40 = vadd.s32 101, %v3312_v9  ;;  %v347_v43 = vadd.s32 101, %v3309_v8  ;;  %v348_v45 = vadd.s32 101, %v3306_v7 }
  0x1d   : > { %v3330_v13 = vld [vmem:[%s3279_s25 + $0x70] sm:$0xff]  ;;  %v3333_v14 = vld [vmem:[%s3279_s25 + $0x68] sm:$0xff]  ;;  %v3336_v15 = vld [vmem:[%s3279_s25 + $0x60] sm:$0xff]  ;;  %v349_v44 = vadd.s32 101, %v3324_v12  ;;  %v350_v47 = vadd.s32 101, %v3321_v11  ;;  %v351_v49 = vadd.s32 101, %v3318_v10 }
  0x1e   : > { %v3342_v16 = vld [vmem:[%s3279_s25 + $0x88] sm:$0xff]  ;;  %v3345_v17 = vld [vmem:[%s3279_s25 + $0x80] sm:$0xff]  ;;  %v3348_v18 = vld [vmem:[%s3279_s25 + $0x78] sm:$0xff]  ;;  %v352_v48 = vadd.s32 101, %v3336_v15  ;;  %v353_v53 = vadd.s32 101, %v3333_v14  ;;  %v354_v55 = vadd.s32 101, %v3330_v13 }
  0x1f   : > { %v3354_v19 = vld [vmem:[%s3279_s25 + $0xa0] sm:$0xff]  ;;  %v3357_v20 = vld [vmem:[%s3279_s25 + $0x98] sm:$0xff]  ;;  %v3360_v21 = vld [vmem:[%s3279_s25 + $0x90] sm:$0xff]  ;;  %v355_v54 = vadd.s32 101, %v3348_v18  ;;  %v356_v59 = vadd.s32 101, %v3345_v17  ;;  %v357_v61 = vadd.s32 101, %v3342_v16 }
  0x20   : > { %v3366_v22 = vld [vmem:[%s3279_s25 + $0xb8] sm:$0xff]  ;;  %v3369_v23 = vld [vmem:[%s3279_s25 + $0xb0] sm:$0xff]  ;;  %v3372_v24 = vld [vmem:[%s3279_s25 + $0xa8] sm:$0xff]  ;;  %v358_v60 = vadd.s32 101, %v3360_v21  ;;  %s3150_s27 = sshra.s32 %s2822_s24, 4  ;;  %s3151_s27 = int_to_ptr.hbm [resolvable:$true] %s3150_s27 }
  0x21   : > { %v3378_v25 = vld [vmem:[%s3279_s25 + $0xd0] sm:$0xff]  ;;  %v3381_v26 = vld [vmem:[%s3279_s25 + $0xc8] sm:$0xff]  ;;  %v3384_v27 = vld [vmem:[%s3279_s25 + $0xc0] sm:$0xff]  ;;  %s3152_s13 = scalar_lea.hbm %s3151_s27, 256  ;;  %p3157_p0 = scmp.lt.s32.totalorder %s3151_s27, %s8706_s2 }
  0x22   : > { %196 = vperm.xlu2 %3046, %v3294_v4   ;;  %190 = vperm.xlu1 %3045, %v3297_v5   ;;  %v3390_v28 = vld [vmem:[%s3279_s25 + $0xe8] sm:$0xff]  ;;  %v3393_v29 = vld [vmem:[%s3279_s25 + $0xe0] sm:$0xff]  ;;  %v3396_v30 = vld [vmem:[%s3279_s25 + $0xd8] sm:$0xff]  ;;  %p3153_p11 = scmp.ne.s32.totalorder %s3151_s27, %s3152_s13  ;;  %p3158_p1 = scmp.lt.s32.totalorder %s3156_s30, %s3152_s13 }
  0x23   : > { %184 = vperm.xlu0 %3044, %v3300_v6   ;;  %v3402_v31 = vld [vmem:[%s3279_s25 + $0xf8] sm:$0xff]  ;;  %v3406_v33 = vld [vmem:[%s3279_s25 + $0xf0] sm:$0xff] }
  0x24   : > { %p3154_p12 = pnand %p3153_p11, %p3265_p5  ;;  %p3159_p2 = por %p3158_p1, %p3157_p0 }
  0x26   : > { %p3155_p13 = pneg %p3154_p12 }
  0x28   : > { %p3160_p3 = pnand %p3159_p2, %p3155_p13 }
  0x2a   : > { %205 = vperm.xlu2 %3046, %v3306_v7   ;;  %202 = vperm.xlu1 %3045, %v3309_v8  }
  0x2b   : > { %199 = vperm.xlu0 %3044, %v3312_v9  }
  0x32   : > { %214 = vperm.xlu2 %3046, %v3318_v10   ;;  %211 = vperm.xlu1 %3045, %v3321_v11  }
  0x33   : > { %208 = vperm.xlu0 %3044, %v3324_v12  }
  0x3a   : > { %223 = vperm.xlu2 %3046, %v3330_v13   ;;  %220 = vperm.xlu1 %3045, %v3333_v14  }
  0x3b   : > { %217 = vperm.xlu0 %3044, %v3336_v15  }
  0x42   : > { %232 = vperm.xlu2 %3046, %v3342_v16   ;;  %229 = vperm.xlu1 %3045, %v3345_v17  }
  0x43   : > { %226 = vperm.xlu0 %3044, %v3348_v18  }
  0x4a   : > { %241 = vperm.xlu2 %3046, %v3354_v19   ;;  %238 = vperm.xlu1 %3045, %v3357_v20  }
  0x4b   : > { %235 = vperm.xlu0 %3044, %v3360_v21  }
  0x52   : > { %250 = vperm.xlu2 %3046, %v3366_v22   ;;  %247 = vperm.xlu1 %3045, %v3369_v23  }
  0x53   : > { %244 = vperm.xlu0 %3044, %v3372_v24  }
  0x5a   : > { %259 = vperm.xlu2 %3046, %v3378_v25   ;;  %256 = vperm.xlu1 %3045, %v3381_v26  }
  0x5b   : > { %253 = vperm.xlu0 %3044, %v3384_v27  }
  0x62   : > { %268 = vperm.xlu2 %3046, %v3390_v28   ;;  %265 = vperm.xlu1 %3045, %v3393_v29  }
  0x63   : > { %262 = vperm.xlu0 %3044, %v3396_v30  }
  0x6a   : > { %3047 = vset.pattern.permute.xlu2 %v3201_v34  ;;  %274 = vperm.xlu1 %3045, %v3402_v31  }
  0x6b   : > { %271 = vperm.xlu0 %3044, %v3406_v33   ;;  %373 = vperm.xlu2 %3047, %v340_v32   ;;  %v359_v32 = vadd.s32 101, %v3357_v20 }
  0x72   : > { %3049 = vset.pattern.permute.xlu1 %v3201_v34 }
  0x73   : > { %3048 = vset.pattern.permute.xlu0 %v3201_v34  ;;  %379 = vperm.xlu1 %3049, %v342_v35   ;;  %v361_v34 = vadd.s32 101, %v3372_v24  ;;  %v360_v35 = vadd.s32 101, %v3354_v19 }
  0x74   : > { %376 = vperm.xlu0 %3048, %v341_v36   ;;  %382 = vperm.xlu2 %3047, %v343_v37   ;;  %v3413_v38 = vpop.permute.xlu2 %193 }
  0x75   : > { %8905 = vst [vmem:[#allocation5_spill] sm:$0xff] %v3413_v38  ;;  %v601_v38 = vadd.s32 105, %v3294_v4 }
  0x7b   : > { %385 = vperm.xlu1 %3049, %v344_v39  }
  0x7c   : > { %391 = vperm.xlu0 %3048, %v346_v40   ;;  %388 = vperm.xlu2 %3047, %v345_v41   ;;  %v3418_v42 = vpop.permute.xlu2 %196  ;;  %v362_v40 = vadd.s32 101, %v3369_v23  ;;  %v364_v41 = vadd.s32 101, %v3384_v27 }
  0x7d   : > { %8906 = vst [vmem:[#allocation6_spill] sm:$0xff] %v3418_v42 }
  0x83   : > { %394 = vperm.xlu1 %3049, %v347_v43   ;;  %v363_v43 = vadd.s32 101, %v3366_v22 }
  0x84   : > { %400 = vperm.xlu0 %3048, %v349_v44   ;;  %397 = vperm.xlu2 %3047, %v348_v45   ;;  %v3423_v46 = vpop.permute.xlu2 %205 }
  0x85   : > { %8907 = vst [vmem:[#allocation7_spill] sm:$0xff] %v3423_v46 }
  0x8b   : > { %403 = vperm.xlu1 %3049, %v350_v47  }
  0x8c   : > { %409 = vperm.xlu0 %3048, %v352_v48   ;;  %406 = vperm.xlu2 %3047, %v351_v49   ;;  %v3428_v50 = vpop.permute.xlu2 %214  ;;  %v3430_v51 = vpop.permute.xlu1 %187  ;;  %v365_v48 = vadd.s32 101, %v3381_v26  ;;  %v367_v49 = vadd.s32 101, %v3396_v30 }
  0x8d   : > { %8908 = vst [vmem:[#allocation8_spill] sm:$0xff] %v3428_v50  ;;  %v3432_v52 = vpop.permute.xlu0 %181 }
  0x8e   : > { %8909 = vst [vmem:[#allocation9_spill] sm:$0xff] %v3430_v51  ;;  %v604_v51 = vadd.s32 105, %v3306_v7 }
  0x8f   : > { %8910 = vst [vmem:[#allocation10_spill] sm:$0xff] %v3432_v52 }
  0x93   : > { %412 = vperm.xlu1 %3049, %v353_v53   ;;  %v366_v53 = vadd.s32 101, %v3378_v25 }
  0x94   : > { %418 = vperm.xlu0 %3048, %v355_v54   ;;  %415 = vperm.xlu2 %3047, %v354_v55   ;;  %v3437_v56 = vpop.permute.xlu2 %223  ;;  %v3439_v57 = vpop.permute.xlu1 %190 }
  0x95   : > { %8911 = vst [vmem:[#allocation11_spill] sm:$0xff] %v3437_v56  ;;  %v3441_v58 = vpop.permute.xlu0 %184  ;;  %v605_v56 = vadd.s32 105, %v3324_v12 }
  0x96   : > { %8912 = vst [vmem:[#allocation12_spill] sm:$0xff] %v3439_v57 }
  0x97   : > { %8913 = vst [vmem:[#allocation13_spill] sm:$0xff] %v3441_v58 }
  0x9b   : > { %421 = vperm.xlu1 %3049, %v356_v59  }
  0x9c   : > { %427 = vperm.xlu0 %3048, %v358_v60   ;;  %424 = vperm.xlu2 %3047, %v357_v61   ;;  %v3446_v62 = vpop.permute.xlu2 %232  ;;  %v3448_v63 = vpop.permute.xlu1 %202  ;;  %v368_v60 = vadd.s32 101, %v3393_v29  ;;  %v370_v61 = vadd.s32 101, %v3406_v33 }
  0x9d   : > { %8914 = vst [vmem:[#allocation14_spill] sm:$0xff] %v3448_v63  ;;  %v3450_v0 = vpop.permute.xlu0 %199 }
  0x9e   : > { %8915 = vst [vmem:[#allocation15_spill] sm:$0xff] %v3450_v0  ;;  %v622_v0 = vadd.s32 105, %v3378_v25 }
  0xa3   : > { %430 = vperm.xlu1 %3049, %v359_v32   ;;  %v369_v32 = vadd.s32 101, %v3390_v28 }
  0xa4   : > { %436 = vperm.xlu0 %3048, %v361_v34   ;;  %433 = vperm.xlu2 %3047, %v360_v35   ;;  %v3455_v36 = vpop.permute.xlu2 %241  ;;  %v3457_v37 = vpop.permute.xlu1 %211 }
  0xa5   : > { %8916 = vst [vmem:[#allocation16_spill] sm:$0xff] %v3457_v37  ;;  %v3459_v39 = vpop.permute.xlu0 %208  ;;  %v599_v37 = vadd.s32 105, %v3297_v5 }
  0xab   : > { %439 = vperm.xlu1 %3049, %v362_v40  }
  0xac   : > { %445 = vperm.xlu0 %3048, %v364_v41   ;;  %442 = vperm.xlu2 %3047, %v363_v43   ;;  %v3464_v44 = vpop.permute.xlu2 %250  ;;  %v3466_v45 = vpop.permute.xlu1 %220  ;;  %v371_v41 = vadd.s32 101, %v3402_v31  ;;  %v597_v43 = vadd.s32 105, %v3300_v6 }
  0xad   : > { %8917 = vst [vmem:[#allocation17_spill] sm:$0xff] %v3464_v44  ;;  %v3468_v47 = vpop.permute.xlu0 %217 }
  0xae   : > { %8918 = vst [vmem:[#allocation18_spill] sm:$0xff] %v3466_v45  ;;  %v602_v45 = vadd.s32 105, %v3312_v9 }
  0xb3   : > { %448 = vperm.xlu1 %3049, %v365_v48   ;;  %v596_v48 = vadd.s32 105, %v3288_v3 }
  0xb4   : > { %454 = vperm.xlu0 %3048, %v367_v49   ;;  %451 = vperm.xlu2 %3047, %v366_v53   ;;  %v3473_v54 = vpop.permute.xlu2 %259  ;;  %v3475_v55 = vpop.permute.xlu1 %229  ;;  %v3202_v49 = vmov 2  }
  0xb5   : > { %8919 = vst [vmem:[#allocation19_spill] sm:$0xff] %v3473_v54  ;;  %v3477_v59 = vpop.permute.xlu0 %226 }
  0xb6   : > { %8920 = vst [vmem:[#allocation20_spill] sm:$0xff] %v3475_v55  ;;  %v3204_v55 = vmov 4  }
  0xbb   : > { %457 = vperm.xlu1 %3049, %v368_v60  }
  0xbc   : > { %463 = vperm.xlu0 %3048, %v370_v61   ;;  %460 = vperm.xlu2 %3047, %v369_v32   ;;  %v3482_v34 = vpop.permute.xlu2 %268  ;;  %v3484_v35 = vpop.permute.xlu1 %238  ;;  %v598_v32 = vadd.s32 105, %v3285_v2 }
  0xbd   : > { %8921 = vst [vmem:[#allocation21_spill] sm:$0xff] %v3482_v34  ;;  %v3486_v40 = vpop.permute.xlu0 %235  ;;  %v3203_v34 = vmov 3  }
  0xbe   : > { %8922 = vst [vmem:[#allocation22_spill] sm:$0xff] %v3484_v35 }
  0xc3   : > { %466 = vperm.xlu1 %3049, %v371_v41  }
  0xc4   : > { %3051 = vset.pattern.permute.xlu0 %v3202_v49  ;;  %3050 = vset.pattern.permute.xlu2 %v3202_v49  ;;  %v3491_v53 = vpop.permute.xlu1 %247 }
  0xc5   : > { %8923 = vst [vmem:[#allocation23_spill] sm:$0xff] %v3491_v53  ;;  %632 = vperm.xlu0 %3051, %v597_v43   ;;  %v3493_v60 = vpop.permute.xlu0 %244  ;;  %629 = vperm.xlu2 %3050, %v596_v48   ;;  %v3495_v61 = vpop.permute.xlu2 %373  ;;  %v600_v48 = vadd.s32 105, %v3282_v1 }
  0xc6   : > { %8924 = vst [vmem:[#allocation24_spill] sm:$0xff] %v3495_v61  ;;  %v852_v61 = vadd.s32 117, %v3288_v3 }
  0xcb   : > { %3052 = vset.pattern.permute.xlu1 %v3202_v49 }
  0xcc   : > { %v3500_v63 = vpop.permute.xlu1 %256  ;;  %635 = vperm.xlu1 %3052, %v598_v32  }
  0xcd   : > { %8925 = vst [vmem:[#allocation25_spill] sm:$0xff] %v3500_v63  ;;  %647 = vperm.xlu0 %3051, %v602_v45   ;;  %v3502_v41 = vpop.permute.xlu0 %253  ;;  %638 = vperm.xlu2 %3050, %v599_v37   ;;  %v603_v45 = vadd.s32 105, %v3309_v8  ;;  %v608_v37 = vadd.s32 105, %v3336_v15 }
  0xce   : > { %8926 = vst [vmem:[#allocation26_spill] sm:$0xff] %v3502_v41  ;;  %v3504_v43 = vpop.permute.xlu2 %382 }
  0xcf   : > { %8927 = vst [vmem:[#allocation27_spill] sm:$0xff] %v3504_v43  ;;  %v619_v43 = vadd.s32 105, %v3366_v22 }
  0xd4   : > { %v3509_v50 = vpop.permute.xlu1 %265  ;;  %641 = vperm.xlu1 %3052, %v600_v48  }
  0xd5   : > { %8928 = vst [vmem:[#allocation28_spill] sm:$0xff] %v3509_v50  ;;  %656 = vperm.xlu0 %3051, %v605_v56   ;;  %v3511_v49 = vpop.permute.xlu0 %262  ;;  %644 = vperm.xlu2 %3050, %v601_v38   ;;  %v606_v56 = vadd.s32 105, %v3321_v11  ;;  %v611_v38 = vadd.s32 105, %v3348_v18 }
  0xd6   : > { %8929 = vst [vmem:[#allocation29_spill] sm:$0xff] %v3511_v49  ;;  %v3513_v32 = vpop.permute.xlu2 %388  ;;  %v875_v49 = vadd.s32 117, %v3366_v22 }
  0xd7   : > { %8930 = vst [vmem:[#allocation30_spill] sm:$0xff] %v3513_v32  ;;  %v607_v32 = vadd.s32 105, %v3318_v10 }
  0xdc   : > { %v3518_v46 = vpop.permute.xlu1 %274  ;;  %650 = vperm.xlu1 %3052, %v603_v45  }
  0xdd   : > { %8931 = vst [vmem:[#allocation31_spill] sm:$0xff] %v3518_v46  ;;  %665 = vperm.xlu0 %3051, %v608_v37   ;;  %v3520_v42 = vpop.permute.xlu0 %271  ;;  %653 = vperm.xlu2 %3050, %v604_v51   ;;  %v609_v37 = vadd.s32 105, %v3333_v14  ;;  %v614_v51 = vadd.s32 105, %v3360_v21  ;;  %v610_v46 = vadd.s32 105, %v3330_v13 }
  0xde   : > { %8932 = vst [vmem:[#allocation32_spill] sm:$0xff] %v3520_v42  ;;  %v3522_v48 = vpop.permute.xlu2 %397 }
  0xdf   : > { %8933 = vst [vmem:[#allocation33_spill] sm:$0xff] %v3522_v48 }
  0xe4   : > { %659 = vperm.xlu1 %3052, %v606_v56  }
  0xe5   : > { %674 = vperm.xlu0 %3051, %v611_v38   ;;  %662 = vperm.xlu2 %3050, %v607_v32   ;;  %v3527_v50 = vpop.permute.xlu1 %379  ;;  %v612_v38 = vadd.s32 105, %v3345_v17 }
  0xe6   : > { %8934 = vst [vmem:[#allocation34_spill] sm:$0xff] %v3527_v50  ;;  %v3529_v63 = vpop.permute.xlu0 %376  ;;  %v3531_v45 = vpop.permute.xlu2 %406  ;;  %v617_v50 = vadd.s32 105, %v3372_v24 }
  0xe7   : > { %8935 = vst [vmem:[#allocation35_spill] sm:$0xff] %v3529_v63  ;;  %v853_v63 = vadd.s32 117, %v3300_v6 }
  0xe8   : > { %8936 = vst [vmem:[#allocation36_spill] sm:$0xff] %v3531_v45  ;;  %v613_v45 = vadd.s32 105, %v3342_v16 }
  0xec   : > { %668 = vperm.xlu1 %3052, %v609_v37  }
  0xed   : > { %683 = vperm.xlu0 %3051, %v614_v51   ;;  %671 = vperm.xlu2 %3050, %v610_v46   ;;  %v3536_v48 = vpop.permute.xlu1 %385  ;;  %v615_v51 = vadd.s32 105, %v3357_v20 }
  0xee   : > { %8937 = vst [vmem:[#allocation37_spill] sm:$0xff] %v3536_v48  ;;  %v3538_v56 = vpop.permute.xlu0 %391  ;;  %v3540_v32 = vpop.permute.xlu2 %415  ;;  %v620_v48 = vadd.s32 105, %v3384_v27 }
  0xef   : > { %8938 = vst [vmem:[#allocation38_spill] sm:$0xff] %v3538_v56 }
  0xf0   : > { %8939 = vst [vmem:[#allocation39_spill] sm:$0xff] %v3540_v32  ;;  %v616_v32 = vadd.s32 105, %v3354_v19 }
  0xf4   : > { %677 = vperm.xlu1 %3052, %v612_v38  }
  0xf5   : > { %692 = vperm.xlu0 %3051, %v617_v50   ;;  %680 = vperm.xlu2 %3050, %v613_v45   ;;  %v3545_v57 = vpop.permute.xlu1 %394  ;;  %v618_v45 = vadd.s32 105, %v3369_v23 }
  0xf6   : > { %8940 = vst [vmem:[#allocation40_spill] sm:$0xff] %v3545_v57  ;;  %v3547_v37 = vpop.permute.xlu0 %400  ;;  %v3549_v46 = vpop.permute.xlu2 %424  ;;  %v623_v57 = vadd.s32 105, %v3396_v30 }
  0xfc   : > { %686 = vperm.xlu1 %3052, %v615_v51  }
  0xfd   : > { %701 = vperm.xlu0 %3051, %v620_v48   ;;  %689 = vperm.xlu2 %3050, %v616_v32   ;;  %v3554_v56 = vpop.permute.xlu1 %403  ;;  %v621_v32 = vadd.s32 105, %v3381_v26 }
  0xfe   : > { %8941 = vst [vmem:[#allocation41_spill] sm:$0xff] %v3554_v56  ;;  %v3556_v38 = vpop.permute.xlu0 %409  ;;  %v3558_v50 = vpop.permute.xlu2 %433  ;;  %v626_v56 = vadd.s32 105, %v3406_v33 }
 0x104   : > { %695 = vperm.xlu1 %3052, %v618_v45  }
 0x105   : > { %710 = vperm.xlu0 %3051, %v623_v57   ;;  %698 = vperm.xlu2 %3050, %v619_v43   ;;  %v3563_v53 = vpop.permute.xlu1 %412  ;;  %v624_v43 = vadd.s32 105, %v3393_v29 }
 0x106   : > { %8942 = vst [vmem:[#allocation42_spill] sm:$0xff] %v3563_v53  ;;  %v3565_v51 = vpop.permute.xlu0 %418  ;;  %v3567_v48 = vpop.permute.xlu2 %442  ;;  %v625_v53 = vadd.s32 105, %v3390_v28 }
 0x107   : > { %8943 = vst [vmem:[#allocation43_spill] sm:$0xff] %v3567_v48 }
 0x10c   : > { %704 = vperm.xlu1 %3052, %v621_v32   ;;  %v627_v32 = vadd.s32 105, %v3402_v31 }
 0x10d   : > { %719 = vperm.xlu0 %3051, %v626_v56   ;;  %707 = vperm.xlu2 %3050, %v622_v0   ;;  %v3572_v52 = vpop.permute.xlu1 %421 }
 0x10e   : > { %8944 = vst [vmem:[#allocation44_spill] sm:$0xff] %v3572_v52  ;;  %v3574_v45 = vpop.permute.xlu0 %427  ;;  %v3576_v57 = vpop.permute.xlu2 %451 }
 0x10f   : > { %8945 = vst [vmem:[#allocation45_spill] sm:$0xff] %v3576_v57  ;;  %v858_v57 = vadd.s32 117, %v3312_v9 }
 0x114   : > { %713 = vperm.xlu1 %3052, %v624_v43  }
 0x115   : > { %3054 = vset.pattern.permute.xlu0 %v3203_v34  ;;  %716 = vperm.xlu2 %3050, %v625_v53   ;;  %v3581_v42 = vpop.permute.xlu1 %430 }
 0x116   : > { %8946 = vst [vmem:[#allocation46_spill] sm:$0xff] %v3581_v42  ;;  %888 = vperm.xlu0 %3054, %v853_v63   ;;  %v3583_v0 = vpop.permute.xlu0 %436  ;;  %v3585_v56 = vpop.permute.xlu2 %460  ;;  %v854_v63 = vadd.s32 117, %v3285_v2  ;;  %v855_v42 = vadd.s32 117, %v3297_v5 }
 0x117   : > { %8947 = vst [vmem:[#allocation47_spill] sm:$0xff] %v3585_v56  ;;  %v861_v56 = vadd.s32 117, %v3324_v12 }
 0x11c   : > { %722 = vperm.xlu1 %3052, %v627_v32  }
 0x11d   : > { %3053 = vset.pattern.permute.xlu2 %v3203_v34  ;;  %v3590_v35 = vpop.permute.xlu1 %439 }
 0x11e   : > { %8948 = vst [vmem:[#allocation48_spill] sm:$0xff] %v3590_v35  ;;  %903 = vperm.xlu0 %3054, %v858_v57   ;;  %v3592_v43 = vpop.permute.xlu0 %445  ;;  %885 = vperm.xlu2 %3053, %v852_v61   ;;  %v856_v61 = vadd.s32 117, %v3282_v1  ;;  %v857_v35 = vadd.s32 117, %v3294_v4 }
 0x11f   : > { %v3594_v53 = vpop.permute.xlu2 %629 }
 0x120   : > { %8949 = vst [vmem:[#allocation49_spill] sm:$0xff] %v3594_v53  ;;  %v864_v53 = vadd.s32 117, %v3336_v15 }
 0x124   : > { %3055 = vset.pattern.permute.xlu1 %v3203_v34 }
 0x125   : > { %891 = vperm.xlu1 %3055, %v854_v63   ;;  %v3599_v58 = vpop.permute.xlu1 %448 }
 0x126   : > { %8950 = vst [vmem:[#allocation50_spill] sm:$0xff] %v3599_v58  ;;  %912 = vperm.xlu0 %3054, %v861_v56   ;;  %v3601_v32 = vpop.permute.xlu0 %454  ;;  %894 = vperm.xlu2 %3053, %v855_v42   ;;  %v859_v56 = vadd.s32 117, %v3309_v8  ;;  %v867_v42 = vadd.s32 117, %v3348_v18 }
 0x127   : > { %8951 = vst [vmem:[#allocation51_spill] sm:$0xff] %v3601_v32  ;;  %v3603_v57 = vpop.permute.xlu2 %638 }
 0x128   : > { %8952 = vst [vmem:[#allocation52_spill] sm:$0xff] %v3603_v57  ;;  %v860_v57 = vadd.s32 117, %v3306_v7 }
 0x12d   : > { %897 = vperm.xlu1 %3055, %v856_v61   ;;  %v3608_v52 = vpop.permute.xlu1 %457 }
 0x12e   : > { %8953 = vst [vmem:[#allocation53_spill] sm:$0xff] %v3608_v52  ;;  %921 = vperm.xlu0 %3054, %v864_v53   ;;  %v3610_v34 = vpop.permute.xlu0 %463  ;;  %900 = vperm.xlu2 %3053, %v857_v35   ;;  %v862_v53 = vadd.s32 117, %v3321_v11  ;;  %v870_v35 = vadd.s32 117, %v3360_v21 }
 0x12f   : > { %8954 = vst [vmem:[#allocation54_spill] sm:$0xff] %v3610_v34  ;;  %v3612_v63 = vpop.permute.xlu2 %644 }
 0x130   : > { %8955 = vst [vmem:[#allocation55_spill] sm:$0xff] %v3612_v63  ;;  %v863_v63 = vadd.s32 117, %v3318_v10 }
 0x135   : > { %906 = vperm.xlu1 %3055, %v859_v56   ;;  %v3617_v58 = vpop.permute.xlu1 %466 }
 0x136   : > { %8956 = vst [vmem:[#allocation56_spill] sm:$0xff] %v3617_v58  ;;  %930 = vperm.xlu0 %3054, %v867_v42   ;;  %909 = vperm.xlu2 %3053, %v860_v57   ;;  %v865_v57 = vadd.s32 117, %v3333_v14  ;;  %v873_v42 = vadd.s32 117, %v3372_v24 }
 0x137   : > { %v3619_v61 = vpop.permute.xlu0 %632  ;;  %v3621_v52 = vpop.permute.xlu2 %653 }
 0x138   : > { %8957 = vst [vmem:[#allocation57_spill] sm:$0xff] %v3619_v61 }
 0x139   : > { %8958 = vst [vmem:[#allocation58_spill] sm:$0xff] %v3621_v52  ;;  %v866_v52 = vadd.s32 117, %v3330_v13 }
 0x13d   : > { %915 = vperm.xlu1 %3055, %v862_v53  }
 0x13e   : > { %939 = vperm.xlu0 %3054, %v870_v35   ;;  %918 = vperm.xlu2 %3053, %v863_v63   ;;  %v3626_v34 = vpop.permute.xlu1 %635  ;;  %v868_v35 = vadd.s32 117, %v3345_v17 }
 0x13f   : > { %8959 = vst [vmem:[#allocation59_spill] sm:$0xff] %v3626_v34  ;;  %v3628_v56 = vpop.permute.xlu0 %647  ;;  %v3630_v58 = vpop.permute.xlu2 %662  ;;  %v876_v34 = vadd.s32 117, %v3384_v27 }
 0x140   : > { %8960 = vst [vmem:[#allocation60_spill] sm:$0xff] %v3628_v56 }
 0x141   : > { %8961 = vst [vmem:[#allocation61_spill] sm:$0xff] %v3630_v58  ;;  %v869_v58 = vadd.s32 117, %v3342_v16 }
 0x145   : > { %924 = vperm.xlu1 %3055, %v865_v57  }
 0x146   : > { %948 = vperm.xlu0 %3054, %v873_v42   ;;  %927 = vperm.xlu2 %3053, %v866_v52   ;;  %v3635_v61 = vpop.permute.xlu1 %641  ;;  %v871_v42 = vadd.s32 117, %v3357_v20 }
 0x147   : > { %8962 = vst [vmem:[#allocation62_spill] sm:$0xff] %v3635_v61  ;;  %v3637_v53 = vpop.permute.xlu0 %656  ;;  %v3639_v63 = vpop.permute.xlu2 %671  ;;  %v879_v61 = vadd.s32 117, %v3396_v30 }
 0x148   : > { %8963 = vst [vmem:[#allocation63_spill] sm:$0xff] %v3639_v63  ;;  %v872_v63 = vadd.s32 117, %v3354_v19 }
 0x14d   : > { %933 = vperm.xlu1 %3055, %v868_v35  }
 0x14e   : > { %957 = vperm.xlu0 %3054, %v876_v34   ;;  %936 = vperm.xlu2 %3053, %v869_v58   ;;  %v3644_v56 = vpop.permute.xlu1 %650  ;;  %v874_v34 = vadd.s32 117, %v3369_v23 }
 0x14f   : > { %8964 = vst [vmem:[#allocation64_spill] sm:$0xff] %v3644_v56  ;;  %v3646_v57 = vpop.permute.xlu0 %665  ;;  %v3648_v52 = vpop.permute.xlu2 %680  ;;  %v882_v56 = vadd.s32 117, %v3406_v33 }
 0x155   : > { %942 = vperm.xlu1 %3055, %v871_v42  }
 0x156   : > { %966 = vperm.xlu0 %3054, %v879_v61   ;;  %945 = vperm.xlu2 %3053, %v872_v63   ;;  %v3653_v32 = vpop.permute.xlu1 %659  ;;  %v877_v63 = vadd.s32 117, %v3381_v26 }
 0x157   : > { %8965 = vst [vmem:[#allocation65_spill] sm:$0xff] %v3653_v32  ;;  %v3655_v35 = vpop.permute.xlu0 %674  ;;  %v3657_v58 = vpop.permute.xlu2 %689  ;;  %v878_v32 = vadd.s32 117, %v3378_v25 }
 0x158   : > { %8966 = vst [vmem:[#allocation66_spill] sm:$0xff] %v3657_v58  ;;  %v1109_v58 = vadd.s32 129, %v3300_v6 }
 0x15d   : > { %951 = vperm.xlu1 %3055, %v874_v34   ;;  %v880_v34 = vadd.s32 117, %v3393_v29 }
 0x15e   : > { %975 = vperm.xlu0 %3054, %v882_v56   ;;  %954 = vperm.xlu2 %3053, %v875_v49   ;;  %v3662_v54 = vpop.permute.xlu1 %668 }
 0x15f   : > { %8967 = vst [vmem:[#allocation67_spill] sm:$0xff] %v3662_v54  ;;  %v3664_v42 = vpop.permute.xlu0 %683  ;;  %v3666_v61 = vpop.permute.xlu2 %698  ;;  %v881_v54 = vadd.s32 117, %v3390_v28 }
 0x160   : > { %8968 = vst [vmem:[#allocation68_spill] sm:$0xff] %v3664_v42 }
 0x161   : > { %8969 = vst [vmem:[#allocation69_spill] sm:$0xff] %v3666_v61  ;;  %v1114_v61 = vadd.s32 129, %v3312_v9 }
 0x165   : > { %960 = vperm.xlu1 %3055, %v877_v63  }
 0x166   : > { %3057 = vset.pattern.permute.xlu0 %v3204_v55  ;;  %963 = vperm.xlu2 %3053, %v878_v32   ;;  %v3671_v48 = vpop.permute.xlu1 %677 }
 0x167   : > { %8970 = vst [vmem:[#allocation70_spill] sm:$0xff] %v3671_v48  ;;  %1144 = vperm.xlu0 %3057, %v1109_v58   ;;  %v3673_v49 = vpop.permute.xlu0 %692  ;;  %v3675_v56 = vpop.permute.xlu2 %707  ;;  %v883_v58 = vadd.s32 117, %v3402_v31  ;;  %v1117_v48 = vadd.s32 129, %v3324_v12 }
 0x168   : > { %8971 = vst [vmem:[#allocation71_spill] sm:$0xff] %v3673_v49 }
 0x169   : > { %8972 = vst [vmem:[#allocation72_spill] sm:$0xff] %v3675_v56  ;;  %v1108_v56 = vadd.s32 129, %v3288_v3 }
 0x16d   : > { %969 = vperm.xlu1 %3055, %v880_v34  }
 0x16e   : > { %972 = vperm.xlu2 %3053, %v881_v54   ;;  %v3680_v41 = vpop.permute.xlu1 %686 }
 0x16f   : > { %8973 = vst [vmem:[#allocation73_spill] sm:$0xff] %v3680_v41  ;;  %1159 = vperm.xlu0 %3057, %v1114_v61   ;;  %v3682_v63 = vpop.permute.xlu0 %701  ;;  %v3684_v32 = vpop.permute.xlu2 %716  ;;  %v1110_v61 = vadd.s32 129, %v3285_v2  ;;  %v1111_v41 = vadd.s32 129, %v3297_v5 }
 0x170   : > { %8974 = vst [vmem:[#allocation74_spill] sm:$0xff] %v3682_v63 }
 0x171   : > { %8975 = vst [vmem:[#allocation75_spill] sm:$0xff] %v3684_v32  ;;  %v1120_v32 = vadd.s32 129, %v3336_v15 }
 0x175   : > { %978 = vperm.xlu1 %3055, %v883_v58  }
 0x176   : > { %3056 = vset.pattern.permute.xlu2 %v3204_v55  ;;  %v3689_v49 = vpop.permute.xlu1 %695 }
 0x177   : > { %8976 = vst [vmem:[#allocation76_spill] sm:$0xff] %v3689_v49  ;;  %1168 = vperm.xlu0 %3057, %v1117_v48   ;;  %v3691_v34 = vpop.permute.xlu0 %710  ;;  %1141 = vperm.xlu2 %3056, %v1108_v56   ;;  %v1112_v56 = vadd.s32 129, %v3282_v1  ;;  %v1113_v49 = vadd.s32 129, %v3294_v4 }
 0x178   : > { %8977 = vst [vmem:[#allocation77_spill] sm:$0xff] %v3691_v34  ;;  %v3693_v54 = vpop.permute.xlu2 %885 }
 0x179   : > { %8978 = vst [vmem:[#allocation78_spill] sm:$0xff] %v3693_v54  ;;  %v1123_v54 = vadd.s32 129, %v3348_v18 }
 0x17d   : > { %3058 = vset.pattern.permute.xlu1 %v3204_v55 }
 0x17e   : > { %1147 = vperm.xlu1 %3058, %v1110_v61   ;;  %v3698_v63 = vpop.permute.xlu1 %704 }
 0x17f   : > { %8979 = vst [vmem:[#allocation79_spill] sm:$0xff] %v3698_v63  ;;  %1177 = vperm.xlu0 %3057, %v1120_v32   ;;  %v3700_v58 = vpop.permute.xlu0 %719  ;;  %1150 = vperm.xlu2 %3056, %v1111_v41   ;;  %v1115_v32 = vadd.s32 129, %v3309_v8  ;;  %v1126_v41 = vadd.s32 129, %v3360_v21 }
 0x180   : > { %8980 = vst [vmem:[#allocation80_spill] sm:$0xff] %v3700_v58  ;;  %v3702_v48 = vpop.permute.xlu2 %894 }
 0x181   : > { %8981 = vst [vmem:[#allocation81_spill] sm:$0xff] %v3702_v48  ;;  %v1116_v48 = vadd.s32 129, %v3306_v7 }
 0x186   : > { %1153 = vperm.xlu1 %3058, %v1112_v56   ;;  %v3707_v34 = vpop.permute.xlu1 %713 }
 0x187   : > { %8982 = vst [vmem:[#allocation82_spill] sm:$0xff] %v3707_v34  ;;  %1186 = vperm.xlu0 %3057, %v1123_v54   ;;  %1156 = vperm.xlu2 %3056, %v1113_v49   ;;  %v1118_v49 = vadd.s32 129, %v3321_v11  ;;  %v1129_v54 = vadd.s32 129, %v3372_v24 }
 0x188   : > { %v3709_v55 = vpop.permute.xlu0 %888  ;;  %v3711_v61 = vpop.permute.xlu2 %900 }
 0x189   : > { %8983 = vst [vmem:[#allocation83_spill] sm:$0xff] %v3709_v55 }
 0x18a   : > { %8984 = vst [vmem:[#allocation84_spill] sm:$0xff] %v3711_v61  ;;  %v1119_v61 = vadd.s32 129, %v3318_v10 }
 0x18e   : > { %1162 = vperm.xlu1 %3058, %v1115_v32   ;;  %v3716_v63 = vpop.permute.xlu1 %722 }
 0x18f   : > { %8985 = vst [vmem:[#allocation85_spill] sm:$0xff] %v3716_v63  ;;  %1195 = vperm.xlu0 %3057, %v1126_v41   ;;  %1165 = vperm.xlu2 %3056, %v1116_v48   ;;  %v1121_v48 = vadd.s32 129, %v3333_v14  ;;  %v1132_v41 = vadd.s32 129, %v3384_v27 }
 0x190   : > { %v3718_v56 = vpop.permute.xlu0 %903  ;;  %v3720_v34 = vpop.permute.xlu2 %909 }
 0x191   : > { %8986 = vst [vmem:[#allocation86_spill] sm:$0xff] %v3718_v56 }
 0x192   : > { %8987 = vst [vmem:[#allocation87_spill] sm:$0xff] %v3720_v34  ;;  %v1122_v34 = vadd.s32 129, %v3330_v13 }
 0x196   : > { %1171 = vperm.xlu1 %3058, %v1118_v49  }
 0x197   : > { %1204 = vperm.xlu0 %3057, %v1129_v54   ;;  %1174 = vperm.xlu2 %3056, %v1119_v61   ;;  %v3725_v55 = vpop.permute.xlu1 %891  ;;  %v1124_v54 = vadd.s32 129, %v3345_v17 }
 0x198   : > { %8988 = vst [vmem:[#allocation88_spill] sm:$0xff] %v3725_v55  ;;  %v3727_v32 = vpop.permute.xlu0 %912  ;;  %v3729_v63 = vpop.permute.xlu2 %918  ;;  %v1135_v55 = vadd.s32 129, %v3396_v30 }
 0x199   : > { %8989 = vst [vmem:[#allocation89_spill] sm:$0xff] %v3729_v63  ;;  %v1125_v63 = vadd.s32 129, %v3342_v16 }
 0x19e   : > { %1180 = vperm.xlu1 %3058, %v1121_v48  }
 0x19f   : > { %1213 = vperm.xlu0 %3057, %v1132_v41   ;;  %1183 = vperm.xlu2 %3056, %v1122_v34   ;;  %v3734_v56 = vpop.permute.xlu1 %897  ;;  %v1127_v41 = vadd.s32 129, %v3357_v20 }
 0x1a0   : > { %8990 = vst [vmem:[#allocation90_spill] sm:$0xff] %v3734_v56  ;;  %v3736_v49 = vpop.permute.xlu0 %921  ;;  %v3738_v61 = vpop.permute.xlu2 %927  ;;  %v1138_v56 = vadd.s32 129, %v3406_v33 }
 0x1a1   : > { %8991 = vst [vmem:[#allocation91_spill] sm:$0xff] %v3738_v61  ;;  %v1128_v61 = vadd.s32 129, %v3354_v19 }
 0x1a6   : > { %1189 = vperm.xlu1 %3058, %v1124_v54  }
 0x1a7   : > { %1222 = vperm.xlu0 %3057, %v1135_v55   ;;  %1192 = vperm.xlu2 %3056, %v1125_v63   ;;  %v3743_v58 = vpop.permute.xlu1 %906  ;;  %v1130_v55 = vadd.s32 129, %v3369_v23 }
 0x1a8   : > { %8992 = vst [vmem:[#allocation92_spill] sm:$0xff] %v3743_v58  ;;  %v3745_v48 = vpop.permute.xlu0 %930  ;;  %v3747_v34 = vpop.permute.xlu2 %936  ;;  %v1131_v58 = vadd.s32 129, %v3366_v22 }
 0x1a9   : > { %8993 = vst [vmem:[#allocation93_spill] sm:$0xff] %v3745_v48  ;;  %v3205_v48 = vmov 5  }
 0x1aa   : > { %8994 = vst [vmem:[#allocation94_spill] sm:$0xff] %v3747_v34  ;;  %v1365_v34 = vadd.s32 139, %v3300_v6 }
 0x1ae   : > { %1198 = vperm.xlu1 %3058, %v1127_v41   ;;  %v1133_v41 = vadd.s32 129, %v3381_v26 }
 0x1af   : > { %1231 = vperm.xlu0 %3057, %v1138_v56   ;;  %1201 = vperm.xlu2 %3056, %v1128_v61   ;;  %v3752_v44 = vpop.permute.xlu1 %915 }
 0x1b0   : > { %8995 = vst [vmem:[#allocation95_spill] sm:$0xff] %v3752_v44  ;;  %v3754_v54 = vpop.permute.xlu0 %939  ;;  %v3756_v63 = vpop.permute.xlu2 %945  ;;  %v1134_v44 = vadd.s32 129, %v3378_v25 }
 0x1b1   : > { %8996 = vst [vmem:[#allocation96_spill] sm:$0xff] %v3756_v63  ;;  %v1370_v63 = vadd.s32 139, %v3312_v9 }
 0x1b6   : > { %1207 = vperm.xlu1 %3058, %v1130_v55  }
 0x1b7   : > { %3060 = vset.pattern.permute.xlu0 %v3205_v48  ;;  %1210 = vperm.xlu2 %3056, %v1131_v58   ;;  %v3761_v42 = vpop.permute.xlu1 %924 }
 0x1b8   : > { %8997 = vst [vmem:[#allocation97_spill] sm:$0xff] %v3761_v42  ;;  %1400 = vperm.xlu0 %3060, %v1365_v34   ;;  %v3763_v56 = vpop.permute.xlu0 %948  ;;  %v3765_v61 = vpop.permute.xlu2 %954  ;;  %v1136_v34 = vadd.s32 129, %v3393_v29  ;;  %v1137_v42 = vadd.s32 129, %v3390_v28 }
 0x1b9   : > { %8998 = vst [vmem:[#allocation98_spill] sm:$0xff] %v3763_v56 }
 0x1ba   : > { %8999 = vst [vmem:[#allocation99_spill] sm:$0xff] %v3765_v61  ;;  %v1373_v61 = vadd.s32 139, %v3324_v12 }
 0x1be   : > { %1216 = vperm.xlu1 %3058, %v1133_v41   ;;  %v1376_v41 = vadd.s32 139, %v3336_v15 }
 0x1bf   : > { %1219 = vperm.xlu2 %3056, %v1134_v44   ;;  %v3770_v6 = vpop.permute.xlu1 %933 }
 0x1c0   : > { %9000 = vst [vmem:[#allocation100_spill] sm:$0xff] %v3770_v6  ;;  %1415 = vperm.xlu0 %3060, %v1370_v63   ;;  %v3772_v55 = vpop.permute.xlu0 %957  ;;  %v3774_v58 = vpop.permute.xlu2 %963  ;;  %v1139_v63 = vadd.s32 129, %v3402_v31 }
 0x1c1   : > { %9001 = vst [vmem:[#allocation101_spill] sm:$0xff] %v3774_v58  ;;  %v1364_v58 = vadd.s32 139, %v3288_v3 }
 0x1c6   : > { %1225 = vperm.xlu1 %3058, %v1136_v34   ;;  %v1379_v34 = vadd.s32 139, %v3348_v18 }
 0x1c7   : > { %1228 = vperm.xlu2 %3056, %v1137_v42   ;;  %v3779_v56 = vpop.permute.xlu1 %942 }
 0x1c8   : > { %1424 = vperm.xlu0 %3060, %v1373_v61   ;;  %v3781_v9 = vpop.permute.xlu0 %966  ;;  %v3783_v44 = vpop.permute.xlu2 %972  ;;  %v1366_v61 = vadd.s32 139, %v3285_v2  ;;  %v1369_v2 = vadd.s32 139, %v3294_v4 }
 0x1c9   : > { %9002 = vst [vmem:[#allocation102_spill] sm:$0xff] %v3783_v44  ;;  %v1367_v44 = vadd.s32 139, %v3297_v5 }
 0x1ce   : > { %1234 = vperm.xlu1 %3058, %v1139_v63  }
 0x1cf   : > { %3059 = vset.pattern.permute.xlu2 %v3205_v48  ;;  %v3788_v6 = vpop.permute.xlu1 %951 }
 0x1d0   : > { %1433 = vperm.xlu0 %3060, %v1376_v41   ;;  %v3790_v12 = vpop.permute.xlu0 %975  ;;  %1397 = vperm.xlu2 %3059, %v1364_v58   ;;  %v1368_v58 = vadd.s32 139, %v3282_v1  ;;  %v1382_v41 = vadd.s32 139, %v3360_v21 }
 0x1d1   : > { %v3792_v42 = vpop.permute.xlu2 %1141 }
 0x1d2   : > { %9003 = vst [vmem:[#allocation103_spill] sm:$0xff] %v3792_v42  ;;  %v9242_v42 = vld [vmem:[#allocation23_spill] sm:$0xff] }
 0x1d6   : > { %3061 = vset.pattern.permute.xlu1 %v3205_v48 }
 0x1d7   : > { %1403 = vperm.xlu1 %3061, %v1366_v61   ;;  %v3797_v15 = vpop.permute.xlu1 %960  ;;  %v1385_v61 = vadd.s32 139, %v3372_v24 }
 0x1d8   : > { %9004 = vst [vmem:[#allocation104_spill] sm:$0xff] %v3797_v15  ;;  %1442 = vperm.xlu0 %3060, %v1379_v34   ;;  %1406 = vperm.xlu2 %3059, %v1367_v44   ;;  %v1371_v44 = vadd.s32 139, %v3309_v8  ;;  %v1372_v34 = vadd.s32 139, %v3306_v7  ;;  %v3080_v15 = vld [vmem:[%s3279_s25 + $0x18] sm:$0xff] }
 0x1d9   : > { %v3799_v3 = vpop.permute.xlu0 %1144  ;;  %v3801_v63 = vpop.permute.xlu2 %1150 }
 0x1da   : > { %9005 = vst [vmem:[#allocation105_spill] sm:$0xff] %v3801_v63  ;;  %v3079_v63 = vld [vmem:[%s3279_s25 + $0x90] sm:$0xff] }
 0x1df   : > { %1409 = vperm.xlu1 %3061, %v1368_v58   ;;  %v3806_v18 = vpop.permute.xlu1 %969  ;;  %v1374_v58 = vadd.s32 139, %v3321_v11 }
 0x1e0   : > { %9006 = vst [vmem:[#allocation106_spill] sm:$0xff] %v3806_v18  ;;  %1451 = vperm.xlu0 %3060, %v1382_v41   ;;  %1412 = vperm.xlu2 %3059, %v1369_v2   ;;  %v1388_v41 = vadd.s32 139, %v3384_v27  ;;  %v1375_v2 = vadd.s32 139, %v3318_v10 }
 0x1e1   : > { %v3808_v5 = vpop.permute.xlu0 %1159  ;;  %v3810_v48 = vpop.permute.xlu2 %1156 }
 0x1e2   : > { %9007 = vst [vmem:[#allocation107_spill] sm:$0xff] %v3808_v5  ;;  %v1623_v5 = vadd.s32 145, %v3080_v15 }
 0x1e3   : > { %9008 = vst [vmem:[#allocation108_spill] sm:$0xff] %v3810_v48 }
 0x1e7   : > { %1418 = vperm.xlu1 %3061, %v1371_v44   ;;  %v3815_v1 = vpop.permute.xlu1 %978  ;;  %v1377_v44 = vadd.s32 139, %v3333_v14  ;;  %v1381_v14 = vadd.s32 139, %v3342_v16  ;;  %v3206_v16 = vmov 6  }
 0x1e8   : > { %9009 = vst [vmem:[#allocation109_spill] sm:$0xff] %v3815_v1  ;;  %1460 = vperm.xlu0 %3060, %v1385_v61   ;;  %1421 = vperm.xlu2 %3059, %v1372_v34   ;;  %v1391_v61 = vadd.s32 139, %v3396_v30  ;;  %v1378_v34 = vadd.s32 139, %v3330_v13  ;;  %v177_v1 = vlaneseq }
 0x1e9   : > { %v3817_v4 = vpop.permute.xlu0 %1168  ;;  %v3819_v21 = vpop.permute.xlu2 %1165 }
 0x1ea   : > { %9010 = vst [vmem:[#allocation110_spill] sm:$0xff] %v3819_v21  ;;  %v3905_v48 = vand.u32 127, %v177_v1 }
 0x1ec   : > { %vm486_vm0 = vcmp.eq.s32.totalorder %v3905_v48, %v3547_v37  ;;  %vm294_vm2 = vcmp.eq.s32.totalorder %v3905_v48, %v3459_v39  ;;  %vm492_vm3 = vcmp.eq.s32.totalorder %v3905_v48, %v3556_v38  ;;  %vm742_vm7 = vcmp.eq.s32.totalorder %v3905_v48, %v3637_v53 }
 0x1ed   : > { %vm3929_vm5 = vmor %vm294_vm2, %vm486_vm0  ;;  %vm300_vm8 = vcmp.eq.s32.totalorder %v3905_v48, %v3468_v47  ;;  %vm998_vm13 = vcmp.eq.s32.totalorder %v3905_v48, %v3727_v32  ;;  %vm1254_vm2 = vcmp.eq.s32.totalorder %v3905_v48, %v3817_v4 }
 0x1ee   : > { %vm3944_vm12 = vmor %vm300_vm8, %vm492_vm3 }
 0x1ef   : > { %1427 = vperm.xlu1 %3061, %v1374_v58   ;;  %v1380_v58 = vadd.s32 139, %v3345_v17  ;;  %vm806_vm15 = vmor %vm3929_vm5, %vm742_vm7  ;;  %vm306_vm5 = vcmp.eq.s32.totalorder %v3905_v48, %v3477_v59 }
 0x1f0   : > { %1469 = vperm.xlu0 %3060, %v1388_v41   ;;  %1430 = vperm.xlu2 %3059, %v1375_v2   ;;  %v3824_v8 = vpop.permute.xlu1 %1147  ;;  %v1394_v41 = vadd.s32 139, %v3406_v33  ;;  %vm1062_vm3 = vmor %vm806_vm15, %vm998_vm13  ;;  %vm748_vm15 = vcmp.eq.s32.totalorder %v3905_v48, %v3646_v57 }
 0x1f1   : > { %9011 = vst [vmem:[#allocation111_spill] sm:$0xff] %v3824_v8  ;;  %v3826_v7 = vpop.permute.xlu0 %1177  ;;  %v3828_v24 = vpop.permute.xlu2 %1174 }
 0x1f2   : > { %9012 = vst [vmem:[#allocation112_spill] sm:$0xff] %v3828_v24  ;;  %v1395_v24 = vadd.s32 139, %v3402_v31  ;;  %v3078_v31 = vld [vmem:[%s3279_s25 + $0x10] sm:$0xff] }
 0x1f3   : > { %v1622_v18 = vadd.s32 145, %v3078_v31  ;;  %v9033_v31 = vmov 0 }
 0x1f7   : > { %1436 = vperm.xlu1 %3061, %v1377_v44   ;;  %v1383_v44 = vadd.s32 139, %v3357_v20  ;;  %v1386_v20 = vadd.s32 139, %v3369_v23  ;;  %v1390_v23 = vadd.s32 139, %v3378_v25  ;;  %v3887_v25 = vld [vmem:[%s3279_s25 + $0x60] sm:$0xff] }
 0x1f8   : > { %1478 = vperm.xlu0 %3060, %v1391_v61   ;;  %1439 = vperm.xlu2 %3059, %v1378_v34   ;;  %v3833_v10 = vpop.permute.xlu1 %1153  ;;  %v1384_v61 = vadd.s32 139, %v3354_v19  ;;  %v3851_v34 = vld [vmem:[%s3279_s25 + $0x8] sm:$0xff]  ;;  %v1387_v19 = vadd.s32 139, %v3366_v22 }
 0x1f9   : > { %9013 = vst [vmem:[#allocation113_spill] sm:$0xff] %v3833_v10  ;;  %v3835_v11 = vpop.permute.xlu0 %1186  ;;  %v3837_v27 = vpop.permute.xlu2 %1183  ;;  %v1621_v17 = vadd.s32 145, %v3851_v34  ;;  %v1632_v10 = vadd.s32 145, %v3887_v25 }
 0x1fa   : > { %9014 = vst [vmem:[#allocation114_spill] sm:$0xff] %v3837_v27  ;;  %v3875_v27 = vld [vmem:[%s3279_s25 + $0x48] sm:$0xff] }
 0x1fb   : > { %v1629_v22 = vadd.s32 145, %v3875_v27 }
 0x1ff   : > { %1445 = vperm.xlu1 %3061, %v1380_v58  }
 0x200   : > { %1487 = vperm.xlu0 %3060, %v1394_v41   ;;  %1448 = vperm.xlu2 %3059, %v1381_v14   ;;  %v3842_v13 = vpop.permute.xlu1 %1162  ;;  %v3863_v14 = vld [vmem:[%s3279_s25 + $0x30] sm:$0xff] }
 0x201   : > { %9015 = vst [vmem:[#allocation115_spill] sm:$0xff] %v3842_v13  ;;  %v3844_v30 = vpop.permute.xlu0 %1195  ;;  %v3846_v2 = vpop.permute.xlu2 %1192  ;;  %v1626_v13 = vadd.s32 145, %v3863_v14 }
 0x207   : > { %1454 = vperm.xlu1 %3061, %v1383_v44  }
 0x208   : > { %3063 = vset.pattern.permute.xlu0 %v3206_v16  ;;  %1457 = vperm.xlu2 %3059, %v1384_v61   ;;  %v3854_v33 = vpop.permute.xlu1 %1171 }
 0x209   : > { %9016 = vst [vmem:[#allocation116_spill] sm:$0xff] %v3854_v33  ;;  %1656 = vperm.xlu0 %3063, %v1621_v17   ;;  %v3856_v58 = vpop.permute.xlu0 %1204  ;;  %v3858_v41 = vpop.permute.xlu2 %1201  ;;  %v1389_v33 = vadd.s32 139, %v3381_v26  ;;  %v1393_v26 = vadd.s32 139, %v3390_v28  ;;  %v3077_v28 = vld [vmem:[%s3279_s25] sm:$0xff] }
 0x20a   : > { %v1620_v21 = vadd.s32 145, %v3077_v28  ;;  %v3911_v28 = vadd.s32 128, %v3905_v48 }
 0x20c   : > { %vm487_vm1 = vcmp.eq.s32.totalorder %v3911_v28, %v3547_v37  ;;  %vm295_vm4 = vcmp.eq.s32.totalorder %v3911_v28, %v3459_v39  ;;  %vm493_vm6 = vcmp.eq.s32.totalorder %v3911_v28, %v3556_v38  ;;  %vm743_vm10 = vcmp.eq.s32.totalorder %v3911_v28, %v3637_v53  ;;  %v3081_v37 = vld [vmem:[%s3279_s25 + $0x20] sm:$0xff]  ;;  %v3082_v38 = vld [vmem:[%s3279_s25 + $0xa8] sm:$0xff]  ;;  %v9151_v39 = vld [vmem:[#allocation24_spill] sm:$0xff] }
 0x20d   : > { %vm551_vm9 = vmor %vm295_vm4, %vm487_vm1  ;;  %vm301_vm11 = vcmp.eq.s32.totalorder %v3911_v28, %v3468_v47  ;;  %v1641_v1 = vadd.s32 145, %v3082_v38  ;;  %vm999_vm0 = vcmp.eq.s32.totalorder %v3911_v28, %v3727_v32  ;;  %vm1255_vm4 = vcmp.eq.s32.totalorder %v3911_v28, %v3817_v4  ;;  %v3084_v4 = vld [vmem:[%s3279_s25 + $0x38] sm:$0xff] }
 0x20e   : > { %vm3952_vm14 = vmor %vm301_vm11, %vm493_vm6 }
 0x20f   : > { %1463 = vperm.xlu1 %3061, %v1386_v20   ;;  %vm807_vm1 = vmor %vm551_vm9, %vm743_vm10  ;;  %vm502_vm9 = vcmp.eq.s32.totalorder %v3905_v48, %v3549_v46  ;;  %vm498_vm10 = vcmp.eq.s32.totalorder %v3905_v48, %v3565_v51 }
 0x210   : > { %1466 = vperm.xlu2 %3059, %v1387_v19   ;;  %v3866_v44 = vpop.permute.xlu1 %1180  ;;  %vm1063_vm8 = vmor %vm807_vm1, %vm999_vm0 }
 0x211   : > { %9017 = vst [vmem:[#allocation117_spill] sm:$0xff] %v3866_v44  ;;  %1671 = vperm.xlu0 %3063, %v1626_v13   ;;  %v3868_v61 = vpop.permute.xlu0 %1213  ;;  %v3870_v17 = vpop.permute.xlu2 %1210  ;;  %v1392_v44 = vadd.s32 139, %v3393_v29  ;;  %v3076_v29 = vld [vmem:[%s3279_s25 + $0x78] sm:$0xff]  ;;  %vm1318_vm11 = vmor %vm1062_vm3, %vm1254_vm2  ;;  %vm503_vm2 = vcmp.eq.s32.totalorder %v3911_v28, %v3549_v46 }
 0x212   : > { %v1635_v8 = vadd.s32 145, %v3076_v29  ;;  %v1638_v29 = vadd.s32 145, %v3079_v63  ;;  %vm1319_vm0 = vmor %vm1063_vm8, %vm1255_vm4  ;;  %vm9045_vm8 = vcmp.eq.s32.totalorder %v3911_v28, %v3477_v59  ;;  %v9051_v59 = vmov 0 }
 0x213   : > { %vm4004_vm4 = vmor %vm306_vm5, %vm498_vm10  ;;  %vm311_vm5 = vcmp.eq.s32.totalorder %v3911_v28, %v3446_v62  ;;  %vm312_vm10 = vcmp.eq.s32.totalorder %v3905_v48, %v3486_v40 }
 0x214   : > { %vm812_vm3 = vmor %vm3944_vm12, %vm748_vm15  ;;  %vm9053_vm12 = vcmp.eq.s32.totalorder %v3911_v28, %v3646_v57  ;;  %v9061_v57 = vmov 0 }
 0x215   : > { %vm813_vm15 = vmor %vm3952_vm14, %vm9053_vm12 }
 0x217   : > { %1472 = vperm.xlu1 %3061, %v1389_v33  }
 0x218   : > { %1475 = vperm.xlu2 %3059, %v1390_v23   ;;  %v3878_v20 = vpop.permute.xlu1 %1189 }
 0x219   : > { %1680 = vperm.xlu0 %3063, %v1629_v22   ;;  %v3880_v13 = vpop.permute.xlu0 %1222  ;;  %v3882_v19 = vpop.permute.xlu2 %1219 }
 0x21f   : > { %1481 = vperm.xlu1 %3061, %v1392_v44  }
 0x220   : > { %1484 = vperm.xlu2 %3059, %v1393_v26   ;;  %v3890_v33 = vpop.permute.xlu1 %1198 }
 0x221   : > { %1689 = vperm.xlu0 %3063, %v1632_v10   ;;  %v3892_v23 = vpop.permute.xlu0 %1231  ;;  %v3894_v22 = vpop.permute.xlu2 %1228 }
 0x222   : > { %9018 = vst [vmem:[#allocation118_spill] sm:$0xff] %v3894_v22  ;;  %v9391_v22 = vmov 0 }
 0x227   : > { %1490 = vperm.xlu1 %3061, %v1395_v24  }
 0x228   : > { %3062 = vset.pattern.permute.xlu2 %v3206_v16  ;;  %v3899_v44 = vpop.permute.xlu1 %1207 }
 0x229   : > { %9019 = vst [vmem:[#allocation119_spill] sm:$0xff] %v3899_v44  ;;  %1698 = vperm.xlu0 %3063, %v1635_v8   ;;  %1653 = vperm.xlu2 %3062, %v1620_v21   ;;  %v3083_v8 = vld [vmem:[%s3279_s25 + $0x28] sm:$0xff]  ;;  %v9239_v44 = vmov 0 }
 0x22a   : > { %v3901_v10 = vpop.permute.xlu0 %1400  ;;  %v3903_v26 = vpop.permute.xlu2 %1397  ;;  %v1625_v24 = vadd.s32 145, %v3083_v8 }
 0x22b   : > { %9020 = vst [vmem:[#allocation120_spill] sm:$0xff] %v3901_v10 }
 0x22c   : > { %9021 = vst [vmem:[#allocation121_spill] sm:$0xff] %v3903_v26  ;;  %v9237_v26 = vld [vmem:[#allocation96_spill] sm:$0xff] }
 0x22f   : > { %3064 = vset.pattern.permute.xlu1 %v3206_v16  ;;  %v9068_v16 = vld [vmem:[#allocation68_spill] sm:$0xff] }
 0x230   : > { %1659 = vperm.xlu1 %3064, %v1622_v18   ;;  %v3915_v21 = vpop.permute.xlu1 %1216  ;;  %v9185_v18 = vmov 0 }
 0x231   : > { %9022 = vst [vmem:[#allocation122_spill] sm:$0xff] %v3915_v21  ;;  %1707 = vperm.xlu0 %3063, %v1638_v29   ;;  %1662 = vperm.xlu2 %3062, %v1623_v5   ;;  %v1624_v5 = vadd.s32 145, %v3081_v37  ;;  %v1627_v29 = vadd.s32 145, %v3084_v4  ;;  %v9038_v37 = vmov 0  ;;  %v9069_v4 = vmov 0 }
 0x232   : > { %v3923_v15 = vpop.permute.xlu0 %1415  ;;  %v3925_v63 = vpop.permute.xlu2 %1406 }
 0x233   : > { %9023 = vst [vmem:[#allocation123_spill] sm:$0xff] %v3923_v15 }
 0x234   : > { %9024 = vst [vmem:[#allocation124_spill] sm:$0xff] %v3925_v63  ;;  %v9173_v63 = vmov 0 }
 0x238   : > { %1665 = vperm.xlu1 %3064, %v1624_v5   ;;  %v3964_v47 = vpop.permute.xlu1 %1225  ;;  %v3085_v5 = vld [vmem:[%s3279_s25 + $0xc0] sm:$0xff] }
 0x239   : > { %9031 = vst [vmem:[#allocation125_spill] sm:$0xff] %v3964_v47  ;;  %1716 = vperm.xlu0 %3063, %v1641_v1   ;;  %1668 = vperm.xlu2 %3062, %v1625_v24   ;;  %v1644_v38 = vadd.s32 145, %v3085_v5  ;;  %v3086_v1 = vld [vmem:[%s3279_s25 + $0x40] sm:$0xff]  ;;  %v9095_v24 = vld [vmem:[#allocation43_spill] sm:$0xff]  ;;  %v9138_v47 = vld [vmem:[#allocation22_spill] sm:$0xff] }
 0x23a   : > { %v1425_v53 = vpop.permute.xlu0 %1424  ;;  %v3976_v32 = vpop.permute.xlu2 %1412  ;;  %v1628_v8 = vadd.s32 145, %v3086_v1 }
 0x23b   : > { %9032 = vst [vmem:[#allocation126_spill] sm:$0xff] %v3976_v32  ;;  %vm1510_vm1 = vcmp.eq.s32.totalorder %v3905_v48, %v1425_v53  ;;  %vm1511_vm7 = vcmp.eq.s32.totalorder %v3911_v28, %v1425_v53  ;;  %v9100_v53 = vmov 0 }
 0x23c   : > { %vm3993_vm6 = vmor %vm1318_vm11, %vm1510_vm1  ;;  %vm9041_vm11 = vcmp.eq.s32.totalorder %v3905_v48, %v3446_v62  ;;  %v9212_v62 = vmov 0 }
 0x23d   : > { %v9034_v31 = vsel %vm3993_vm6, 4294967295, %v9033_v31  ;;  %vm4012_vm1 = vmor %vm1319_vm0, %vm1511_vm7  ;;  %vm9044_vm0 = vcmp.eq.s32.totalorder %v3911_v28, %v3565_v51  ;;  %vm1260_vm6 = vcmp.eq.s32.totalorder %v3905_v48, %v3826_v7 }
 0x23e   : > { %9035 = vst [vmem:[#allocation127_spill] sm:$0xff] %v9034_v31  ;;  %v9039_v37 = vsel %vm4012_vm1, 4294967295, %v9038_v37  ;;  %vm4028_vm7 = vmor %vm9041_vm11, %vm502_vm9  ;;  %vm1005_vm9 = vcmp.eq.s32.totalorder %v3911_v28, %v3736_v49  ;;  %vm313_vm11 = vcmp.eq.s32.totalorder %v3911_v28, %v3486_v40  ;;  %v9117_v40 = vld [vmem:[#allocation19_spill] sm:$0xff] }
 0x23f   : > { %9040 = vst [vmem:[#allocation128_spill] sm:$0xff] %v9039_v37  ;;  %vm4038_vm13 = vmor %vm9045_vm8, %vm9044_vm0  ;;  %vm9050_vm8 = vcmp.eq.s32.totalorder %v3905_v48, %v3574_v45  ;;  %v3092_v31 = vld [vmem:[%s3279_s25 + $0x70] sm:$0xff] }
 0x240   : > { %vm4054_vm1 = vmor %vm311_vm5, %vm503_vm2  ;;  %vm9054_vm2 = vcmp.eq.s32.totalorder %v3911_v28, %v3574_v45  ;;  %1674 = vperm.xlu1 %3064, %v1627_v29   ;;  %v4084_v46 = vpop.permute.xlu1 %1234  ;;  %v3088_v29 = vld [vmem:[%s3279_s25 + $0xd8] sm:$0xff]  ;;  %v1634_v32 = vadd.s32 145, %v3092_v31  ;;  %v9276_v31 = vmov 0 }
 0x241   : > { %vm4061_vm0 = vmor %vm312_vm10, %vm9050_vm8  ;;  %vm9057_vm10 = vcmp.eq.s32.totalorder %v3905_v48, %v3736_v49  ;;  %9058 = vst [vmem:[#allocation129_spill] sm:$0xff] %v4084_v46  ;;  %1725 = vperm.xlu0 %3063, %v1644_v38   ;;  %1677 = vperm.xlu2 %3062, %v1628_v8   ;;  %v3087_v49 = vld [vmem:[%s3279_s25 + $0x50] sm:$0xff]  ;;  %v1647_v5 = vadd.s32 145, %v3088_v29  ;;  %v3089_v38 = vld [vmem:[%s3279_s25 + $0x58] sm:$0xff]  ;;  %v9090_v29 = vmov 0  ;;  %v9135_v46 = vmov 0 }
 0x242   : > { %v9052_v59 = vsel %vm4061_vm0, 4294967295, %v9051_v59  ;;  %vm4075_vm5 = vmor %vm313_vm11, %vm9054_vm2  ;;  %v1434_v51 = vpop.permute.xlu0 %1433  ;;  %v4101_v45 = vpop.permute.xlu2 %1421  ;;  %v1631_v1 = vadd.s32 145, %v3089_v38  ;;  %v9164_v8 = vld [vmem:[#allocation21_spill] sm:$0xff]  ;;  %v9199_v38 = vld [vmem:[#allocation46_spill] sm:$0xff] }
 0x243   : > { %vm1068_vm8 = vmor %vm812_vm3, %vm9057_vm10  ;;  %9059 = vst [vmem:[#allocation130_spill] sm:$0xff] %v4101_v45  ;;  %vm9060_vm10 = vcmp.eq.s32.totalorder %v3911_v28, %v3826_v7  ;;  %vm1516_vm3 = vcmp.eq.s32.totalorder %v3905_v48, %v1434_v51  ;;  %vm1517_vm12 = vcmp.eq.s32.totalorder %v3911_v28, %v1434_v51  ;;  %v1630_v7 = vadd.s32 145, %v3087_v49  ;;  %v9085_v49 = vld [vmem:[#allocation26_spill] sm:$0xff] }
 0x244   : > { %vm1069_vm11 = vmor %vm813_vm15, %vm1005_vm9  ;;  %v9078_v51 = vmov 0 }
 0x245   : > { %vm1324_vm14 = vmor %vm1068_vm8, %vm1260_vm6  ;;  %vm9073_vm6 = vcmp.eq.s32.totalorder %v3905_v48, %v3455_v36  ;;  %vm324_vm8 = vcmp.eq.s32.totalorder %v3905_v48, %v9085_v49 }
 0x246   : > { %vm1325_vm2 = vmor %vm1069_vm11, %vm9060_vm10  ;;  %vm9064_vm11 = vcmp.eq.s32.totalorder %v3905_v48, %v3583_v0  ;;  %vm9065_vm10 = vcmp.eq.s32.totalorder %v3905_v48, %v3493_v60 }
 0x247   : > { %vm4118_vm0 = vmor %vm1324_vm14, %vm1516_vm3 }
 0x248   : > { %v9062_v57 = vsel %vm4118_vm0, 4294967295, %v9061_v57  ;;  %vm4129_vm15 = vmor %vm9065_vm10, %vm9064_vm11  ;;  %vm317_vm11 = vcmp.eq.s32.totalorder %v3911_v28, %v3455_v36  ;;  %vm9072_vm10 = vcmp.eq.s32.totalorder %v3905_v48, %v3558_v50  ;;  %vm9086_vm0 = vcmp.eq.s32.totalorder %v3911_v28, %v3558_v50  ;;  %1683 = vperm.xlu1 %3064, %v1630_v7   ;;  %v9119_v36 = vld [vmem:[#allocation44_spill] sm:$0xff]  ;;  %v9128_v50 = vld [vmem:[#allocation13_spill] sm:$0xff] }
 0x249   : > { %9063 = vst [vmem:[#allocation131_spill] sm:$0xff] %v9062_v57  ;;  %vm4137_vm3 = vmor %vm1325_vm2, %vm1517_vm12  ;;  %vm9076_vm12 = vcmp.eq.s32.totalorder %v3911_v28, %v3583_v0  ;;  %vm9077_vm2 = vcmp.eq.s32.totalorder %v3911_v28, %v3493_v60  ;;  %v9083_v60 = vld [vmem:[#allocation93_spill] sm:$0xff]  ;;  %1734 = vperm.xlu0 %3063, %v1647_v5   ;;  %1686 = vperm.xlu2 %3062, %v1631_v1   ;;  %v4275_v7 = vpop.permute.xlu1 %1403  ;;  %v9134_v57 = vld [vmem:[#allocation94_spill] sm:$0xff] }
 0x24a   : > { %v9070_v4 = vsel %vm4137_vm3, 4294967295, %v9069_v4  ;;  %vm4151_vm9 = vmor %vm9073_vm6, %vm9072_vm10  ;;  %vm9080_vm3 = vcmp.eq.s32.totalorder %v3905_v48, %v3655_v35  ;;  %v9084_v0 = vld [vmem:[#allocation17_spill] sm:$0xff]  ;;  %vm9096_vm10 = vcmp.eq.s32.totalorder %v3905_v48, %v3592_v43  ;;  %9116 = vst [vmem:[#allocation93_spill] sm:$0xff] %v4275_v7  ;;  %v1443_v5 = vpop.permute.xlu0 %1442  ;;  %v4292_v1 = vpop.permute.xlu2 %1430  ;;  %v9130_v7 = vld [vmem:[#allocation66_spill] sm:$0xff] }
 0x24b   : > { %9071 = vst [vmem:[#allocation68_spill] sm:$0xff] %v9070_v4  ;;  %vm4161_vm14 = vmor %vm9077_vm2, %vm9076_vm12  ;;  %vm9092_vm2 = vcmp.eq.s32.totalorder %v3911_v28, %v3655_v35  ;;  %v3090_v4 = vld [vmem:[%s3279_s25 + $0x68] sm:$0xff]  ;;  %v9196_v35 = vmov 0 }
 0x24c   : > { %v9079_v51 = vsel %vm4161_vm14, 4294967295, %v9078_v51  ;;  %vm4172_vm6 = vmor %vm4004_vm4, %vm9080_vm3  ;;  %vm9089_vm4 = vcmp.eq.s32.totalorder %v3905_v48, %v3648_v52  ;;  %9121 = vst [vmem:[#allocation17_spill] sm:$0xff] %v4292_v1  ;;  %v9129_v1 = vld [vmem:[#allocation51_spill] sm:$0xff]  ;;  %v1633_v45 = vadd.s32 145, %v3090_v4 }
 0x24d   : > { %vm4187_vm14 = vmor %vm317_vm11, %vm9086_vm0  ;;  %vm9102_vm11 = vcmp.eq.s32.totalorder %v3905_v48, %v9068_v16 }
 0x24e   : > { %vm4196_vm3 = vmor %vm4028_vm7, %vm9089_vm4  ;;  %vm325_vm7 = vcmp.eq.s32.totalorder %v3911_v28, %v9085_v49  ;;  %vm9103_vm4 = vnez %v9052_v59  ;;  %v9111_v59 = vmov 0  ;;  %v9124_v49 = vmov 0 }
 0x24f   : > { %v9091_v29 = vsel %vm4196_vm3, 4294967295, %v9090_v29  ;;  %vm4205_vm12 = vmor %vm4038_vm13, %vm9092_vm2  ;;  %vm9099_vm13 = vcmp.eq.s32.totalorder %v3911_v28, %v3648_v52  ;;  %v9106_v52 = vld [vmem:[#allocation20_spill] sm:$0xff] }
 0x250   : > { %vm4220_vm3 = vmor %vm324_vm8, %vm9096_vm10  ;;  %vm9113_vm10 = vcmp.eq.s32.totalorder %v3905_v48, %v9083_v60  ;;  %1692 = vperm.xlu1 %3064, %v1633_v45   ;;  %v9187_v45 = vld [vmem:[#allocation69_spill] sm:$0xff] }
 0x251   : > { %vm4229_vm2 = vmor %vm4054_vm1, %vm9099_vm13  ;;  %vm9107_vm13 = vcmp.eq.s32.totalorder %v3911_v28, %v3592_v43  ;;  %v9158_v43 = vmov 0  ;;  %1695 = vperm.xlu2 %3062, %v1634_v32   ;;  %v9203_v32 = vmov 0 }
 0x252   : > { %v9101_v53 = vsel %vm4229_vm2, 4294967295, %v9100_v53  ;;  %vm4238_vm0 = vmor %vm9103_vm4, %vm9102_vm11  ;;  %vm9110_vm11 = vcmp.eq.s32.totalorder %v3911_v28, %v9068_v16  ;;  %v9118_v16 = vld [vmem:[#allocation29_spill] sm:$0xff]  ;;  %v4549_v21 = vpop.permute.xlu2 %1439 }
 0x253   : > { %vm4251_vm2 = vmor %vm325_vm7, %vm9107_vm13  ;;  %vm9120_vm7 = vcmp.eq.s32.totalorder %v3911_v28, %v9083_v60  ;;  %vm9123_vm13 = vcmp.eq.s32.totalorder %v3905_v48, %v9084_v0  ;;  %v9126_v60 = vld [vmem:[#allocation71_spill] sm:$0xff]  ;;  %9209 = vst [vmem:[#allocation19_spill] sm:$0xff] %v4549_v21  ;;  %v9226_v21 = vld [vmem:[#allocation70_spill] sm:$0xff] }
 0x254   : > { %vm4260_vm4 = vmor %vm4075_vm5, %vm9110_vm11  ;;  %vm9122_vm11 = vcmp.eq.s32.totalorder %v3905_v48, %v9095_v24 }
 0x255   : > { %v9112_v59 = vsel %vm4260_vm4, 4294967295, %v9111_v59  ;;  %vm4269_vm1 = vmor %vm4172_vm6, %vm9113_vm10  ;;  %vm1522_vm4 = vcmp.eq.s32.totalorder %v3905_v48, %v1443_v5 }
 0x256   : > { %vm1075_vm8 = vmor %vm4205_vm12, %vm9120_vm7  ;;  %vm9127_vm7 = vcmp.eq.s32.totalorder %v3905_v48, %v3835_v11 }
 0x257   : > { %vm4302_vm10 = vmor %vm9123_vm13, %vm9122_vm11  ;;  %vm9140_vm11 = vcmp.eq.s32.totalorder %v3911_v28, %v9084_v0  ;;  %v9148_v0 = vmov 0 }
 0x258   : > { %v9125_v49 = vsel %vm4302_vm10, 4294967295, %v9124_v49  ;;  %vm1330_vm5 = vmor %vm4269_vm1, %vm9127_vm7  ;;  %vm9131_vm1 = vcmp.eq.s32.totalorder %v3911_v28, %v3835_v11  ;;  %v3091_v11 = vld [vmem:[%s3279_s25 + $0xf0] sm:$0xff] }
 0x259   : > { %vm4328_vm7 = vmor %vm1075_vm8, %vm9131_vm1  ;;  %v1650_v37 = vadd.s32 145, %v3091_v11  ;;  %vm9139_vm1 = vcmp.eq.s32.totalorder %v3911_v28, %v9095_v24  ;;  %v9146_v24 = vld [vmem:[#allocation74_spill] sm:$0xff]  ;;  %v9152_v11 = vld [vmem:[#allocation32_spill] sm:$0xff]  ;;  %vm9153_vm8 = vcmp.eq.s32.totalorder %v3905_v48, %v9119_v36 }
 0x25a   : > { %vm4339_vm13 = vmor %vm1330_vm5, %vm1522_vm4  ;;  %vm9143_vm5 = vcmp.eq.s32.totalorder %v3905_v48, %v9126_v60  ;;  %vm9147_vm4 = vcmp.eq.s32.totalorder %v3911_v28, %v1443_v5  ;;  %v9283_v5 = vmov 0 }
 0x25b   : > { %v9136_v46 = vsel %vm4339_vm13, 4294967295, %v9135_v46  ;;  %vm4353_vm6 = vmor %vm9140_vm11, %vm9139_vm1  ;;  %vm9160_vm1 = vcmp.eq.s32.totalorder %v3911_v28, %v9126_v60  ;;  %vm9161_vm11 = vnez %v9079_v51  ;;  %v9170_v60 = vld [vmem:[#allocation45_spill] sm:$0xff]  ;;  %vm9172_vm13 = vcmp.eq.s32.totalorder %v3905_v48, %v9118_v16  ;;  %1743 = vperm.xlu0 %3063, %v1650_v37  }
 0x25c   : > { %9137 = vst [vmem:[#allocation26_spill] sm:$0xff] %v9136_v46  ;;  %vm4364_vm12 = vmor %vm4129_vm15, %vm9143_vm5  ;;  %vm9157_vm15 = vcmp.eq.s32.totalorder %v3905_v48, %v9130_v7  ;;  %v9165_v46 = vld [vmem:[#allocation35_spill] sm:$0xff]  ;;  %v9236_v37 = vld [vmem:[#allocation77_spill] sm:$0xff]  ;;  %v8843_v51 = vmov 7  }
 0x25d   : > { %vm4378_vm10 = vmor %vm4328_vm7, %vm9147_vm4  ;;  %vm9154_vm7 = vcmp.eq.s32.totalorder %v3905_v48, %v9106_v52 }
 0x25e   : > { %v9149_v0 = vsel %vm4378_vm10, 4294967295, %v9148_v0  ;;  %vm4396_vm4 = vmor %vm9154_vm7, %vm9153_vm8  ;;  %vm9167_vm8 = vcmp.eq.s32.totalorder %v3911_v28, %v9106_v52  ;;  %vm9175_vm7 = vcmp.eq.s32.totalorder %v3911_v28, %v9130_v7  ;;  %v9176_v52 = vmov 0  ;;  %v9182_v7 = vld [vmem:[#allocation10_spill] sm:$0xff] }
 0x25f   : > { %9150 = vst [vmem:[#allocation43_spill] sm:$0xff] %v9149_v0  ;;  %vm4405_vm5 = vmor %vm4151_vm9, %vm9157_vm15  ;;  %vm9171_vm15 = vcmp.eq.s32.totalorder %v3905_v48, %v9129_v1  ;;  %vm9178_vm9 = vcmp.eq.s32.totalorder %v3905_v48, %v9134_v57  ;;  %v9288_v0 = vmov 0 }
 0x260   : > { %v9159_v43 = vsel %vm4405_vm5, 4294967295, %v9158_v43  ;;  %vm4414_vm10 = vmor %vm9161_vm11, %vm9160_vm1  ;;  %vm9166_vm1 = vcmp.eq.s32.totalorder %v3911_v28, %v9119_v36 }
 0x261   : > { %vm4436_vm5 = vmor %vm9167_vm8, %vm9166_vm1  ;;  %vm9183_vm1 = vcmp.eq.s32.totalorder %v3911_v28, %v9129_v1  ;;  %v4519_v1 = vpop.permute.xlu1 %1409 }
 0x262   : > { %vm4448_vm11 = vmor %vm9172_vm13, %vm9171_vm15  ;;  %vm9179_vm13 = vnez %v9091_v29  ;;  %v9189_v29 = vmov 0  ;;  %9198 = vst [vmem:[#allocation20_spill] sm:$0xff] %v4519_v1  ;;  %v1452_v1 = vpop.permute.xlu0 %1451 }
 0x263   : > { %v9174_v63 = vsel %vm4448_vm11, 4294967295, %v9173_v63  ;;  %vm4457_vm8 = vmor %vm4187_vm14, %vm9175_vm7  ;;  %vm9188_vm11 = vcmp.eq.s32.totalorder %v3905_v48, %v9146_v24  ;;  %vm9191_vm7 = vcmp.eq.s32.totalorder %v3905_v48, %v3754_v54  ;;  %3066 = vset.pattern.permute.xlu0 %v8843_v51  ;;  %v1449_v51 = vpop.permute.xlu2 %1448 }
 0x264   : > { %v9177_v52 = vsel %vm4457_vm8, 4294967295, %v9176_v52  ;;  %vm4468_vm15 = vmor %vm9179_vm13, %vm9178_vm9  ;;  %vm9184_vm8 = vcmp.eq.s32.totalorder %v3911_v28, %v9118_v16  ;;  %vm9194_vm13 = vcmp.eq.s32.totalorder %v3911_v28, %v9134_v57  ;;  %v9200_v57 = vld [vmem:[#allocation47_spill] sm:$0xff]  ;;  %v9224_v16 = vmov 0 }
 0x265   : > { %vm4484_vm9 = vmor %vm9184_vm8, %vm9183_vm1  ;;  %vm9206_vm1 = vnez %v9112_v59  ;;  %v9217_v59 = vld [vmem:[#allocation15_spill] sm:$0xff] }
 0x266   : > { %v9186_v18 = vsel %vm4484_vm9, 4294967295, %v9185_v18  ;;  %vm4495_vm14 = vmor %vm4220_vm3, %vm9188_vm11  ;;  %vm9195_vm3 = vnez %v9101_v53  ;;  %v9201_v53 = vld [vmem:[#allocation54_spill] sm:$0xff] }
 0x267   : > { %v9190_v29 = vsel %vm4495_vm14, 4294967295, %v9189_v29  ;;  %vm4504_vm8 = vmor %vm4238_vm0, %vm9191_vm7  ;;  %vm9205_vm0 = vcmp.eq.s32.totalorder %v3911_v28, %v3754_v54  ;;  %vm9210_vm14 = vcmp.eq.s32.totalorder %v3905_v48, %v9170_v60  ;;  %v9249_v54 = vmov 0 }
 0x268   : > { %vm4515_vm11 = vmor %vm9195_vm3, %vm9194_vm13  ;;  %vm9202_vm3 = vcmp.eq.s32.totalorder %v3911_v28, %v9146_v24  ;;  %vm9214_vm13 = vcmp.eq.s32.totalorder %v3905_v48, %v3844_v30  ;;  %v9220_v24 = vmov 0 }
 0x269   : > { %v9197_v35 = vsel %vm4515_vm11, 4294967295, %v9196_v35  ;;  %vm4536_vm11 = vmor %vm4251_vm2, %vm9202_vm3  ;;  %vm9211_vm2 = vcmp.eq.s32.totalorder %v3905_v48, %v9117_v40  ;;  %v4829_v36 = vpop.permute.xlu1 %1418 }
 0x26a   : > { %v9204_v32 = vsel %vm4536_vm11, 4294967295, %v9203_v32  ;;  %vm4545_vm7 = vmor %vm9206_vm1, %vm9205_vm0  ;;  %vm9218_vm0 = vcmp.eq.s32.totalorder %v3911_v28, %v9170_v60  ;;  %v4613_v60 = vld [vmem:[%s3279_s25 + $0x80] sm:$0xff]  ;;  %9305 = vst [vmem:[#allocation13_spill] sm:$0xff] %v4829_v36  ;;  %v1885_v36 = vadd.s32 151, %v3875_v27  ;;  %v9505_v27 = vmov 0 }
 0x26b   : > { %vm4557_vm3 = vmor %vm9211_vm2, %vm9210_vm14  ;;  %9231 = vst [vmem:[#allocation29_spill] sm:$0xff] %v4613_v60  ;;  %v1636_v15 = vadd.s32 145, %v4613_v60  ;;  %vm9233_vm14 = vcmp.eq.s32.totalorder %v3905_v48, %v9128_v50  ;;  %v4643_v60 = vld [vmem:[%s3279_s25 + $0x88] sm:$0xff] }
 0x26c   : > { %v9213_v62 = vsel %vm4557_vm3, 4294967295, %v9212_v62  ;;  %vm4570_vm11 = vmor %vm4504_vm8, %vm9214_vm13  ;;  %vm9219_vm3 = vcmp.eq.s32.totalorder %v3911_v28, %v9117_v40  ;;  %vm9222_vm8 = vcmp.eq.s32.totalorder %v3905_v48, %v9187_v45  ;;  %vm9223_vm13 = vnez %v9125_v49  ;;  %v9227_v40 = vld [vmem:[#allocation98_spill] sm:$0xff] }
 0x26d   : > { %vm4584_vm9 = vmor %vm9219_vm3, %vm9218_vm0  ;;  %vm9228_vm0 = vcmp.eq.s32.totalorder %v3911_v28, %v3844_v30  ;;  %v1637_v10 = vadd.s32 145, %v4643_v60  ;;  %1701 = vperm.xlu1 %3064, %v1636_v15   ;;  %v9291_v15 = vmov 0  ;;  %v9322_v49 = vmov 0 }
 0x26e   : > { %v9221_v24 = vsel %vm4584_vm9, 4294967295, %v9220_v24  ;;  %vm4593_vm2 = vmor %vm9223_vm13, %vm9222_vm8  ;;  %vm9232_vm13 = vcmp.eq.s32.totalorder %v3905_v48, %v9165_v46  ;;  %vm9238_vm8 = vcmp.eq.s32.totalorder %v3905_v48, %v1452_v1  ;;  %v1882_v30 = vadd.s32 151, %v3863_v14 }
 0x26f   : > { %v9225_v16 = vsel %vm4593_vm2, 4294967295, %v9224_v16  ;;  %vm4608_vm9 = vmor %vm4545_vm7, %vm9228_vm0  ;;  %vm9244_vm7 = vcmp.eq.s32.totalorder %v3911_v28, %v9128_v50  ;;  %v1877_v50 = vadd.s32 151, %v3851_v34  ;;  %v9261_v34 = vmov 0  ;;  %1704 = vperm.xlu2 %3062, %v1637_v10  }
 0x270   : > { %vm4624_vm1 = vmor %vm9233_vm14, %vm9232_vm13  ;;  %vm9243_vm13 = vcmp.eq.s32.totalorder %v3911_v28, %v9165_v46  ;;  %v9252_v46 = vmov 0  ;;  %vm9256_vm14 = vcmp.eq.s32.totalorder %v3905_v48, %v9138_v47  ;;  %v9312_v10 = vmov 0 }
 0x271   : > { %vm4638_vm2 = vmor %vm4570_vm11, %vm9238_vm8  ;;  %vm9247_vm11 = vcmp.eq.s32.totalorder %v3905_v48, %v9201_v53  ;;  %vm9248_vm8 = vcmp.eq.s32.totalorder %v3905_v48, %v9152_v11  ;;  %1912 = vperm.xlu0 %3066, %v1877_v50   ;;  %v9383_v14 = vmov 0  ;;  %v9388_v50 = vmov 0 }
 0x272   : > { %v9240_v44 = vsel %vm4638_vm2, 4294967295, %v9239_v44  ;;  %vm4654_vm0 = vmor %vm9244_vm7, %vm9243_vm13  ;;  %vm9251_vm7 = vcmp.eq.s32.totalorder %v3911_v28, %v1452_v1  ;;  %v9414_v1 = vld [vmem:[#allocation50_spill] sm:$0xff] }
 0x273   : > { %9241 = vst [vmem:[#allocation44_spill] sm:$0xff] %v9240_v44  ;;  %vm4664_vm3 = vmor %vm9248_vm8, %vm9247_vm11  ;;  %vm9255_vm8 = vcmp.eq.s32.totalorder %v3905_v48, %v9199_v38  ;;  %v9406_v44 = vmov 0 }
 0x274   : > { %v9250_v54 = vsel %vm4664_vm3, 4294967295, %v9249_v54  ;;  %vm4676_vm13 = vmor %vm4608_vm9, %vm9251_vm7  ;;  %vm9259_vm7 = vcmp.eq.s32.totalorder %v3911_v28, %v9201_v53  ;;  %vm9263_vm3 = vcmp.eq.s32.totalorder %v3911_v28, %v9187_v45  ;;  %v9270_v45 = vld [vmem:[#allocation38_spill] sm:$0xff]  ;;  %vm9271_vm9 = vcmp.eq.s32.totalorder %v3911_v28, %v9199_v38  ;;  %v9285_v38 = vld [vmem:[#allocation12_spill] sm:$0xff] }
 0x275   : > { %v9253_v46 = vsel %vm4676_vm13, 4294967295, %v9252_v46  ;;  %vm4689_vm2 = vmor %vm9256_vm14, %vm9255_vm8  ;;  %vm9260_vm13 = vcmp.eq.s32.totalorder %v3911_v28, %v9152_v11  ;;  %v9269_v11 = vld [vmem:[#allocation27_spill] sm:$0xff]  ;;  %v9273_v53 = vmov 0 }
 0x276   : > { %9254 = vst [vmem:[#allocation71_spill] sm:$0xff] %v9253_v46  ;;  %vm4701_vm11 = vmor %vm9260_vm13, %vm9259_vm7  ;;  %vm9266_vm7 = vcmp.eq.s32.totalorder %v3905_v48, %v9227_v40  ;;  %vm9272_vm13 = vcmp.eq.s32.totalorder %v3911_v28, %v9138_v47  ;;  %v9356_v47 = vmov 0 }
 0x277   : > { %v9262_v34 = vsel %vm4701_vm11, 4294967295, %v9261_v34  ;;  %vm4710_vm14 = vmor %vm4353_vm6, %vm9263_vm3  ;;  %vm9278_vm3 = vcmp.eq.s32.totalorder %v3911_v28, %v9227_v40  ;;  %v9296_v40 = vmov 0  ;;  %vm9301_vm6 = vcmp.eq.s32.totalorder %v3911_v28, %v9237_v26 }
 0x278   : > { %vm4725_vm11 = vmor %vm4364_vm12, %vm9266_vm7  ;;  %vm9275_vm12 = vcmp.eq.s32.totalorder %v3905_v48, %v9226_v21 }
 0x279   : > { %vm4739_vm8 = vmor %vm9272_vm13, %vm9271_vm9  ;;  %vm9287_vm13 = vcmp.eq.s32.totalorder %v3905_v48, %v9164_v8  ;;  %1927 = vperm.xlu0 %3066, %v1882_v30  }
 0x27a   : > { %v9274_v53 = vsel %vm4739_vm8, 4294967295, %v9273_v53  ;;  %vm4748_vm7 = vmor %vm4396_vm4, %vm9275_vm12  ;;  %vm9281_vm4 = vcmp.eq.s32.totalorder %v3905_v48, %v9237_v26  ;;  %vm9282_vm12 = vnez %v9159_v43  ;;  %v9293_v43 = vld [vmem:[#allocation72_spill] sm:$0xff]  ;;  %v9308_v26 = vmov 0 }
 0x27b   : > { %v9277_v31 = vsel %vm4748_vm7, 4294967295, %v9276_v31  ;;  %vm4759_vm9 = vmor %vm4414_vm10, %vm9278_vm3  ;;  %vm9286_vm3 = vcmp.eq.s32.totalorder %v3905_v48, %v9200_v57  ;;  %vm9294_vm10 = vcmp.eq.s32.totalorder %v3905_v48, %v9236_v37 }
 0x27c   : > { %vm4770_vm7 = vmor %vm9282_vm12, %vm9281_vm4  ;;  %vm9290_vm4 = vcmp.eq.s32.totalorder %v3911_v28, %v9226_v21  ;;  %v9399_v21 = vmov 0 }
 0x27d   : > { %v9284_v5 = vsel %vm4770_vm7, 4294967295, %v9283_v5  ;;  %vm4784_vm8 = vmor %vm9287_vm13, %vm9286_vm3  ;;  %vm9295_vm13 = vnez %v9174_v63  ;;  %v9303_v63 = vmov 0 }
 0x27e   : > { %v9289_v0 = vsel %vm4784_vm8, 4294967295, %v9288_v0  ;;  %vm4793_vm12 = vmor %vm4436_vm5, %vm9290_vm4  ;;  %vm9298_vm8 = vcmp.eq.s32.totalorder %v3905_v48, %v3846_v2 }
 0x27f   : > { %v9292_v15 = vsel %vm4793_vm12, 4294967295, %v9291_v15  ;;  %vm4804_vm3 = vmor %vm9295_vm13, %vm9294_vm10  ;;  %vm9302_vm10 = vnez %v9177_v52  ;;  %v9314_v52 = vld [vmem:[#allocation48_spill] sm:$0xff] }
 0x280   : > { %v9297_v40 = vsel %vm4804_vm3, 4294967295, %v9296_v40  ;;  %vm4813_vm5 = vmor %vm4468_vm15, %vm9298_vm8  ;;  %vm9306_vm15 = vcmp.eq.s32.totalorder %v3905_v48, %v9151_v39  ;;  %vm9307_vm8 = vcmp.eq.s32.totalorder %v3905_v48, %v9182_v7  ;;  %vm9311_vm3 = vcmp.eq.s32.totalorder %v3911_v28, %v9164_v8 }
 0x281   : > { %vm4824_vm13 = vmor %vm9302_vm10, %vm9301_vm6  ;;  %vm9310_vm10 = vcmp.eq.s32.totalorder %v3911_v28, %v9200_v57  ;;  %vm9315_vm6 = vcmp.eq.s32.totalorder %v3911_v28, %v9236_v37  ;;  %v9317_v8 = vmov 0  ;;  %v9319_v57 = vld [vmem:[#allocation99_spill] sm:$0xff]  ;;  %v1461_v37 = vpop.permute.xlu0 %1460  ;;  %1936 = vperm.xlu0 %3066, %v1885_v36  }
 0x282   : > { %v9304_v63 = vsel %vm4824_vm13, 4294967295, %v9303_v63  ;;  %vm4837_vm4 = vmor %vm9307_vm8, %vm9306_vm15  ;;  %vm9321_vm15 = vnez %v9197_v35  ;;  %vm9324_vm8 = vcmp.eq.s32.totalorder %v3905_v48, %v3772_v55  ;;  %v9332_v35 = vld [vmem:[#allocation57_spill] sm:$0xff] }
 0x283   : > { %v9309_v26 = vsel %vm4837_vm4, 4294967295, %v9308_v26  ;;  %vm4849_vm12 = vmor %vm9311_vm3, %vm9310_vm10  ;;  %vm9316_vm4 = vnez %v9186_v18  ;;  %vm9320_vm10 = vcmp.eq.s32.totalorder %v3911_v28, %v3846_v2  ;;  %v9326_v18 = vmov 0 }
 0x284   : > { %v9313_v10 = vsel %vm4849_vm12, 4294967295, %v9312_v10  ;;  %vm4864_vm7 = vmor %vm9316_vm4, %vm9315_vm6  ;;  %vm9325_vm4 = vnez %v9190_v29  ;;  %vm9328_vm3 = vcmp.eq.s32.totalorder %v3911_v28, %v9151_v39  ;;  %v9330_v2 = vmov 0  ;;  %v9344_v29 = vld [vmem:[#allocation73_spill] sm:$0xff] }
 0x285   : > { %v9318_v8 = vsel %vm4864_vm7, 4294967295, %v9317_v8  ;;  %vm4875_vm13 = vmor %vm9321_vm15, %vm9320_vm10  ;;  %vm9329_vm15 = vcmp.eq.s32.totalorder %v3911_v28, %v9182_v7  ;;  %vm9333_vm7 = vcmp.eq.s32.totalorder %v3905_v48, %v3856_v58  ;;  %vm9341_vm12 = vnez %v9213_v62  ;;  %v4948_v62 = vld [vmem:[%s3279_s25 + $0x98] sm:$0xff] }
 0x286   : > { %v9323_v49 = vsel %vm4875_vm13, 4294967295, %v9322_v49  ;;  %vm4884_vm6 = vmor %vm9325_vm4, %vm9324_vm8  ;;  %vm9346_vm8 = vcmp.eq.s32.totalorder %v3911_v28, %v3856_v58  ;;  %9349 = vst [vmem:[#allocation51_spill] sm:$0xff] %v4948_v62  ;;  %v1639_v4 = vadd.s32 145, %v4948_v62  ;;  %v9352_v58 = vmov 0  ;;  %v9366_v62 = vld [vmem:[#allocation25_spill] sm:$0xff]  ;;  %v3098_v7 = vld [vmem:[%s3279_s25 + $0xb8] sm:$0xff] }
 0x287   : > { %v9327_v18 = vsel %vm4884_vm6, 4294967295, %v9326_v18  ;;  %vm4894_vm10 = vmor %vm9329_vm15, %vm9328_vm3  ;;  %vm9336_vm3 = vcmp.eq.s32.totalorder %v3911_v28, %v3772_v55  ;;  %vm9337_vm15 = vnez %v9204_v32  ;;  %v9342_v55 = vmov 0  ;;  %v9345_v32 = vld [vmem:[#allocation80_spill] sm:$0xff] }
 0x288   : > { %v9331_v2 = vsel %vm4894_vm10, 4294967295, %v9330_v2  ;;  %vm4907_vm6 = vmor %vm4725_vm11, %vm9333_vm7  ;;  %vm9340_vm7 = vcmp.eq.s32.totalorder %v3905_v48, %v9293_v43  ;;  %vm9379_vm4 = vcmp.eq.s32.totalorder %v3905_v48, %v9242_v42  ;;  %1710 = vperm.xlu1 %3064, %v1639_v4   ;;  %v9440_v4 = vmov 0 }
 0x289   : > { %vm4916_vm10 = vmor %vm9337_vm15, %vm9336_vm3  ;;  %vm9351_vm3 = vcmp.eq.s32.totalorder %v3905_v48, %v9217_v59  ;;  %v1643_v30 = vadd.s32 145, %v3098_v7  ;;  %v9515_v39 = vmov 0 }
 0x28a   : > { %vm4929_vm13 = vmor %vm9341_vm12, %vm9340_vm7  ;;  %vm9350_vm7 = vcmp.eq.s32.totalorder %v3905_v48, %v9270_v45 }
 0x28b   : > { %v9343_v55 = vsel %vm4929_vm13, 4294967295, %v9342_v55  ;;  %vm4942_vm11 = vmor %vm4759_vm9, %vm9346_vm8  ;;  %vm9354_vm9 = vcmp.eq.s32.totalorder %v3911_v28, %v9293_v43  ;;  %vm9355_vm8 = vnez %v9221_v24  ;;  %v9363_v24 = vmov 0  ;;  %v4993_v43 = vld [vmem:[%s3279_s25 + $0xa0] sm:$0xff] }
 0x28c   : > { %vm4957_vm15 = vmor %vm9351_vm3, %vm9350_vm7  ;;  %vm9358_vm3 = vcmp.eq.s32.totalorder %v3905_v48, %v9319_v57  ;;  %vm9359_vm7 = vnez %v9225_v16  ;;  %v1640_v46 = vadd.s32 145, %v4993_v43  ;;  %vm9368_vm13 = vcmp.eq.s32.totalorder %v3911_v28, %v9217_v59 }
 0x28d   : > { %v9353_v58 = vsel %vm4957_vm15, 4294967295, %v9352_v58  ;;  %vm4966_vm12 = vmor %vm9355_vm8, %vm9354_vm9  ;;  %vm9362_vm9 = vcmp.eq.s32.totalorder %v3905_v48, %v1461_v37  ;;  %v9376_v59 = vmov 0  ;;  %v9511_v16 = vmov 0 }
 0x28e   : > { %v9357_v47 = vsel %vm4966_vm12, 4294967295, %v9356_v47  ;;  %vm4979_vm15 = vmor %vm9359_vm7, %vm9358_vm3  ;;  %vm9367_vm7 = vcmp.eq.s32.totalorder %v3911_v28, %v9270_v45  ;;  %v9374_v45 = vld [vmem:[#allocation100_spill] sm:$0xff]  ;;  %vm9386_vm3 = vcmp.eq.s32.totalorder %v3905_v48, %v9345_v32  ;;  %1713 = vperm.xlu2 %3062, %v1640_v46   ;;  %v9434_v46 = vmov 0 }
 0x28f   : > { %vm4987_vm8 = vmor %vm4907_vm6, %vm9362_vm9  ;;  %vm9371_vm6 = vcmp.eq.s32.totalorder %v3905_v48, %v9332_v35 }
 0x290   : > { %v9364_v24 = vsel %vm4987_vm8, 4294967295, %v9363_v24  ;;  %vm5004_vm12 = vmor %vm9368_vm13, %vm9367_vm7  ;;  %vm9375_vm7 = vcmp.eq.s32.totalorder %v3911_v28, %v1461_v37  ;;  %v9385_v37 = vld [vmem:[#allocation75_spill] sm:$0xff] }
 0x291   : > { %9365 = vst [vmem:[#allocation66_spill] sm:$0xff] %v9364_v24  ;;  %vm5013_vm9 = vmor %vm4624_vm1, %vm9371_vm6  ;;  %vm9378_vm6 = vcmp.eq.s32.totalorder %v3905_v48, %v9314_v52  ;;  %vm9390_vm1 = vcmp.eq.s32.totalorder %v3905_v48, %v1449_v51  ;;  %v9528_v24 = vmov 0 }
 0x292   : > { %vm5027_vm8 = vmor %vm4942_vm11, %vm9375_vm7  ;;  %vm9382_vm11 = vcmp.eq.s32.totalorder %v3911_v28, %v9332_v35  ;;  %v9397_v35 = vld [vmem:[#allocation49_spill] sm:$0xff] }
 0x293   : > { %v9377_v59 = vsel %vm5027_vm8, 4294967295, %v9376_v59  ;;  %vm5040_vm13 = vmor %vm9379_vm4, %vm9378_vm6  ;;  %vm9387_vm4 = vnez %v9250_v54  ;;  %v9395_v54 = vmov 0 }
 0x294   : > { %vm5049_vm7 = vmor %vm4654_vm0, %vm9382_vm11  ;;  %vm9398_vm11 = vcmp.eq.s32.totalorder %v3905_v48, %v9344_v29  ;;  %vm9419_vm0 = vcmp.eq.s32.totalorder %v3905_v48, %v3858_v41 }
 0x295   : > { %v9384_v14 = vsel %vm5049_vm7, 4294967295, %v9383_v14  ;;  %vm5060_vm6 = vmor %vm9387_vm4, %vm9386_vm3  ;;  %vm9393_vm3 = vcmp.eq.s32.totalorder %v3911_v28, %v9314_v52  ;;  %vm9394_vm4 = vcmp.eq.s32.totalorder %v3911_v28, %v9242_v42  ;;  %v9403_v42 = vmov 0  ;;  %v9413_v52 = vld [vmem:[#allocation6_spill] sm:$0xff] }
 0x296   : > { %v9389_v50 = vsel %vm5060_vm6, 4294967295, %v9388_v50  ;;  %vm5074_vm7 = vmor %vm4813_vm5, %vm9390_vm1  ;;  %1722 = vperm.xlu2 %3062, %v1643_v30   ;;  %v9892_v30 = vmov 0 }
 0x297   : > { %v9392_v22 = vsel %vm5074_vm7, 4294967295, %v9391_v22  ;;  %vm5084_vm8 = vmor %vm9394_vm4, %vm9393_vm3  ;;  %vm9401_vm3 = vcmp.eq.s32.totalorder %v3911_v28, %v9345_v32  ;;  %vm9402_vm4 = vnez %v9262_v34  ;;  %v9410_v34 = vmov 0  ;;  %v9437_v32 = vld [vmem:[#allocation101_spill] sm:$0xff] }
 0x298   : > { %v9396_v54 = vsel %vm5084_vm8, 4294967295, %v9395_v54  ;;  %vm5095_vm5 = vmor %vm4689_vm2, %vm9398_vm11  ;;  %vm9405_vm11 = vcmp.eq.s32.totalorder %v3911_v28, %v9319_v57  ;;  %vm9420_vm2 = vnez %v9284_v5  ;;  %v9429_v5 = vmov 0 }
 0x299   : > { %v9400_v21 = vsel %vm5095_vm5, 4294967295, %v9399_v21  ;;  %vm5106_vm7 = vmor %vm9402_vm4, %vm9401_vm3  ;;  %vm9408_vm3 = vcmp.eq.s32.totalorder %v3911_v28, %v1449_v51  ;;  %vm9409_vm4 = vnez %v9323_v49  ;;  %vm9415_vm5 = vcmp.eq.s32.totalorder %v3911_v28, %v9344_v29  ;;  %v5168_v49 = vpop.permute.xlu1 %1427  ;;  %v9431_v29 = vld [vmem:[#allocation60_spill] sm:$0xff] }
 0x29a   : > { %v9404_v42 = vsel %vm5106_vm7, 4294967295, %v9403_v42  ;;  %vm5119_vm1 = vmor %vm4710_vm14, %vm9405_vm11  ;;  %v9417_v51 = vmov 0  ;;  %vm9423_vm14 = vcmp.eq.s32.totalorder %v3905_v48, %v9374_v45  ;;  %vm9438_vm11 = vcmp.eq.s32.totalorder %v3911_v28, %v3858_v41 }
 0x29b   : > { %v9407_v44 = vsel %vm5119_vm1, 4294967295, %v9406_v44  ;;  %vm5127_vm7 = vmor %vm9409_vm4, %vm9408_vm3  ;;  %vm9416_vm3 = vnez %v9274_v53  ;;  %v9425_v53 = vmov 0  ;;  %v9448_v41 = vmov 0 }
 0x29c   : > { %v9411_v34 = vsel %vm5127_vm7, 4294967295, %v9410_v34  ;;  %vm5144_vm4 = vmor %vm9416_vm3, %vm9415_vm5  ;;  %vm9424_vm5 = vnez %v9277_v31  ;;  %v9436_v31 = vld [vmem:[#allocation76_spill] sm:$0xff]  ;;  %v9519_v57 = vmov 0 }
 0x29d   : > { %9412 = vst [vmem:[#allocation94_spill] sm:$0xff] %v9411_v34  ;;  %v9418_v51 = vsel %vm5144_vm4, 4294967295, %v9417_v51  ;;  %vm5153_vm7 = vmor %vm9420_vm2, %vm9419_vm0  ;;  %vm9427_vm0 = vcmp.eq.s32.totalorder %v3905_v48, %v9269_v11  ;;  %vm9428_vm2 = vcmp.eq.s32.totalorder %v3905_v48, %v9285_v38  ;;  %v1458_v34 = vpop.permute.xlu2 %1457 }
 0x29e   : > { %vm5164_vm3 = vmor %vm9424_vm5, %vm9423_vm14  ;;  %vm9432_vm5 = vcmp.eq.s32.totalorder %v3905_v48, %v9385_v37  ;;  %vm9439_vm14 = vnez %v9304_v63  ;;  %v1470_v63 = vpop.permute.xlu0 %1469 }
 0x29f   : > { %v9426_v53 = vsel %vm5164_vm3, 4294967295, %v9425_v53  ;;  %vm5176_vm4 = vmor %vm9428_vm2, %vm9427_vm0  ;;  %vm9433_vm3 = vnez %v9289_v0  ;;  %v9444_v0 = vmov 0  ;;  %vm9446_vm0 = vcmp.eq.s32.totalorder %v3905_v48, %v3781_v9 }
 0x2a0   : > { %v9430_v5 = vsel %vm5176_vm4, 4294967295, %v9429_v5  ;;  %vm5189_vm1 = vmor %vm9433_vm3, %vm9432_vm5  ;;  %vm9442_vm3 = vcmp.eq.s32.totalorder %v3911_v28, %v9374_v45  ;;  %vm9443_vm5 = vnez %v9292_v15  ;;  %vm9447_vm2 = vnez %v9297_v40 }
 0x2a1   : > { %v9435_v46 = vsel %vm5189_vm1, 4294967295, %v9434_v46  ;;  %vm5202_vm4 = vmor %vm9439_vm14, %vm9438_vm11  ;;  %vm9450_vm11 = vcmp.eq.s32.totalorder %v3905_v48, %v9397_v35  ;;  %vm9451_vm14 = vnez %v9309_v26  ;;  %v9452_v15 = vmov 0 }
 0x2a2   : > { %v9441_v4 = vsel %vm5202_vm4, 4294967295, %v9440_v4  ;;  %vm5211_vm1 = vmor %vm9443_vm5, %vm9442_vm3  ;;  %vm9454_vm5 = vcmp.eq.s32.totalorder %v3911_v28, %v9385_v37  ;;  %v9456_v40 = vmov 0  ;;  %vm9467_vm4 = vnez %v9331_v2  ;;  %v5292_v2 = vld [vmem:[%s3279_s25 + $0xb0] sm:$0xff]  ;;  %v9484_v37 = vld [vmem:[#allocation28_spill] sm:$0xff] }
 0x2a3   : > { %v9445_v0 = vsel %vm5211_vm1, 4294967295, %v9444_v0  ;;  %vm5220_vm8 = vmor %vm9447_vm2, %vm9446_vm0  ;;  %vm9455_vm0 = vnez %v9313_v10  ;;  %vm9458_vm1 = vcmp.eq.s32.totalorder %v3905_v48, %v3868_v61  ;;  %v9464_v10 = vmov 0 }
 0x2a4   : > { %v9449_v41 = vsel %vm5220_vm8, 4294967295, %v9448_v41  ;;  %vm5229_vm3 = vmor %vm9451_vm14, %vm9450_vm11  ;;  %vm9459_vm11 = vnez %v9327_v18  ;;  %vm1540_vm8 = vcmp.eq.s32.totalorder %v3905_v48, %v1470_v63  ;;  %v1642_v45 = vadd.s32 145, %v5292_v2 }
 0x2a5   : > { %v9453_v15 = vsel %vm5229_vm3, 4294967295, %v9452_v15  ;;  %vm5238_vm2 = vmor %vm9455_vm0, %vm9454_vm5  ;;  %vm9462_vm5 = vcmp.eq.s32.totalorder %v3911_v28, %v3781_v9  ;;  %vm9463_vm0 = vnez %v9318_v8  ;;  %vm9466_vm3 = vcmp.eq.s32.totalorder %v3911_v28, %v9397_v35  ;;  %v9470_v8 = vld [vmem:[#allocation83_spill] sm:$0xff]  ;;  %v1467_v7 = vpop.permute.xlu2 %1466 }
 0x2a6   : > { %v9457_v40 = vsel %vm5238_vm2, 4294967295, %v9456_v40  ;;  %vm5249_vm14 = vmor %vm9459_vm11, %vm9458_vm1  ;;  %v9468_v9 = vmov 0  ;;  %vm9471_vm1 = vcmp.eq.s32.totalorder %v3911_v28, %v3868_v61  ;;  %v9497_v26 = vmov 0  ;;  %1719 = vperm.xlu1 %3064, %v1642_v45   ;;  %v1479_v45 = vpop.permute.xlu0 %1478 }
 0x2a7   : > { %vm5260_vm2 = vmor %vm9463_vm0, %vm9462_vm5  ;;  %vm9475_vm5 = vcmp.eq.s32.totalorder %v3911_v28, %v9285_v38  ;;  %v9482_v38 = vmov 0  ;;  %v9564_v18 = vmov 0  ;;  %v9616_v61 = vmov 0 }
 0x2a8   : > { %v9465_v10 = vsel %vm5260_vm2, 4294967295, %v9464_v10  ;;  %vm5273_vm6 = vmor %vm9467_vm4, %vm9466_vm3  ;;  %vm9474_vm3 = vcmp.eq.s32.totalorder %v3911_v28, %v9269_v11  ;;  %vm9478_vm4 = vcmp.eq.s32.totalorder %v3905_v48, %v9437_v32  ;;  %v9634_v35 = vmov 0 }
 0x2a9   : > { %v9469_v9 = vsel %vm5273_vm6, 4294967295, %v9468_v9  ;;  %vm5286_vm11 = vmor %vm4916_vm10, %vm9471_vm1  ;;  %vm9479_vm6 = vnez %v9343_v55  ;;  %vm9485_vm10 = vcmp.eq.s32.totalorder %v3905_v48, %v9431_v29  ;;  %vm9489_vm1 = vcmp.eq.s32.totalorder %v3905_v48, %v3870_v17 }
 0x2aa   : > { %vm5301_vm0 = vmor %vm9475_vm5, %vm9474_vm3  ;;  %v9629_v55 = vmov 0  ;;  %v9779_v11 = vmov 0 }
 0x2ab   : > { %vm5314_vm2 = vmor %vm9479_vm6, %vm9478_vm4  ;;  %vm9486_vm6 = vnez %v9353_v58  ;;  %v9636_v58 = vld [vmem:[#allocation55_spill] sm:$0xff] }
 0x2ac   : > { %vm5320_vm5 = vmor %vm5249_vm14, %vm1540_vm8  ;;  %vm9496_vm14 = vcmp.eq.s32.totalorder %v3911_v28, %v1470_v63  ;;  %v9508_v63 = vmov 0 }
 0x2ad   : > { %v9483_v38 = vsel %vm5320_vm5, 4294967295, %v9482_v38  ;;  %vm5333_vm4 = vmor %vm9486_vm6, %vm9485_vm10  ;;  %vm9492_vm10 = vcmp.eq.s32.totalorder %v3911_v28, %v9437_v32  ;;  %vm9493_vm6 = vnez %v9357_v47  ;;  %v9499_v32 = vld [vmem:[#allocation30_spill] sm:$0xff]  ;;  %v9646_v47 = vmov 0 }
 0x2ae   : > { %vm5348_vm5 = vmor %vm4979_vm15, %vm9489_vm1 }
 0x2af   : > { %vm5357_vm8 = vmor %vm9493_vm6, %vm9492_vm10  ;;  %vm9500_vm6 = vcmp.eq.s32.totalorder %v3905_v48, %v9414_v1  ;;  %vm9507_vm10 = vcmp.eq.s32.totalorder %v3905_v48, %v9470_v8 }
 0x2b0   : > { %vm5365_vm3 = vmor %vm5286_vm11, %vm9496_vm14  ;;  %vm9501_vm11 = vcmp.eq.s32.totalorder %v3905_v48, %v9366_v62 }
 0x2b1   : > { %v9498_v26 = vsel %vm5365_vm3, 4294967295, %v9497_v26  ;;  %vm5382_vm14 = vmor %vm9501_vm11, %vm9500_vm6  ;;  %vm9504_vm3 = vcmp.eq.s32.totalorder %v3911_v28, %v9431_v29  ;;  %v9517_v29 = vld [vmem:[#allocation52_spill] sm:$0xff]  ;;  %vm9518_vm11 = vcmp.eq.s32.totalorder %v3905_v48, %v9436_v31 }
 0x2b2   : > { %vm5391_vm15 = vmor %vm5004_vm12, %vm9504_vm3  ;;  %vm9510_vm12 = vcmp.eq.s32.totalorder %v3905_v48, %v1458_v34 }
 0x2b3   : > { %v9506_v27 = vsel %vm5391_vm15, 4294967295, %v9505_v27  ;;  %vm5400_vm1 = vmor %vm5013_vm9, %vm9507_vm10  ;;  %vm9513_vm9 = vcmp.eq.s32.totalorder %v3911_v28, %v9414_v1  ;;  %vm9514_vm10 = vcmp.eq.s32.totalorder %v3911_v28, %v9366_v62  ;;  %v9523_v62 = vmov 0  ;;  %v9525_v1 = vld [vmem:[#allocation102_spill] sm:$0xff] }
 0x2b4   : > { %v9509_v63 = vsel %vm5400_vm1, 4294967295, %v9508_v63  ;;  %vm5412_vm3 = vmor %vm5153_vm7, %vm9510_vm12  ;;  %vm9521_vm12 = vcmp.eq.s32.totalorder %v3911_v28, %v9470_v8  ;;  %v9560_v8 = vmov 0 }
 0x2b5   : > { %v9512_v16 = vsel %vm5412_vm3, 4294967295, %v9511_v16  ;;  %vm5422_vm1 = vmor %vm9514_vm10, %vm9513_vm9  ;;  %vm9522_vm9 = vnez %v9384_v14  ;;  %v9532_v14 = vmov 0  ;;  %vm9534_vm3 = vcmp.eq.s32.totalorder %v3911_v28, %v9436_v31  ;;  %v9557_v31 = vld [vmem:[#allocation79_spill] sm:$0xff] }
 0x2b6   : > { %v9516_v39 = vsel %vm5422_vm1, 4294967295, %v9515_v39  ;;  %vm5433_vm7 = vmor %vm5040_vm13, %vm9518_vm11  ;;  %vm9526_vm11 = vcmp.eq.s32.totalorder %v3905_v48, %v3790_v12  ;;  %vm9540_vm13 = vnez %v9407_v44  ;;  %v5513_v44 = vpop.permute.xlu1 %1436 }
 0x2b7   : > { %v9520_v57 = vsel %vm5433_vm7, 4294967295, %v9519_v57  ;;  %vm5442_vm10 = vmor %vm9522_vm9, %vm9521_vm12  ;;  %vm9527_vm7 = vnez %v9389_v50  ;;  %vm9530_vm12 = vcmp.eq.s32.totalorder %v3911_v28, %v1458_v34  ;;  %vm9531_vm9 = vnez %v9441_v4  ;;  %v9538_v34 = vld [vmem:[#allocation78_spill] sm:$0xff] }
 0x2b8   : > { %v9524_v62 = vsel %vm5442_vm10, 4294967295, %v9523_v62  ;;  %vm5457_vm1 = vmor %vm9527_vm7, %vm9526_vm11  ;;  %vm9535_vm7 = vnez %v9396_v54  ;;  %v9536_v50 = vmov 0  ;;  %v9541_v4 = vmov 0 }
 0x2b9   : > { %v9529_v24 = vsel %vm5457_vm1, 4294967295, %v9528_v24  ;;  %vm5465_vm6 = vmor %vm9531_vm9, %vm9530_vm12  ;;  %vm9539_vm9 = vcmp.eq.s32.totalorder %v3911_v28, %v3870_v17  ;;  %vm9544_vm10 = vnez %v9400_v21  ;;  %v9545_v54 = vmov 0 }
 0x2ba   : > { %v9533_v14 = vsel %vm5465_vm6, 4294967295, %v9532_v14  ;;  %vm5476_vm11 = vmor %vm9535_vm7, %vm9534_vm3  ;;  %vm9543_vm7 = vcmp.eq.s32.totalorder %v3905_v48, %v3779_v56  ;;  %vm9547_vm12 = vcmp.eq.s32.totalorder %v3911_v28, %v3790_v12  ;;  %v9549_v17 = vmov 0  ;;  %v9555_v12 = vld [vmem:[#allocation33_spill] sm:$0xff] }
 0x2bb   : > { %v9537_v50 = vsel %vm5476_vm11, 4294967295, %v9536_v50  ;;  %vm5489_vm6 = vmor %vm9540_vm13, %vm9539_vm9  ;;  %vm9548_vm13 = vnez %v9404_v42  ;;  %vm9551_vm3 = vcmp.eq.s32.totalorder %v3905_v48, %v9499_v32  ;;  %v9553_v21 = vmov 0  ;;  %v9556_v42 = vld [vmem:[#allocation53_spill] sm:$0xff] }
 0x2bc   : > { %v9542_v4 = vsel %vm5489_vm6, 4294967295, %v9541_v4  ;;  %vm5500_vm11 = vmor %vm9544_vm10, %vm9543_vm7  ;;  %vm9552_vm10 = vcmp.eq.s32.totalorder %v3905_v48, %v9413_v52  ;;  %vm9566_vm1 = vcmp.eq.s32.totalorder %v3905_v48, %v9517_v29  ;;  %vm9589_vm6 = vnez %v9465_v10 }
 0x2bd   : > { %v9546_v54 = vsel %vm5500_vm11, 4294967295, %v9545_v54  ;;  %vm5509_vm9 = vmor %vm9548_vm13, %vm9547_vm12  ;;  %vm9562_vm11 = vcmp.eq.s32.totalorder %v3911_v28, %v3779_v56  ;;  %vm9563_vm13 = vnez %v9418_v51  ;;  %v9572_v56 = vmov 0  ;;  %v9766_v51 = vld [vmem:[#allocation37_spill] sm:$0xff] }
 0x2be   : > { %v9550_v17 = vsel %vm5509_vm9, 4294967295, %v9549_v17  ;;  %vm5521_vm7 = vmor %vm9552_vm10, %vm9551_vm3  ;;  %vm9558_vm3 = vcmp.eq.s32.totalorder %v3905_v48, %v3878_v20  ;;  %vm9559_vm10 = vnez %v9426_v53  ;;  %v9568_v53 = vmov 0 }
 0x2bf   : > { %v9554_v21 = vsel %vm5521_vm7, 4294967295, %v9553_v21  ;;  %vm5540_vm7 = vmor %vm9559_vm10, %vm9558_vm3  ;;  %vm9567_vm3 = vnez %v9430_v5  ;;  %v9582_v5 = vld [vmem:[#allocation7_spill] sm:$0xff]  ;;  %vm9584_vm9 = vnez %v9453_v15  ;;  %v9594_v15 = vmov 0 }
 0x2c0   : > { %v9561_v8 = vsel %vm5540_vm7, 4294967295, %v9560_v8  ;;  %vm5549_vm12 = vmor %vm9563_vm13, %vm9562_vm11  ;;  %vm9570_vm11 = vcmp.eq.s32.totalorder %v3911_v28, %v3878_v20  ;;  %vm9571_vm13 = vnez %v9445_v0  ;;  %v9580_v20 = vmov 0 }
 0x2c1   : > { %v9565_v18 = vsel %vm5549_vm12, 4294967295, %v9564_v18  ;;  %vm5558_vm10 = vmor %vm9567_vm3, %vm9566_vm1  ;;  %vm9574_vm12 = vcmp.eq.s32.totalorder %v3905_v48, %v3880_v13  ;;  %vm9575_vm1 = vnez %v9449_v41  ;;  %v9585_v0 = vmov 0 }
 0x2c2   : > { %v9569_v53 = vsel %vm5558_vm10, 4294967295, %v9568_v53  ;;  %vm5569_vm7 = vmor %vm9571_vm13, %vm9570_vm11  ;;  %vm9578_vm10 = vcmp.eq.s32.totalorder %v3905_v48, %v9525_v1  ;;  %vm9579_vm11 = vnez %v9435_v46  ;;  %v9587_v46 = vld [vmem:[#allocation86_spill] sm:$0xff]  ;;  %v9638_v41 = vmov 0 }
 0x2c3   : > { %v9573_v56 = vsel %vm5569_vm7, 4294967295, %v9572_v56  ;;  %vm5578_vm3 = vmor %vm9575_vm1, %vm9574_vm12  ;;  %vm9583_vm1 = vcmp.eq.s32.totalorder %v3905_v48, %v9538_v34  ;;  %vm9597_vm12 = vcmp.eq.s32.totalorder %v3911_v28, %v9413_v52  ;;  %v9605_v52 = vmov 0 }
 0x2c4   : > { %vm5589_vm13 = vmor %vm9579_vm11, %vm9578_vm10  ;;  %vm9588_vm11 = vcmp.eq.s32.totalorder %v3911_v28, %v3880_v13  ;;  %v5630_v13 = vld [vmem:[%s3279_s25 + $0xc8] sm:$0xff] }
 0x2c5   : > { %v9581_v20 = vsel %vm5589_vm13, 4294967295, %v9580_v20  ;;  %vm5602_vm15 = vmor %vm9584_vm9, %vm9583_vm1  ;;  %vm9592_vm9 = vcmp.eq.s32.totalorder %v3911_v28, %v9525_v1  ;;  %vm9593_vm1 = vnez %v9457_v40  ;;  %v1645_v10 = vadd.s32 145, %v5630_v13  ;;  %v9608_v1 = vld [vmem:[#allocation31_spill] sm:$0xff] }
 0x2c6   : > { %v9586_v0 = vsel %vm5602_vm15, 4294967295, %v9585_v0  ;;  %vm5613_vm7 = vmor %vm9589_vm6, %vm9588_vm11  ;;  %vm9596_vm11 = vcmp.eq.s32.totalorder %v3911_v28, %v9499_v32  ;;  %v9598_v40 = vmov 0  ;;  %v9607_v32 = vld [vmem:[#allocation9_spill] sm:$0xff] }
 0x2c7   : > { %vm5624_vm15 = vmor %vm9593_vm1, %vm9592_vm9  ;;  %vm9600_vm9 = vcmp.eq.s32.totalorder %v3911_v28, %v9538_v34  ;;  %vm9601_vm1 = vnez %v9469_v9  ;;  %v3100_v9 = vld [vmem:[%s3279_s25 + $0xd0] sm:$0xff]  ;;  %1728 = vperm.xlu1 %3064, %v1645_v10   ;;  %v9763_v34 = vmov 0 }
 0x2c8   : > { %v9595_v15 = vsel %vm5624_vm15, 4294967295, %v9594_v15  ;;  %vm5641_vm13 = vmor %vm9597_vm12, %vm9596_vm11  ;;  %vm9604_vm12 = vcmp.eq.s32.totalorder %v3905_v48, %v1479_v45  ;;  %v1646_v36 = vadd.s32 145, %v3100_v9  ;;  %vm9609_vm15 = vcmp.eq.s32.totalorder %v3911_v28, %v9517_v29  ;;  %v9671_v10 = vld [vmem:[#allocation103_spill] sm:$0xff]  ;;  %v5945_v9 = vld [vmem:[%s3279_s25 + $0xe0] sm:$0xff] }
 0x2c9   : > { %v9599_v40 = vsel %vm5641_vm13, 4294967295, %v9598_v40  ;;  %vm5650_vm10 = vmor %vm9601_vm1, %vm9600_vm9  ;;  %vm9612_vm9 = vcmp.eq.s32.totalorder %v3905_v48, %v3882_v19  ;;  %v1888_v29 = vadd.s32 151, %v3887_v25  ;;  %v9623_v25 = vmov 0  ;;  %9711 = vst [vmem:[#allocation24_spill] sm:$0xff] %v5945_v9 }
 0x2ca   : > { %vm5662_vm11 = vmor %vm5578_vm3, %vm9604_vm12  ;;  %1731 = vperm.xlu2 %3062, %v1646_v36   ;;  %v1648_v36 = vadd.s32 145, %v5945_v9 }
 0x2cb   : > { %v9606_v52 = vsel %vm5662_vm11, 4294967295, %v9605_v52  ;;  %vm5677_vm6 = vmor %vm5301_vm0, %vm9609_vm15  ;;  %vm9615_vm15 = vcmp.eq.s32.totalorder %v3911_v28, %v1479_v45  ;;  %vm9619_vm0 = vcmp.eq.s32.totalorder %v3905_v48, %v9484_v37  ;;  %v9626_v45 = vmov 0  ;;  %1945 = vperm.xlu0 %3066, %v1888_v29  }
 0x2cc   : > { %vm5690_vm1 = vmor %vm5314_vm2, %vm9612_vm9  ;;  %vm9618_vm9 = vcmp.eq.s32.totalorder %v3905_v48, %v9556_v42  ;;  %vm9625_vm2 = vcmp.eq.s32.totalorder %v3911_v28, %v3882_v19  ;;  %v9631_v19 = vld [vmem:[#allocation34_spill] sm:$0xff]  ;;  %vm9648_vm11 = vcmp.eq.s32.totalorder %v3911_v28, %v1467_v7  ;;  %v9719_v29 = vmov 0 }
 0x2cd   : > { %vm5700_vm3 = vmor %vm5613_vm7, %vm9615_vm15  ;;  %vm9622_vm7 = vcmp.eq.s32.totalorder %v3905_v48, %v9587_v46 }
 0x2ce   : > { %v9617_v61 = vsel %vm5700_vm3, 4294967295, %v9616_v61  ;;  %vm5715_vm13 = vmor %vm9619_vm0, %vm9618_vm9  ;;  %vm9632_vm9 = vcmp.eq.s32.totalorder %v3911_v28, %v9556_v42  ;;  %v9652_v42 = vld [vmem:[#allocation56_spill] sm:$0xff] }
 0x2cf   : > { %vm5724_vm15 = vmor %vm5333_vm4, %vm9622_vm7  ;;  %vm9628_vm7 = vcmp.eq.s32.totalorder %v3905_v48, %v1467_v7  ;;  %vm9633_vm4 = vcmp.eq.s32.totalorder %v3911_v28, %v9484_v37  ;;  %v9642_v37 = vmov 0  ;;  %1737 = vperm.xlu1 %3064, %v1648_v36   ;;  %v9800_v36 = vld [vmem:[#allocation59_spill] sm:$0xff]  ;;  %v9876_v7 = vmov 0 }
 0x2d0   : > { %v9624_v25 = vsel %vm5724_vm15, 4294967295, %v9623_v25  ;;  %vm5735_vm0 = vmor %vm5357_vm8, %vm9625_vm2  ;;  %vm9640_vm2 = vcmp.eq.s32.totalorder %v3911_v28, %v9587_v46  ;;  %v9662_v46 = vld [vmem:[#allocation118_spill] sm:$0xff] }
 0x2d1   : > { %v9627_v45 = vsel %vm5735_vm0, 4294967295, %v9626_v45  ;;  %vm5747_vm12 = vmor %vm5348_vm5, %vm9628_vm7  ;;  %vm9637_vm7 = vcmp.eq.s32.totalorder %v3905_v48, %v9557_v31 }
 0x2d2   : > { %v9630_v55 = vsel %vm5747_vm12, 4294967295, %v9629_v55  ;;  %vm5761_vm3 = vmor %vm9633_vm4, %vm9632_vm9  ;;  %vm9641_vm9 = vnez %v9506_v27  ;;  %vm9644_vm12 = vcmp.eq.s32.totalorder %v3905_v48, %v3799_v3  ;;  %v9650_v27 = vmov 0 }
 0x2d3   : > { %v9635_v35 = vsel %vm5761_vm3, 4294967295, %v9634_v35  ;;  %vm5772_vm8 = vmor %vm5382_vm14, %vm9637_vm7  ;;  %vm9645_vm14 = vnez %v9509_v63  ;;  %v9655_v63 = vmov 0  ;;  %vm9688_vm3 = vcmp.eq.s32.totalorder %v3911_v28, %v3890_v33 }
 0x2d4   : > { %v9639_v41 = vsel %vm5772_vm8, 4294967295, %v9638_v41  ;;  %vm5781_vm4 = vmor %vm9641_vm9, %vm9640_vm2  ;;  %vm9649_vm8 = vnez %v9542_v4  ;;  %v9657_v4 = vld [vmem:[#allocation81_spill] sm:$0xff]  ;;  %vm9659_vm9 = vnez %v9529_v24  ;;  %v9669_v24 = vmov 0 }
 0x2d5   : > { %v9643_v37 = vsel %vm5781_vm4, 4294967295, %v9642_v37  ;;  %vm5792_vm7 = vmor %vm9645_vm14, %vm9644_vm12  ;;  %vm9653_vm12 = vcmp.eq.s32.totalorder %v3911_v28, %v9557_v31  ;;  %vm9654_vm14 = vnez %v9516_v39  ;;  %v9665_v39 = vmov 0  ;;  %v1446_v31 = vpop.permute.xlu1 %1445 }
 0x2d6   : > { %v9647_v47 = vsel %vm5792_vm7, 4294967295, %v9646_v47  ;;  %vm5800_vm2 = vmor %vm9649_vm8, %vm9648_vm11  ;;  %vm9658_vm8 = vcmp.eq.s32.totalorder %v3905_v48, %v3892_v23  ;;  %vm9667_vm11 = vcmp.eq.s32.totalorder %v3911_v28, %v3799_v3  ;;  %vm9680_vm7 = vcmp.eq.s32.totalorder %v3911_v28, %v3788_v6 }
 0x2d7   : > { %v9651_v27 = vsel %vm5800_vm2, 4294967295, %v9650_v27  ;;  %vm5813_vm4 = vmor %vm9654_vm14, %vm9653_vm12  ;;  %vm9663_vm12 = vcmp.eq.s32.totalorder %v3905_v48, %v3788_v6  ;;  %vm9664_vm14 = vnez %v9520_v57  ;;  %v9674_v57 = vmov 0 }
 0x2d8   : > { %v9656_v63 = vsel %vm5813_vm4, 4294967295, %v9655_v63  ;;  %vm5824_vm2 = vmor %vm9659_vm9, %vm9658_vm8  ;;  %vm9668_vm9 = vnez %v9524_v62  ;;  %v9682_v62 = vmov 0  ;;  %v9686_v6 = vmov 0 }
 0x2d9   : > { %vm5835_vm4 = vmor %vm9664_vm14, %vm9663_vm12  ;;  %vm9672_vm12 = vcmp.eq.s32.totalorder %v3905_v48, %v3890_v33  ;;  %vm9673_vm14 = vnez %v9546_v54  ;;  %v1476_v54 = vpop.permute.xlu2 %1475  ;;  %vm9706_vm15 = vcmp.eq.s32.totalorder %v3911_v28, %v1446_v31  ;;  %v9755_v3 = vmov 0  ;;  %v9977_v33 = vld [vmem:[#allocation125_spill] sm:$0xff] }
 0x2da   : > { %v9666_v39 = vsel %vm5835_vm4, 4294967295, %v9665_v39  ;;  %vm5844_vm8 = vmor %vm9668_vm9, %vm9667_vm11  ;;  %vm9676_vm11 = vcmp.eq.s32.totalorder %v3911_v28, %v3892_v23  ;;  %vm9677_vm9 = vnez %v9550_v17  ;;  %v1488_v23 = vpop.permute.xlu0 %1487  ;;  %v9693_v17 = vmov 0 }
 0x2db   : > { %v9670_v24 = vsel %vm5844_vm8, 4294967295, %v9669_v24  ;;  %vm5855_vm4 = vmor %vm9673_vm14, %vm9672_vm12  ;;  %vm9681_vm12 = vnez %v9537_v50  ;;  %v9833_v50 = vld [vmem:[#allocation85_spill] sm:$0xff] }
 0x2dc   : > { %v9675_v57 = vsel %vm5855_vm4, 4294967295, %v9674_v57  ;;  %vm5864_vm8 = vmor %vm9677_vm9, %vm9676_vm11  ;;  %vm1524_vm4 = vcmp.eq.s32.totalorder %v3905_v48, %v1446_v31  ;;  %vm9684_vm11 = vcmp.eq.s32.totalorder %v3905_v48, %v9636_v58  ;;  %vm9685_vm9 = vnez %v9554_v21  ;;  %v9696_v21 = vld [vmem:[#allocation8_spill] sm:$0xff] }
 0x2dd   : > { %vm5875_vm14 = vmor %vm9681_vm12, %vm9680_vm7  ;;  %vm9703_vm12 = vnez %v9581_v20  ;;  %v9716_v20 = vld [vmem:[#allocation107_spill] sm:$0xff] }
 0x2de   : > { %v9683_v62 = vsel %vm5875_vm14, 4294967295, %v9682_v62  ;;  %vm5886_vm5 = vmor %vm9685_vm9, %vm9684_vm11  ;;  %vm9689_vm14 = vnez %v9565_v18  ;;  %vm9692_vm11 = vnez %v9561_v8  ;;  %v9701_v8 = vld [vmem:[#allocation82_spill] sm:$0xff]  ;;  %v9704_v18 = vmov 0 }
 0x2df   : > { %v9687_v6 = vsel %vm5886_vm5, 4294967295, %v9686_v6  ;;  %vm5899_vm0 = vmor %vm9689_vm14, %vm9688_vm3  ;;  %vm9697_vm3 = vcmp.eq.s32.totalorder %v3905_v48, %v9657_v4  ;;  %vm9698_vm14 = vnez %v9569_v53  ;;  %vm9702_vm5 = vcmp.eq.s32.totalorder %v3905_v48, %v9662_v46 }
 0x2e0   : > { %vm5905_vm9 = vmor %vm9692_vm11, %vm1524_vm4  ;;  %v9708_v53 = vmov 0  ;;  %vm9713_vm11 = vcmp.eq.s32.totalorder %v3905_v48, %v9582_v5 }
 0x2e1   : > { %v9694_v17 = vsel %vm5905_vm9, 4294967295, %v9693_v17  ;;  %vm5920_vm4 = vmor %vm9698_vm14, %vm9697_vm3  ;;  %vm9707_vm9 = vnez %v9573_v56  ;;  %v9714_v56 = vmov 0  ;;  %vm9717_vm14 = vcmp.eq.s32.totalorder %v3911_v28, %v9662_v46 }
 0x2e2   : > { %9695 = vst [vmem:[#allocation22_spill] sm:$0xff] %v9694_v17  ;;  %vm5931_vm7 = vmor %vm9703_vm12, %vm9702_vm5  ;;  %vm9712_vm12 = vcmp.eq.s32.totalorder %v3905_v48, %v9555_v12  ;;  %vm9718_vm5 = vnez %v9595_v15  ;;  %v9726_v46 = vmov 0  ;;  %v3102_v15 = vld [vmem:[%s3279_s25 + $0xe8] sm:$0xff] }
 0x2e3   : > { %v9705_v18 = vsel %vm5931_vm7, 4294967295, %v9704_v18  ;;  %vm5939_vm3 = vmor %vm9707_vm9, %vm9706_vm15  ;;  %vm9725_vm15 = vcmp.eq.s32.totalorder %v3905_v48, %v1488_v23  ;;  %v1649_v9 = vadd.s32 145, %v3102_v15  ;;  %v9737_v15 = vld [vmem:[#allocation104_spill] sm:$0xff] }
 0x2e4   : > { %v9709_v53 = vsel %vm5939_vm3, 4294967295, %v9708_v53  ;;  %vm5956_vm7 = vmor %vm9713_vm11, %vm9712_vm12  ;;  %vm9721_vm11 = vcmp.eq.s32.totalorder %v3905_v48, %v9671_v10  ;;  %vm9722_vm12 = vnez %v9586_v0  ;;  %v9731_v0 = vmov 0 }
 0x2e5   : > { %9710 = vst [vmem:[#allocation74_spill] sm:$0xff] %v9709_v53  ;;  %v9715_v56 = vsel %vm5956_vm7, 4294967295, %v9714_v56  ;;  %vm5969_vm3 = vmor %vm9718_vm5, %vm9717_vm14  ;;  %v9728_v53 = vld [vmem:[#allocation5_spill] sm:$0xff]  ;;  %vm9746_vm5 = vcmp.eq.s32.totalorder %v3905_v48, %v9631_v19  ;;  %1740 = vperm.xlu2 %3062, %v1649_v9  }
 0x2e6   : > { %v9720_v29 = vsel %vm5969_vm3, 4294967295, %v9719_v29  ;;  %vm5978_vm7 = vmor %vm9722_vm12, %vm9721_vm11  ;;  %vm9729_vm11 = vcmp.eq.s32.totalorder %v3911_v28, %v9555_v12  ;;  %vm9730_vm12 = vcmp.eq.s32.totalorder %v3911_v28, %v9582_v5  ;;  %v9738_v12 = vld [vmem:[#allocation120_spill] sm:$0xff]  ;;  %v9740_v5 = vmov 0  ;;  %v9818_v9 = vld [vmem:[#allocation121_spill] sm:$0xff] }
 0x2e7   : > { %vm5986_vm9 = vmor %vm5824_vm2, %vm9725_vm15  ;;  %vm9733_vm2 = vcmp.eq.s32.totalorder %v3911_v28, %v9636_v58  ;;  %vm9734_vm15 = vnez %v9599_v40  ;;  %v9743_v40 = vmov 0  ;;  %v9745_v58 = vld [vmem:[#allocation29_spill] sm:$0xff] }
 0x2e8   : > { %v9727_v46 = vsel %vm5986_vm9, 4294967295, %v9726_v46  ;;  %vm6000_vm3 = vmor %vm9730_vm12, %vm9729_vm11  ;;  %vm9739_vm12 = vcmp.eq.s32.totalorder %v3911_v28, %v9671_v10  ;;  %v1892_v17 = vadd.s32 151, %v9745_v58  ;;  %vm339_vm9 = vcmp.eq.s32.totalorder %v3911_v28, %v9608_v1  ;;  %v9782_v58 = vld [vmem:[#allocation58_spill] sm:$0xff] }
 0x2e9   : > { %v9732_v0 = vsel %vm6000_vm3, 4294967295, %v9731_v0  ;;  %vm6009_vm14 = vmor %vm9734_vm15, %vm9733_vm2  ;;  %vm9742_vm2 = vcmp.eq.s32.totalorder %v3911_v28, %v1488_v23  ;;  %v9752_v10 = vmov 0  ;;  %v9757_v23 = vld [vmem:[#allocation119_spill] sm:$0xff] }
 0x2ea   : > { %vm6024_vm3 = vmor %vm5650_vm10, %vm9739_vm12  ;;  %vm9747_vm10 = vcmp.eq.s32.totalorder %v3905_v48, %v9607_v32  ;;  %1957 = vperm.xlu0 %3066, %v1892_v17   ;;  %v9820_v17 = vmov 0 }
 0x2eb   : > { %v9741_v5 = vsel %vm6024_vm3, 4294967295, %v9740_v5  ;;  %vm6032_vm15 = vmor %vm5864_vm8, %vm9742_vm2  ;;  %vm9750_vm8 = vcmp.eq.s32.totalorder %v3905_v48, %v9652_v42  ;;  %vm9751_vm2 = vcmp.eq.s32.totalorder %v3905_v48, %v9608_v1  ;;  %v9759_v1 = vmov 0 }
 0x2ec   : > { %v9744_v40 = vsel %vm6032_vm15, 4294967295, %v9743_v40  ;;  %vm6045_vm12 = vmor %vm9747_vm10, %vm9746_vm5  ;;  %vm9754_vm15 = vcmp.eq.s32.totalorder %v3911_v28, %v9657_v4  ;;  %v9765_v4 = vld [vmem:[#allocation36_spill] sm:$0xff] }
 0x2ed   : > { %vm6055_vm11 = vmor %vm9751_vm2, %vm9750_vm8  ;;  %vm9758_vm2 = vcmp.eq.s32.totalorder %v3905_v48, %v1476_v54  ;;  %vm9777_vm8 = vcmp.eq.s32.totalorder %v3911_v28, %v1476_v54  ;;  %v9884_v54 = vmov 0 }
 0x2ee   : > { %v9753_v10 = vsel %vm6055_vm11, 4294967295, %v9752_v10  ;;  %vm6064_vm3 = vmor %vm5677_vm6, %vm9754_vm15  ;;  %vm9761_vm6 = vcmp.eq.s32.totalorder %v3911_v28, %v9631_v19  ;;  %vm9762_vm15 = vcmp.eq.s32.totalorder %v3911_v28, %v9607_v32  ;;  %v9768_v19 = vmov 0 }
 0x2ef   : > { %v9756_v3 = vsel %vm6064_vm3, 4294967295, %v9755_v3  ;;  %vm6078_vm11 = vmor %vm5690_vm1, %vm9758_vm2  ;;  %vm9767_vm2 = vcmp.eq.s32.totalorder %v3911_v28, %v9652_v42  ;;  %v9771_v32 = vmov 0  ;;  %vm9773_vm1 = vcmp.eq.s32.totalorder %v3905_v48, %v9716_v20 }
 0x2f0   : > { %v9760_v1 = vsel %vm6078_vm11, 4294967295, %v9759_v1  ;;  %vm6088_vm5 = vmor %vm9762_vm15, %vm9761_vm6  ;;  %vm9770_vm6 = vcmp.eq.s32.totalorder %v3905_v48, %v9701_v8  ;;  %v9775_v42 = vmov 0 }
 0x2f1   : > { %v9764_v34 = vsel %vm6088_vm5, 4294967295, %v9763_v34  ;;  %vm6101_vm11 = vmor %vm339_vm9, %vm9767_vm2  ;;  %vm9774_vm9 = vnez %v9624_v25  ;;  %v9785_v25 = vmov 0 }
 0x2f2   : > { %v9769_v19 = vsel %vm6101_vm11, 4294967295, %v9768_v19  ;;  %vm6110_vm15 = vmor %vm5715_vm13, %vm9770_vm6  ;;  %vm9778_vm11 = vnez %v9627_v45  ;;  %v9787_v45 = vld [vmem:[#allocation84_spill] sm:$0xff]  ;;  %vm9789_vm6 = vnez %v9647_v47  ;;  %v9798_v47 = vmov 0 }
 0x2f3   : > { %v9772_v32 = vsel %vm6110_vm15, 4294967295, %v9771_v32  ;;  %vm6121_vm2 = vmor %vm9774_vm9, %vm9773_vm1  ;;  %vm9783_vm9 = vcmp.eq.s32.totalorder %v3911_v28, %v9701_v8  ;;  %vm9784_vm15 = vnez %v9635_v35  ;;  %vm9792_vm1 = vcmp.eq.s32.totalorder %v3905_v48, %v9737_v15  ;;  %v1455_v8 = vpop.permute.xlu1 %1454 }
 0x2f4   : > { %v9776_v42 = vsel %vm6121_vm2, 4294967295, %v9775_v42  ;;  %vm6129_vm13 = vmor %vm9778_vm11, %vm9777_vm8  ;;  %vm9788_vm8 = vcmp.eq.s32.totalorder %v3905_v48, %v9738_v12  ;;  %v9794_v35 = vmov 0  ;;  %vm9796_vm11 = vcmp.eq.s32.totalorder %v3911_v28, %v9716_v20  ;;  %v1657_v20 = vpop.permute.xlu0 %1656 }
 0x2f5   : > { %v9780_v11 = vsel %vm6129_vm13, 4294967295, %v9779_v11  ;;  %vm6144_vm2 = vmor %vm9784_vm15, %vm9783_vm9  ;;  %vm9793_vm15 = vnez %v9639_v41  ;;  %vm9797_vm13 = vnez %v9643_v37  ;;  %v9804_v41 = vmov 0 }
 0x2f6   : > { %9781 = vst [vmem:[#allocation32_spill] sm:$0xff] %v9780_v11  ;;  %v9786_v25 = vsel %vm6144_vm2, 4294967295, %v9785_v25  ;;  %vm6155_vm10 = vmor %vm9789_vm6, %vm9788_vm8  ;;  %v9801_v11 = vld [vmem:[#allocation105_spill] sm:$0xff]  ;;  %vm9802_vm8 = vcmp.eq.s32.totalorder %v3905_v48, %v9757_v23  ;;  %v9808_v37 = vmov 0  ;;  %vm9810_vm6 = vcmp.eq.s32.totalorder %v3911_v28, %v9737_v15  ;;  %v3103_v15 = vld [vmem:[%s3279_s25 + $0xf8] sm:$0xff] }
 0x2f7   : > { %vm6164_vm9 = vmor %vm9793_vm15, %vm9792_vm1  ;;  %vm9803_vm15 = vnez %v9666_v39  ;;  %vm9811_vm1 = vnez %v9656_v63  ;;  %v9812_v39 = vmov 0  ;;  %v9816_v63 = vmov 0 }
 0x2f8   : > { %v9795_v35 = vsel %vm6164_vm9, 4294967295, %v9794_v35  ;;  %vm6173_vm2 = vmor %vm9797_vm13, %vm9796_vm11  ;;  %vm9806_vm13 = vcmp.eq.s32.totalorder %v3911_v28, %v9738_v12  ;;  %vm9807_vm11 = vnez %v9670_v24  ;;  %v1485_v24 = vpop.permute.xlu2 %1484  ;;  %v1651_v12 = vadd.s32 145, %v3103_v15  ;;  %v9850_v15 = vld [vmem:[#allocation106_spill] sm:$0xff] }
 0x2f9   : > { %v9799_v47 = vsel %vm6173_vm2, 4294967295, %v9798_v47  ;;  %vm6186_vm9 = vmor %vm9803_vm15, %vm9802_vm8  ;;  %vm1530_vm8 = vcmp.eq.s32.totalorder %v3905_v48, %v1455_v8  ;;  %vm1531_vm15 = vcmp.eq.s32.totalorder %v3911_v28, %v1455_v8  ;;  %v9839_v8 = vmov 0 }
 0x2fa   : > { %v9805_v41 = vsel %vm6186_vm9, 4294967295, %v9804_v41  ;;  %vm6195_vm2 = vmor %vm9807_vm11, %vm9806_vm13  ;;  %vm9814_vm11 = vcmp.eq.s32.totalorder %v3911_v28, %v9757_v23  ;;  %vm9815_vm9 = vnez %v9683_v62  ;;  %1746 = vperm.xlu1 %3064, %v1651_v12   ;;  %v9932_v12 = vld [vmem:[#allocation87_spill] sm:$0xff]  ;;  %v10073_v62 = vld [vmem:[#allocation129_spill] sm:$0xff]  ;;  %v10087_v23 = vmov 0 }
 0x2fb   : > { %v9809_v37 = vsel %vm6195_vm2, 4294967295, %v9808_v37  ;;  %vm6204_vm5 = vmor %vm9811_vm1, %vm9810_vm6  ;;  %vm9819_vm1 = vnez %v9675_v57  ;;  %v9826_v57 = vmov 0 }
 0x2fc   : > { %v9813_v39 = vsel %vm6204_vm5, 4294967295, %v9812_v39  ;;  %vm6217_vm2 = vmor %vm9815_vm9, %vm9814_vm11  ;;  %vm9822_vm11 = vcmp.eq.s32.totalorder %v3905_v48, %v9787_v45  ;;  %vm9842_vm9 = vcmp.eq.s32.totalorder %v3911_v28, %v9765_v4 }
 0x2fd   : > { %v9817_v63 = vsel %vm6217_vm2, 4294967295, %v9816_v63  ;;  %vm6225_vm5 = vmor %vm9819_vm1, %vm1530_vm8  ;;  %vm9823_vm2 = vnez %v9687_v6  ;;  %vm9834_vm8 = vcmp.eq.s32.totalorder %v3905_v48, %v9801_v11  ;;  %v9964_v6 = vmov 0 }
 0x2fe   : > { %v9821_v17 = vsel %vm6225_vm5, 4294967295, %v9820_v17  ;;  %vm6238_vm6 = vmor %vm9823_vm2, %vm9822_vm11  ;;  %vm9829_vm2 = vcmp.eq.s32.totalorder %v3905_v48, %v9765_v4  ;;  %vm9830_vm11 = vcmp.eq.s32.totalorder %v3905_v48, %v9696_v21  ;;  %v9854_v4 = vld [vmem:[#allocation123_spill] sm:$0xff] }
 0x2ff   : > { %vm6246_vm1 = vmor %vm5899_vm0, %vm1531_vm15  ;;  %vm9860_vm15 = vcmp.eq.s32.totalorder %v3905_v48, %v9728_v53 }
 0x300   : > { %v9827_v57 = vsel %vm6246_vm1, 4294967295, %v9826_v57  ;;  %vm6258_vm3 = vmor %vm9830_vm11, %vm9829_vm2  ;;  %vm9837_vm2 = vcmp.eq.s32.totalorder %v3905_v48, %v1485_v24  ;;  %vm9838_vm11 = vnez %v9705_v18  ;;  %vm9843_vm1 = vcmp.eq.s32.totalorder %v3911_v28, %v9696_v21 }
 0x301   : > { %9828 = vst [vmem:[#allocation21_spill] sm:$0xff] %v9827_v57  ;;  %vm6273_vm13 = vmor %vm5920_vm4, %vm9834_vm8  ;;  %vm9846_vm8 = vcmp.eq.s32.totalorder %v3905_v48, %v9782_v58  ;;  %v9848_v18 = vmov 0  ;;  %v9852_v21 = vmov 0  ;;  %v6328_v57 = vld [vmem:[%s3279_s25] sm:$0xff] }
 0x302   : > { %vm6281_vm0 = vmor %vm9838_vm11, %vm9837_vm2  ;;  %vm9847_vm2 = vnez %v9715_v56  ;;  %v9857_v56 = vmov 0  ;;  %v1876_v31 = vadd.s32 151, %v6328_v57 }
 0x303   : > { %v9840_v8 = vsel %vm6281_vm0, 4294967295, %v9839_v8  ;;  %vm6292_vm4 = vmor %vm9843_vm1, %vm9842_vm9  ;;  %vm9851_vm0 = vcmp.eq.s32.totalorder %v3905_v48, %v9818_v9 }
 0x304   : > { %9841 = vst [vmem:[#allocation35_spill] sm:$0xff] %v9840_v8  ;;  %vm6301_vm11 = vmor %vm9847_vm2, %vm9846_vm8  ;;  %vm9855_vm8 = vcmp.eq.s32.totalorder %v3911_v28, %v1485_v24  ;;  %vm9856_vm2 = vnez %v9720_v29  ;;  %v1893_v8 = vadd.s32 151, %v4643_v60  ;;  %v9861_v29 = vmov 0  ;;  %v9899_v24 = vld [vmem:[#allocation39_spill] sm:$0xff] }
 0x305   : > { %v9849_v18 = vsel %vm6301_vm11, 4294967295, %v9848_v18  ;;  %vm6312_vm9 = vmor %vm5978_vm7, %vm9851_vm0  ;;  %vm285_vm7 = vcmp.eq.s32.totalorder %v3911_v28, %v9728_v53  ;;  %vm9859_vm0 = vcmp.eq.s32.totalorder %v3905_v48, %v9766_v51  ;;  %v9865_v60 = vmov 0 }
 0x306   : > { %v9853_v21 = vsel %vm6312_vm9, 4294967295, %v9852_v21  ;;  %vm6322_vm5 = vmor %vm9856_vm2, %vm9855_vm8  ;;  %vm9863_vm8 = vcmp.eq.s32.totalorder %v3911_v28, %v9782_v58  ;;  %vm9864_vm2 = vnez %v9732_v0  ;;  %vm9867_vm9 = vcmp.eq.s32.totalorder %v3911_v28, %v9787_v45  ;;  %v9874_v58 = vld [vmem:[#allocation122_spill] sm:$0xff]  ;;  %v9879_v45 = vld [vmem:[#allocation11_spill] sm:$0xff]  ;;  %1960 = vperm.xlu0 %3066, %v1893_v8  }
 0x307   : > { %v9858_v56 = vsel %vm6322_vm5, 4294967295, %v9857_v56  ;;  %vm6339_vm1 = vmor %vm9860_vm15, %vm9859_vm0  ;;  %v9868_v53 = vmov 0  ;;  %vm9870_vm0 = vcmp.eq.s32.totalorder %v3911_v28, %v9818_v9  ;;  %v9872_v0 = vmov 0  ;;  %v1464_v9 = vpop.permute.xlu1 %1463 }
 0x308   : > { %v9862_v29 = vsel %vm6339_vm1, 4294967295, %v9861_v29  ;;  %vm6348_vm5 = vmor %vm9864_vm2, %vm9863_vm8  ;;  %vm9871_vm8 = vnez %v9741_v5  ;;  %v9881_v5 = vmov 0  ;;  %v9939_v8 = vmov 0 }
 0x309   : > { %v9866_v60 = vsel %vm6348_vm5, 4294967295, %v9865_v60  ;;  %vm6357_vm11 = vmor %vm6009_vm14, %vm9867_vm9  ;;  %vm9875_vm9 = vcmp.eq.s32.totalorder %v3905_v48, %v1657_v20  ;;  %vm9880_vm5 = vcmp.eq.s32.totalorder %v3911_v28, %v9766_v51  ;;  %vm9883_vm14 = vcmp.eq.s32.totalorder %v3905_v48, %v9800_v36 }
 0x30a   : > { %v9869_v53 = vsel %vm6357_vm11, 4294967295, %v9868_v53  ;;  %vm6368_vm2 = vmor %vm9871_vm8, %vm9870_vm0  ;;  %vm9887_vm8 = vnez %v9753_v10  ;;  %v9888_v51 = vmov 0  ;;  %v9896_v10 = vmov 0 }
 0x30b   : > { %v9873_v0 = vsel %vm6368_vm2, 4294967295, %v9872_v0  ;;  %vm6380_vm15 = vmor %vm6155_vm10, %vm9875_vm9  ;;  %vm9886_vm9 = vcmp.eq.s32.totalorder %v3905_v48, %v9833_v50 }
 0x30c   : > { %v9877_v7 = vsel %vm6380_vm15, 4294967295, %v9876_v7  ;;  %vm6391_vm2 = vmor %vm285_vm7, %vm9880_vm5  ;;  %vm9890_vm7 = vcmp.eq.s32.totalorder %v3911_v28, %v9801_v11  ;;  %vm9894_vm15 = vcmp.eq.s32.totalorder %v3911_v28, %v1657_v20  ;;  %v9904_v11 = vld [vmem:[#allocation61_spill] sm:$0xff]  ;;  %vm9906_vm5 = vnez %v9769_v19  ;;  %v9918_v20 = vld [vmem:[#allocation108_spill] sm:$0xff] }
 0x30d   : > { %9878 = vst [vmem:[#allocation45_spill] sm:$0xff] %v9877_v7  ;;  %v9882_v5 = vsel %vm6391_vm2, 4294967295, %v9881_v5  ;;  %vm6400_vm10 = vmor %vm6045_vm12, %vm9883_vm14  ;;  %vm9891_vm12 = vnez %v9756_v3  ;;  %v9902_v3 = vmov 0  ;;  %v9915_v19 = vmov 0  ;;  %v6605_v7 = vld [vmem:[%s3279_s25 + $0x90] sm:$0xff] }
 0x30e   : > { %v9885_v54 = vsel %vm6400_vm10, 4294967295, %v9884_v54  ;;  %vm6409_vm0 = vmor %vm9887_vm8, %vm9886_vm9  ;;  %vm9895_vm10 = vnez %v9809_v37  ;;  %vm9905_vm9 = vcmp.eq.s32.totalorder %v3911_v28, %v9833_v50  ;;  %v9907_v37 = vmov 0  ;;  %v9937_v50 = vld [vmem:[#allocation124_spill] sm:$0xff] }
 0x30f   : > { %v9889_v51 = vsel %vm6409_vm0, 4294967295, %v9888_v51  ;;  %vm6420_vm14 = vmor %vm9891_vm12, %vm9890_vm7  ;;  %vm9900_vm7 = vcmp.eq.s32.totalorder %v3911_v28, %v9800_v36  ;;  %vm9901_vm12 = vnez %v9764_v34  ;;  %v9917_v36 = vmov 7  }
 0x310   : > { %v9893_v30 = vsel %vm6420_vm14, 4294967295, %v9892_v30  ;;  %vm6428_vm8 = vmor %vm9895_vm10, %vm9894_vm15  ;;  %vm9913_vm10 = vcmp.eq.s32.totalorder %v3905_v48, %v9850_v15  ;;  %vm9914_vm15 = vnez %v9772_v32  ;;  %3065 = vset.pattern.permute.xlu2 %v9917_v36  ;;  %v9971_v32 = vmov 0  ;;  %3067 = vset.pattern.permute.xlu1 %v9917_v36 }
 0x311   : > { %v9897_v10 = vsel %vm6428_vm8, 4294967295, %v9896_v10  ;;  %vm6441_vm0 = vmor %vm9901_vm12, %vm9900_vm7  ;;  %vm9909_vm7 = vcmp.eq.s32.totalorder %v3905_v48, %v9854_v4  ;;  %vm9910_vm12 = vnez %v9776_v42  ;;  %v9921_v42 = vmov 0  ;;  %1909 = vperm.xlu2 %3065, %v1876_v31  }
 0x312   : > { %9898 = vst [vmem:[#allocation10_spill] sm:$0xff] %v9897_v10  ;;  %v9903_v3 = vsel %vm6441_vm0, 4294967295, %v9902_v3  ;;  %vm6454_vm8 = vmor %vm9906_vm5, %vm9905_vm9  ;;  %vm9919_vm9 = vcmp.eq.s32.totalorder %v3905_v48, %v9874_v58  ;;  %vm9927_vm5 = vcmp.eq.s32.totalorder %v3911_v28, %v9850_v15  ;;  %v1672_v15 = vpop.permute.xlu0 %1671  ;;  %v9950_v31 = vmov 0 }
 0x313   : > { %v9908_v37 = vsel %vm6454_vm8, 4294967295, %v9907_v37  ;;  %vm6463_vm0 = vmor %vm9910_vm12, %vm9909_vm7  ;;  %vm9920_vm7 = vnez %v9795_v35  ;;  %v9929_v35 = vmov 0  ;;  %vm1761_vm11 = vcmp.eq.s32.totalorder %v3911_v28, %v1672_v15 }
 0x314   : > { %vm6472_vm14 = vmor %vm9914_vm15, %vm9913_vm10  ;;  %vm9923_vm15 = vcmp.eq.s32.totalorder %v3911_v28, %v9854_v4  ;;  %vm9924_vm10 = vnez %v9799_v47  ;;  %v9931_v47 = vld [vmem:[#allocation62_spill] sm:$0xff]  ;;  %v1654_v4 = vpop.permute.xlu2 %1653  ;;  %v10059_v36 = vmov 0  ;;  %v10079_v34 = vmov 0 }
 0x315   : > { %v9916_v19 = vsel %vm6472_vm14, 4294967295, %v9915_v19  ;;  %vm6484_vm12 = vmor %vm9920_vm7, %vm9919_vm9  ;;  %vm9928_vm14 = vnez %v9786_v25  ;;  %vm1536_vm9 = vcmp.eq.s32.totalorder %v3905_v48, %v1464_v9  ;;  %vm1537_vm7 = vcmp.eq.s32.totalorder %v3911_v28, %v1464_v9 }
 0x316   : > { %v9922_v42 = vsel %vm6484_vm12, 4294967295, %v9921_v42  ;;  %vm6493_vm8 = vmor %vm9924_vm10, %vm9923_vm15  ;;  %vm9938_vm15 = vnez %v9805_v41  ;;  %vm9942_vm12 = vnez %v9817_v63  ;;  %v9946_v41 = vld [vmem:[#allocation88_spill] sm:$0xff]  ;;  %vm9953_vm10 = vcmp.eq.s32.totalorder %v3905_v48, %v9899_v24 }
 0x317   : > { %vm6502_vm2 = vmor %vm9928_vm14, %vm9927_vm5  ;;  %vm9933_vm14 = vcmp.eq.s32.totalorder %v3911_v28, %v9874_v58  ;;  %vm9934_vm5 = vnez %v9813_v39  ;;  %v9943_v39 = vmov 0  ;;  %v6563_v58 = vld [vmem:[%s3279_s25 + $0x10] sm:$0xff]  ;;  %v10048_v25 = vmov 0 }
 0x318   : > { %v9930_v35 = vsel %vm6502_vm2, 4294967295, %v9929_v35  ;;  %vm6519_vm2 = vmor %vm9934_vm5, %vm9933_vm14  ;;  %vm1760_vm5 = vcmp.eq.s32.totalorder %v3905_v48, %v1672_v15  ;;  %v1878_v9 = vadd.s32 151, %v6563_v58  ;;  %v9960_v15 = vld [vmem:[#allocation109_spill] sm:$0xff]  ;;  %v10083_v10 = vmov 0 }
 0x319   : > { %vm6527_vm1 = vmor %vm9938_vm15, %vm1536_vm9  ;;  %vm9973_vm15 = vcmp.eq.s32.totalorder %v3905_v48, %v9932_v12  ;;  %vm9974_vm9 = vnez %v9849_v18  ;;  %v9985_v18 = vmov 0  ;;  %v10170_v63 = vmov 0 }
 0x31a   : > { %v9940_v8 = vsel %vm6527_vm1, 4294967295, %v9939_v8  ;;  %vm6535_vm14 = vmor %vm9942_vm12, %vm1537_vm7  ;;  %vm9947_vm12 = vcmp.eq.s32.totalorder %v3905_v48, %v9918_v20  ;;  %1915 = vperm.xlu1 %3067, %v1878_v9   ;;  %v10046_v9 = vld [vmem:[#allocation127_spill] sm:$0xff] }
 0x31b   : > { %9941 = vst [vmem:[#allocation69_spill] sm:$0xff] %v9940_v8  ;;  %v9944_v39 = vsel %vm6535_vm14, 4294967295, %v9943_v39  ;;  %vm6551_vm7 = vmor %vm6238_vm6, %vm9947_vm12  ;;  %vm9954_vm6 = vcmp.eq.s32.totalorder %v3905_v48, %v9879_v45  ;;  %v6609_v8 = vld [vmem:[%s3279_s25 + $0x18] sm:$0xff] }
 0x31c   : > { %9945 = vst [vmem:[#allocation46_spill] sm:$0xff] %v9944_v39  ;;  %vm6557_vm14 = vmor %vm6463_vm0, %vm1760_vm5  ;;  %vm9957_vm0 = vcmp.eq.s32.totalorder %v3905_v48, %v9904_v11  ;;  %v1894_v39 = vadd.s32 151, %v6605_v7 }
 0x31d   : > { %v9951_v31 = vsel %vm6557_vm14, 4294967295, %v9950_v31  ;;  %vm6572_vm12 = vmor %vm9954_vm6, %vm9953_vm10  ;;  %vm9961_vm10 = vcmp.eq.s32.totalorder %v3905_v48, %v9937_v50 }
 0x31e   : > { %9952 = vst [vmem:[#allocation47_spill] sm:$0xff] %v9951_v31  ;;  %vm6581_vm5 = vmor %vm6258_vm3, %vm9957_vm0  ;;  %v1879_v31 = vadd.s32 151, %v6609_v8  ;;  %vm9967_vm0 = vcmp.eq.s32.totalorder %v3911_v28, %v9879_v45  ;;  %v9975_v45 = vmov 0  ;;  %1963 = vperm.xlu0 %3066, %v1894_v39   ;;  %v1681_v39 = vpop.permute.xlu0 %1680 }
 0x31f   : > { %vm6594_vm6 = vmor %vm6273_vm13, %vm9961_vm10  ;;  %vm9966_vm13 = vcmp.eq.s32.totalorder %v3911_v28, %v9899_v24  ;;  %v9980_v24 = vmov 0 }
 0x320   : > { %vm6600_vm3 = vmor %vm6493_vm8, %vm1761_vm11  ;;  %vm9970_vm11 = vcmp.eq.s32.totalorder %v3911_v28, %v9904_v11  ;;  %v10000_v11 = vld [vmem:[#allocation14_spill] sm:$0xff]  ;;  %1918 = vperm.xlu2 %3065, %v1879_v31  }
 0x321   : > { %v9965_v6 = vsel %vm6600_vm3, 4294967295, %v9964_v6  ;;  %vm6618_vm10 = vmor %vm9967_vm0, %vm9966_vm13  ;;  %vm9979_vm3 = vnez %v9853_v21  ;;  %vm9987_vm0 = vcmp.eq.s32.totalorder %v3911_v28, %v9932_v12  ;;  %v9989_v21 = vmov 0  ;;  %v10031_v12 = vld [vmem:[#allocation89_spill] sm:$0xff]  ;;  %v10045_v31 = vld [vmem:[#allocation110_spill] sm:$0xff] }
 0x322   : > { %vm6627_vm8 = vmor %vm6292_vm4, %vm9970_vm11  ;;  %vm9978_vm11 = vcmp.eq.s32.totalorder %v3905_v48, %v1654_v4  ;;  %vm9988_vm4 = vnez %v9866_v60  ;;  %v9997_v60 = vmov 0 }
 0x323   : > { %v9972_v32 = vsel %vm6627_vm8, 4294967295, %v9971_v32  ;;  %vm6636_vm1 = vmor %vm9974_vm9, %vm9973_vm15  ;;  %vm9983_vm9 = vcmp.eq.s32.totalorder %v3905_v48, %v9931_v47  ;;  %vm9984_vm15 = vnez %v9862_v29  ;;  %v9993_v29 = vmov 0 }
 0x324   : > { %v9976_v45 = vsel %vm6636_vm1, 4294967295, %v9975_v45  ;;  %vm6650_vm14 = vmor %vm9979_vm3, %vm9978_vm11  ;;  %vm9991_vm11 = vcmp.eq.s32.totalorder %v3911_v28, %v9918_v20  ;;  %v10008_v20 = vmov 0  ;;  %vm10010_vm3 = vcmp.eq.s32.totalorder %v3911_v28, %v9937_v50  ;;  %v10036_v50 = vld [vmem:[#allocation126_spill] sm:$0xff] }
 0x325   : > { %v9981_v24 = vsel %vm6650_vm14, 4294967295, %v9980_v24  ;;  %vm6659_vm13 = vmor %vm9984_vm15, %vm9983_vm9  ;;  %vm9992_vm9 = vnez %v9869_v53  ;;  %vm9995_vm14 = vcmp.eq.s32.totalorder %v3911_v28, %v1654_v4  ;;  %v10001_v53 = vld [vmem:[#allocation40_spill] sm:$0xff]  ;;  %v10038_v4 = vmov 0 }
 0x326   : > { %9982 = vst [vmem:[#allocation54_spill] sm:$0xff] %v9981_v24  ;;  %v9986_v18 = vsel %vm6659_vm13, 4294967295, %v9985_v18  ;;  %vm6668_vm1 = vmor %vm9988_vm4, %vm9987_vm0  ;;  %vm9996_vm13 = vnez %v9873_v0  ;;  %v10004_v0 = vmov 0  ;;  %vm10007_vm4 = vnez %v9885_v54 }
 0x327   : > { %v9990_v21 = vsel %vm6668_vm1, 4294967295, %v9989_v21  ;;  %vm6679_vm15 = vmor %vm9992_vm9, %vm9991_vm11  ;;  %vm10002_vm9 = vcmp.eq.s32.totalorder %v3911_v28, %v9931_v47  ;;  %vm10003_vm1 = vnez %v9882_v5  ;;  %vm10011_vm11 = vnez %v9893_v30  ;;  %v1473_v47 = vpop.permute.xlu1 %1472 }
 0x328   : > { %v9994_v29 = vsel %vm6679_vm15, 4294967295, %v9993_v29  ;;  %vm6687_vm0 = vmor %vm9996_vm13, %vm9995_vm14  ;;  %vm10006_vm13 = vcmp.eq.s32.totalorder %v3905_v48, %v9946_v41  ;;  %v10012_v5 = vmov 0  ;;  %v10016_v54 = vmov 0 }
 0x329   : > { %v9998_v60 = vsel %vm6687_vm0, 4294967295, %v9997_v60  ;;  %vm6703_vm14 = vmor %vm10003_vm1, %vm10002_vm9  ;;  %vm10014_vm1 = vcmp.eq.s32.totalorder %v3905_v48, %v9960_v15  ;;  %vm10015_vm9 = vnez %v9889_v51  ;;  %v10020_v30 = vmov 0 }
 0x32a   : > { %9999 = vst [vmem:[#allocation15_spill] sm:$0xff] %v9998_v60  ;;  %v10005_v0 = vsel %vm6703_vm14, 4294967295, %v10004_v0  ;;  %vm6712_vm0 = vmor %vm10007_vm4, %vm10006_vm13  ;;  %v10024_v51 = vmov 0  ;;  %vm10026_vm4 = vcmp.eq.s32.totalorder %v3911_v28, %v9960_v15  ;;  %v6811_v15 = vld [vmem:[%s3279_s25 + $0x20] sm:$0xff]  ;;  %v10061_v60 = vld [vmem:[#allocation51_spill] sm:$0xff] }
 0x32b   : > { %v10009_v20 = vsel %vm6712_vm0, 4294967295, %v10008_v20  ;;  %vm6721_vm15 = vmor %vm10011_vm11, %vm10010_vm3  ;;  %vm10018_vm3 = vcmp.eq.s32.totalorder %v3911_v28, %v9946_v41  ;;  %vm10019_vm11 = vnez %v9903_v3  ;;  %v10028_v3 = vmov 0  ;;  %v1663_v41 = vpop.permute.xlu2 %1662 }
 0x32c   : > { %v10013_v5 = vsel %vm6721_vm15, 4294967295, %v10012_v5  ;;  %vm6730_vm14 = vmor %vm10015_vm9, %vm10014_vm1  ;;  %vm10022_vm1 = vcmp.eq.s32.totalorder %v3905_v48, %v9977_v33  ;;  %vm10023_vm9 = vnez %v9916_v19  ;;  %v10030_v19 = vld [vmem:[#allocation63_spill] sm:$0xff]  ;;  %v1895_v24 = vadd.s32 151, %v10061_v60 }
 0x32d   : > { %v10017_v54 = vsel %vm6730_vm14, 4294967295, %v10016_v54  ;;  %vm6741_vm13 = vmor %vm10019_vm11, %vm10018_vm3  ;;  %vm10027_vm14 = vnez %v9908_v37  ;;  %vm1542_vm3 = vcmp.eq.s32.totalorder %v3905_v48, %v1473_v47  ;;  %vm1543_vm11 = vcmp.eq.s32.totalorder %v3911_v28, %v1473_v47 }
 0x32e   : > { %v10021_v30 = vsel %vm6741_vm13, 4294967295, %v10020_v30  ;;  %vm6750_vm0 = vmor %vm10023_vm9, %vm10022_vm1  ;;  %vm10037_vm1 = vnez %v9922_v42  ;;  %v10044_v42 = vld [vmem:[#allocation90_spill] sm:$0xff]  ;;  %vm10047_vm9 = vnez %v10046_v9  ;;  %v10057_v9 = vld [vmem:[#allocation128_spill] sm:$0xff]  ;;  %1966 = vperm.xlu0 %3066, %v1895_v24   ;;  %v10122_v24 = vmov 0 }
 0x32f   : > { %v10025_v51 = vsel %vm6750_vm0, 4294967295, %v10024_v51  ;;  %vm6759_vm15 = vmor %vm10027_vm14, %vm10026_vm4  ;;  %vm10032_vm14 = vcmp.eq.s32.totalorder %v3911_v28, %v9977_v33  ;;  %vm10033_vm4 = vnez %v9930_v35  ;;  %v10041_v35 = vmov 0 }
 0x330   : > { %v10029_v3 = vsel %vm6759_vm15, 4294967295, %v10028_v3  ;;  %vm6776_vm13 = vmor %vm10033_vm4, %vm10032_vm14  ;;  %vm1766_vm4 = vcmp.eq.s32.totalorder %v3905_v48, %v1681_v39  ;;  %vm1767_vm0 = vcmp.eq.s32.totalorder %v3911_v28, %v1681_v39  ;;  %v1880_v33 = vadd.s32 151, %v6811_v15 }
 0x331   : > { %vm6784_vm8 = vmor %vm10037_vm1, %vm1542_vm3  ;;  %vm10051_vm1 = vcmp.eq.s32.totalorder %v3905_v48, %v10000_v11  ;;  %v10139_v37 = vmov 0  ;;  %v10163_v47 = vmov 0  ;;  %v10166_v39 = vmov 0 }
 0x332   : > { %v10039_v4 = vsel %vm6784_vm8, 4294967295, %v10038_v4  ;;  %vm6792_vm14 = vmor %vm6519_vm2, %vm1543_vm11  ;;  %vm10050_vm11 = vcmp.eq.s32.totalorder %v3905_v48, %v10001_v53  ;;  %vm10054_vm2 = vcmp.eq.s32.totalorder %v3905_v48, %v10036_v50  ;;  %1921 = vperm.xlu1 %3067, %v1880_v33   ;;  %v7044_v33 = vld [vmem:[%s3279_s25 + $0x38] sm:$0xff]  ;;  %v10174_v60 = vmov 0 }
 0x333   : > { %10040 = vst [vmem:[#allocation70_spill] sm:$0xff] %v10039_v4  ;;  %v10042_v35 = vsel %vm6792_vm14, 4294967295, %v10041_v35  ;;  %vm6805_vm8 = vmor %vm10047_vm9, %vm1766_vm4  ;;  %vm10062_vm9 = vcmp.eq.s32.totalorder %v3911_v28, %v10001_v53  ;;  %vm10069_vm4 = vcmp.eq.s32.totalorder %v3905_v48, %v10031_v12  ;;  %v10072_v53 = vld [vmem:[#allocation111_spill] sm:$0xff] }
 0x334   : > { %10043 = vst [vmem:[#allocation98_spill] sm:$0xff] %v10042_v35  ;;  %v10049_v25 = vsel %vm6805_vm8, 4294967295, %v10048_v25  ;;  %vm6820_vm3 = vmor %vm10051_vm1, %vm10050_vm11  ;;  %vm10058_vm1 = vnez %v10057_v9  ;;  %v6845_v35 = vld [vmem:[%s3279_s25 + $0x28] sm:$0xff]  ;;  %v10075_v9 = vmov 0 }
 0x335   : > { %vm6833_vm15 = vmor %vm6551_vm7, %vm10054_vm2  ;;  %v1881_v4 = vadd.s32 151, %v6845_v35  ;;  %vm10063_vm7 = vcmp.eq.s32.totalorder %v3911_v28, %v10000_v11  ;;  %v10227_v11 = vld [vmem:[#allocation17_spill] sm:$0xff] }
 0x336   : > { %vm6839_vm11 = vmor %vm10058_vm1, %vm1767_vm0  ;;  %vm10066_vm0 = vcmp.eq.s32.totalorder %v3905_v48, %v10030_v19 }
 0x337   : > { %v10060_v36 = vsel %vm6839_vm11, 4294967295, %v10059_v36  ;;  %vm6854_vm2 = vmor %vm10063_vm7, %vm10062_vm9  ;;  %vm10081_vm7 = vcmp.eq.s32.totalorder %v3911_v28, %v10031_v12  ;;  %v1482_v12 = vpop.permute.xlu1 %1481  ;;  %1924 = vperm.xlu2 %3065, %v1881_v4   ;;  %v10129_v4 = vmov 0 }
 0x338   : > { %vm6863_vm1 = vmor %vm6572_vm12, %vm10066_vm0  ;;  %vm10074_vm0 = vcmp.eq.s32.totalorder %v3905_v48, %v1663_v41  ;;  %vm10082_vm12 = vnez %v9972_v32  ;;  %v10091_v32 = vmov 0 }
 0x339   : > { %vm6872_vm14 = vmor %vm6581_vm5, %vm10069_vm4  ;;  %vm10078_vm5 = vcmp.eq.s32.totalorder %v3911_v28, %v10030_v19  ;;  %v10093_v19 = vld [vmem:[#allocation16_spill] sm:$0xff] }
 0x33a   : > { %vm6886_vm11 = vmor %vm6594_vm6, %vm10074_vm0  ;;  %vm10094_vm0 = vcmp.eq.s32.totalorder %v3905_v48, %v10044_v42  ;;  %vm10102_vm6 = vcmp.eq.s32.totalorder %v3911_v28, %v10045_v31 }
 0x33b   : > { %v10076_v9 = vsel %vm6886_vm11, 4294967295, %v10075_v9  ;;  %vm6895_vm4 = vmor %vm6618_vm10, %vm10078_vm5  ;;  %vm10085_vm10 = vcmp.eq.s32.totalorder %v3905_v48, %v10045_v31  ;;  %vm10086_vm5 = vnez %v9976_v45  ;;  %v10096_v45 = vmov 0  ;;  %v10137_v31 = vld [vmem:[#allocation131_spill] sm:$0xff] }
 0x33c   : > { %10077 = vst [vmem:[#allocation77_spill] sm:$0xff] %v10076_v9  ;;  %v10080_v34 = vsel %vm6895_vm4, 4294967295, %v10079_v34  ;;  %vm6904_vm9 = vmor %vm10082_vm12, %vm10081_vm7  ;;  %vm10089_vm7 = vcmp.eq.s32.totalorder %v3911_v28, %v1663_v41  ;;  %vm10090_vm12 = vnez %v10013_v5  ;;  %v10100_v5 = vmov 0  ;;  %v1669_v41 = vpop.permute.xlu2 %1668 }
 0x33d   : > { %v10084_v10 = vsel %vm6904_vm9, 4294967295, %v10083_v10  ;;  %vm6917_vm11 = vmor %vm10086_vm5, %vm10085_vm10  ;;  %vm10095_vm9 = vnez %v9986_v18  ;;  %vm10098_vm5 = vcmp.eq.s32.totalorder %v3911_v28, %v10036_v50  ;;  %v10104_v18 = vmov 0  ;;  %v10119_v50 = vld [vmem:[#allocation64_spill] sm:$0xff] }
 0x33e   : > { %v10088_v23 = vsel %vm6917_vm11, 4294967295, %v10087_v23  ;;  %vm6925_vm8 = vmor %vm10090_vm12, %vm10089_vm7  ;;  %vm10099_vm7 = vnez %v9994_v29  ;;  %v10108_v29 = vmov 0  ;;  %v1896_v9 = vadd.s32 151, %v4993_v43 }
 0x33f   : > { %v10092_v32 = vsel %vm6925_vm8, 4294967295, %v10091_v32  ;;  %vm6936_vm10 = vmor %vm10095_vm9, %vm10094_vm0  ;;  %vm10103_vm8 = vnez %v9990_v21  ;;  %vm10106_vm0 = vcmp.eq.s32.totalorder %v3911_v28, %v10044_v42  ;;  %v10112_v21 = vmov 0  ;;  %v10132_v42 = vld [vmem:[#allocation91_spill] sm:$0xff] }
 0x340   : > { %v10097_v45 = vsel %vm6936_vm10, 4294967295, %v10096_v45  ;;  %vm6945_vm12 = vmor %vm10099_vm7, %vm10098_vm5  ;;  %vm10107_vm5 = vnez %v10005_v0  ;;  %vm10114_vm9 = vcmp.eq.s32.totalorder %v3905_v48, %v10072_v53  ;;  %v10116_v0 = vmov 0  ;;  %1969 = vperm.xlu0 %3066, %v1896_v9  }
 0x341   : > { %v10101_v5 = vsel %vm6945_vm12, 4294967295, %v10100_v5  ;;  %vm6954_vm11 = vmor %vm10103_vm8, %vm10102_vm6  ;;  %vm10110_vm8 = vcmp.eq.s32.totalorder %v3905_v48, %v10073_v62  ;;  %vm10111_vm6 = vnez %v10017_v54  ;;  %v10118_v54 = vld [vmem:[#allocation41_spill] sm:$0xff]  ;;  %v10201_v9 = vmov 0 }
 0x342   : > { %v10105_v18 = vsel %vm6954_vm11, 4294967295, %v10104_v18  ;;  %vm6965_vm7 = vmor %vm10107_vm5, %vm10106_vm0  ;;  %vm10115_vm11 = vnez %v10009_v20  ;;  %vm1548_vm0 = vcmp.eq.s32.totalorder %v3905_v48, %v1482_v12  ;;  %vm1549_vm5 = vcmp.eq.s32.totalorder %v3911_v28, %v1482_v12  ;;  %v10146_v12 = vld [vmem:[#allocation130_spill] sm:$0xff]  ;;  %v7257_v20 = vld [vmem:[%s3279_s25 + $0x50] sm:$0xff] }
 0x343   : > { %v10109_v29 = vsel %vm6965_vm7, 4294967295, %v10108_v29  ;;  %vm6974_vm10 = vmor %vm10111_vm6, %vm10110_vm8  ;;  %vm10121_vm7 = vnez %v10029_v3  ;;  %vm10124_vm8 = vcmp.eq.s32.totalorder %v3911_v28, %v10072_v53  ;;  %vm10125_vm6 = vnez %v10021_v30  ;;  %v1690_v3 = vpop.permute.xlu0 %1689  ;;  %10221 = vst [vmem:[#allocation72_spill] sm:$0xff] %v7257_v20 }
 0x344   : > { %v10113_v21 = vsel %vm6974_vm10, 4294967295, %v10112_v21  ;;  %vm6983_vm4 = vmor %vm10115_vm11, %vm10114_vm9  ;;  %vm10120_vm9 = vcmp.eq.s32.totalorder %v3911_v28, %v10073_v62  ;;  %vm10128_vm11 = vnez %v10025_v51  ;;  %v10133_v30 = vmov 0  ;;  %v10136_v51 = vld [vmem:[#allocation112_spill] sm:$0xff] }
 0x345   : > { %v10117_v0 = vsel %vm6983_vm4, 4294967295, %v10116_v0  ;;  %vm7002_vm4 = vmor %vm10121_vm7, %vm10120_vm9  ;;  %vm10138_vm7 = vnez %v10137_v31  ;;  %v1883_v53 = vadd.s32 151, %v7044_v33  ;;  %v10149_v31 = vmov 0 }
 0x346   : > { %v10123_v24 = vsel %vm7002_vm4, 4294967295, %v10122_v24  ;;  %vm7011_vm12 = vmor %vm10125_vm6, %vm10124_vm8  ;;  %vm1772_vm8 = vcmp.eq.s32.totalorder %v3905_v48, %v1690_v3  ;;  %vm1773_vm6 = vcmp.eq.s32.totalorder %v3911_v28, %v1690_v3  ;;  %v10147_v3 = vld [vmem:[#allocation68_spill] sm:$0xff]  ;;  %v10246_v62 = vmov 0 }
 0x347   : > { %vm7017_vm10 = vmor %vm10128_vm11, %vm1548_vm0  ;;  %vm10143_vm11 = vcmp.eq.s32.totalorder %v3905_v48, %v10093_v19  ;;  %1930 = vperm.xlu1 %3067, %v1883_v53   ;;  %v10217_v53 = vld [vmem:[#allocation92_spill] sm:$0xff]  ;;  %v10260_v43 = vmov 0 }
 0x348   : > { %v10130_v4 = vsel %vm7017_vm10, 4294967295, %v10129_v4  ;;  %vm7025_vm9 = vmor %vm6776_vm13, %vm1549_vm5  ;;  %vm10142_vm5 = vcmp.eq.s32.totalorder %v3905_v48, %v10118_v54  ;;  %vm10148_vm13 = vnez %v10147_v3  ;;  %v10158_v3 = vld [vmem:[#allocation113_spill] sm:$0xff] }
 0x349   : > { %10131 = vst [vmem:[#allocation96_spill] sm:$0xff] %v10130_v4  ;;  %v10134_v30 = vsel %vm7025_vm9, 4294967295, %v10133_v30  ;;  %vm7038_vm4 = vmor %vm10138_vm7, %vm1772_vm8  ;;  %vm10165_vm8 = vcmp.eq.s32.totalorder %v3905_v48, %v10132_v42 }
 0x34a   : > { %10135 = vst [vmem:[#allocation23_spill] sm:$0xff] %v10134_v30  ;;  %v10140_v37 = vsel %vm7038_vm4, 4294967295, %v10139_v37  ;;  %vm7053_vm0 = vmor %vm10143_vm11, %vm10142_vm5  ;;  %v7069_v30 = vld [vmem:[%s3279_s25 + $0x40] sm:$0xff]  ;;  %vm10151_vm11 = vcmp.eq.s32.totalorder %v3911_v28, %v10118_v54  ;;  %vm10152_vm5 = vcmp.eq.s32.totalorder %v3911_v28, %v10093_v19  ;;  %v10160_v19 = vmov 0 }
 0x34b   : > { %10141 = vst [vmem:[#allocation27_spill] sm:$0xff] %v10140_v37  ;;  %vm7063_vm10 = vmor %vm10148_vm13, %vm1773_vm6  ;;  %v1884_v4 = vadd.s32 151, %v7069_v30  ;;  %vm10155_vm6 = vcmp.eq.s32.totalorder %v3905_v48, %v10119_v50  ;;  %v10168_v54 = vld [vmem:[#allocation93_spill] sm:$0xff]  ;;  %v10255_v37 = vmov 0 }
 0x34c   : > { %v10150_v31 = vsel %vm7063_vm10, 4294967295, %v10149_v31  ;;  %vm7078_vm7 = vmor %vm10152_vm5, %vm10151_vm11  ;;  %vm10159_vm11 = vcmp.eq.s32.totalorder %v3905_v48, %v1669_v41 }
 0x34d   : > { %vm7087_vm13 = vmor %vm6820_vm3, %vm10155_vm6  ;;  %vm10162_vm3 = vcmp.eq.s32.totalorder %v3911_v28, %v10119_v50  ;;  %v10178_v50 = vmov 0  ;;  %1933 = vperm.xlu2 %3065, %v1884_v4   ;;  %v10286_v4 = vmov 0 }
 0x34e   : > { %vm7099_vm5 = vmor %vm6833_vm15, %vm10159_vm11  ;;  %vm10176_vm15 = vcmp.eq.s32.totalorder %v3911_v28, %v10132_v42  ;;  %vm10177_vm11 = vnez %v10080_v34  ;;  %v10186_v34 = vmov 0  ;;  %v10208_v42 = vmov 0 }
 0x34f   : > { %v10161_v19 = vsel %vm7099_vm5, 4294967295, %v10160_v19  ;;  %vm7108_vm6 = vmor %vm6854_vm2, %vm10162_vm3  ;;  %vm10169_vm2 = vcmp.eq.s32.totalorder %v3905_v48, %v10136_v51 }
 0x350   : > { %v10164_v47 = vsel %vm7108_vm6, 4294967295, %v10163_v47  ;;  %vm7117_vm9 = vmor %vm6863_vm1, %vm10165_vm8  ;;  %vm10172_vm1 = vcmp.eq.s32.totalorder %v3911_v28, %v1669_v41  ;;  %vm10173_vm8 = vnez %v10101_v5  ;;  %v1491_v5 = vpop.permute.xlu1 %1490  ;;  %v10188_v41 = vld [vmem:[#allocation18_spill] sm:$0xff] }
 0x351   : > { %v10167_v39 = vsel %vm7117_vm9, 4294967295, %v10166_v39  ;;  %vm7130_vm3 = vmor %vm6872_vm14, %vm10169_vm2  ;;  %vm10180_vm14 = vcmp.eq.s32.totalorder %v3905_v48, %v10146_v12  ;;  %vm10181_vm2 = vnez %v10088_v23  ;;  %v10311_v23 = vmov 0 }
 0x352   : > { %v10171_v63 = vsel %vm7130_vm3, 4294967295, %v10170_v63  ;;  %vm7138_vm5 = vmor %vm10173_vm8, %vm10172_vm1  ;;  %vm10184_vm8 = vcmp.eq.s32.totalorder %v3911_v28, %v10136_v51  ;;  %v1678_v51 = vpop.permute.xlu2 %1677 }
 0x353   : > { %v10175_v60 = vsel %vm7138_vm5, 4294967295, %v10174_v60  ;;  %vm7147_vm10 = vmor %vm10177_vm11, %vm10176_vm15  ;;  %vm10185_vm15 = vnez %v10084_v10  ;;  %vm10190_vm5 = vnez %v10105_v18  ;;  %v10195_v10 = vmov 0  ;;  %v10197_v18 = vld [vmem:[#allocation42_spill] sm:$0xff] }
 0x354   : > { %v10179_v50 = vsel %vm7147_vm10, 4294967295, %v10178_v50  ;;  %vm7156_vm4 = vmor %vm10181_vm2, %vm10180_vm14  ;;  %vm10189_vm2 = vcmp.eq.s32.totalorder %v3911_v28, %v10146_v12  ;;  %vm1554_vm14 = vcmp.eq.s32.totalorder %v3905_v48, %v1491_v5  ;;  %v1886_v12 = vadd.s32 151, %v7257_v20 }
 0x355   : > { %vm7167_vm11 = vmor %vm10185_vm15, %vm10184_vm8  ;;  %vm10193_vm8 = vcmp.eq.s32.totalorder %v3905_v48, %v10158_v3  ;;  %vm10194_vm15 = vnez %v10097_v45  ;;  %v10198_v45 = vld [vmem:[#allocation65_spill] sm:$0xff] }
 0x356   : > { %v10187_v34 = vsel %vm7167_vm11, 4294967295, %v10186_v34  ;;  %vm7178_vm1 = vmor %vm10190_vm5, %vm10189_vm2  ;;  %vm1555_vm11 = vcmp.eq.s32.totalorder %v3911_v28, %v1491_v5  ;;  %vm10203_vm5 = vcmp.eq.s32.totalorder %v3911_v28, %v10158_v3  ;;  %vm10204_vm2 = vnez %v10109_v29  ;;  %1939 = vperm.xlu1 %3067, %v1886_v12  }
 0x357   : > { %vm7187_vm10 = vmor %vm10194_vm15, %vm10193_vm8  ;;  %vm10199_vm15 = vcmp.eq.s32.totalorder %v3905_v48, %v10168_v54  ;;  %vm10207_vm8 = vnez %v10113_v21  ;;  %v10214_v21 = vmov 0  ;;  %v10228_v5 = vmov 0 }
 0x358   : > { %v10196_v10 = vsel %vm7187_vm10, 4294967295, %v10195_v10  ;;  %vm10200_vm10 = vnez %v10117_v0  ;;  %vm7215_vm6 = vmor %vm10204_vm2, %vm10203_vm5  ;;  %v1699_v0 = vpop.permute.xlu0 %1698  ;;  %v10277_v12 = vmov 0  ;;  %v1898_v29 = vadd.s32 151, %v5292_v2  ;;  %v10299_v2 = vld [vmem:[#allocation71_spill] sm:$0xff] }
 0x359   : > { %vm7206_vm3 = vmor %vm10200_vm10, %vm10199_vm15  ;;  %vm10210_vm15 = vcmp.eq.s32.totalorder %v3911_v28, %v10168_v54  ;;  %vm1764_vm10 = vcmp.eq.s32.totalorder %v3905_v48, %v1678_v51  ;;  %v10226_v54 = vld [vmem:[#allocation114_spill] sm:$0xff]  ;;  %v10304_v3 = vmov 0 }
 0x35a   : > { %v10202_v9 = vsel %vm7206_vm3, 4294967295, %v10201_v9  ;;  %vm7221_vm9 = vmor %vm10207_vm8, %vm1554_vm14  ;;  %vm10213_vm14 = vnez %v10123_v24  ;;  %v10218_v24 = vmov 0  ;;  %vm10223_vm3 = vcmp.eq.s32.totalorder %v3905_v48, %v10188_v41 }
 0x35b   : > { %v10209_v42 = vsel %vm7221_vm9, 4294967295, %v10208_v42  ;;  %vm7232_vm5 = vmor %vm7011_vm12, %vm10210_vm15  ;;  %vm1765_vm9 = vcmp.eq.s32.totalorder %v3911_v28, %v1678_v51  ;;  %v7281_v51 = vld [vmem:[%s3279_s25 + $0xa8] sm:$0xff]  ;;  %vm1515_vm15 = vcmp.eq.s32.totalorder %v3911_v28, %v10227_v11 }
 0x35c   : > { %vm7238_vm2 = vmor %vm10213_vm14, %vm1555_vm11  ;;  %vm10222_vm14 = vcmp.eq.s32.totalorder %v3905_v48, %v10197_v18  ;;  %v1897_v20 = vadd.s32 151, %v7281_v51 }
 0x35d   : > { %v10215_v21 = vsel %vm7238_vm2, 4294967295, %v10214_v21  ;;  %vm7252_vm11 = vmor %vm7156_vm4, %vm1764_vm10  ;;  %vm1265_vm10 = vcmp.eq.s32.totalorder %v3911_v28, %v10226_v54 }
 0x35e   : > { %10216 = vst [vmem:[#allocation38_spill] sm:$0xff] %v10215_v21  ;;  %v10219_v24 = vsel %vm7252_vm11, 4294967295, %v10218_v24  ;;  %vm7266_vm8 = vmor %vm10223_vm3, %vm10222_vm14  ;;  %vm10232_vm3 = vcmp.eq.s32.totalorder %v3911_v28, %v10197_v18  ;;  %vm10233_vm14 = vcmp.eq.s32.totalorder %v3911_v28, %v10188_v41  ;;  %v10240_v41 = vld [vmem:[#allocation26_spill] sm:$0xff]  ;;  %v10242_v18 = vmov 0  ;;  %1972 = vperm.xlu0 %3066, %v1897_v20   ;;  %v10285_v20 = vld [vmem:[#allocation95_spill] sm:$0xff] }
 0x35f   : > { %10220 = vst [vmem:[#allocation12_spill] sm:$0xff] %v10219_v24  ;;  %vm7276_vm12 = vmor %vm7178_vm1, %vm1765_vm9  ;;  %v7285_v24 = vld [vmem:[%s3279_s25 + $0x58] sm:$0xff]  ;;  %vm10236_vm9 = vcmp.eq.s32.totalorder %v3905_v48, %v10198_v45  ;;  %vm10248_vm11 = vcmp.eq.s32.totalorder %v3905_v48, %v10217_v53 }
 0x360   : > { %v10229_v5 = vsel %vm7276_vm12, 4294967295, %v10228_v5  ;;  %10231 = vst [vmem:[#allocation99_spill] sm:$0xff] %v7285_v24  ;;  %v1887_v21 = vadd.s32 151, %v7285_v24  ;;  %vm7294_vm4 = vmor %vm10233_vm14, %vm10232_vm3  ;;  %vm10239_vm3 = vcmp.eq.s32.totalorder %v3905_v48, %v1699_v0  ;;  %vm10241_vm14 = vnez %v10240_v41  ;;  %v10251_v24 = vld [vmem:[#allocation20_spill] sm:$0xff] }
 0x361   : > { %10230 = vst [vmem:[#allocation48_spill] sm:$0xff] %v10229_v5  ;;  %vm7303_vm1 = vmor %vm7053_vm0, %vm10236_vm9  ;;  %v10237_v5 = vmov 0  ;;  %vm10245_vm0 = vcmp.eq.s32.totalorder %v3911_v28, %v10198_v45  ;;  %v10249_v41 = vmov 0  ;;  %v10253_v45 = vld [vmem:[#allocation43_spill] sm:$0xff] }
 0x362   : > { %v10238_v5 = vsel %vm7303_vm1, 4294967295, %v10237_v5  ;;  %vm7315_vm12 = vmor %vm10241_vm14, %vm10239_vm3  ;;  %vm1500_vm3 = vcmp.eq.s32.totalorder %v3905_v48, %v10251_v24  ;;  %vm10252_vm14 = vcmp.eq.s32.totalorder %v3911_v28, %v1699_v0  ;;  %1942 = vperm.xlu2 %3065, %v1887_v21   ;;  %v10283_v21 = vmov 0 }
 0x363   : > { %v10243_v18 = vsel %vm7315_vm12, 4294967295, %v10242_v18  ;;  %vm7324_vm9 = vmor %vm7078_vm7, %vm10245_vm0  ;;  %vm10254_vm12 = vnez %v10253_v45  ;;  %vm10258_vm0 = vcmp.eq.s32.totalorder %v3911_v28, %v10217_v53  ;;  %v10274_v53 = vmov 0  ;;  %v10290_v45 = vld [vmem:[#allocation44_spill] sm:$0xff] }
 0x364   : > { %10244 = vst [vmem:[#allocation57_spill] sm:$0xff] %v10243_v18  ;;  %v10247_v62 = vsel %vm7324_vm9, 4294967295, %v10246_v62  ;;  %vm7333_vm2 = vmor %vm7087_vm13, %vm10248_vm11  ;;  %vm10259_vm9 = vnez %v10164_v47  ;;  %vm10262_vm11 = vcmp.eq.s32.totalorder %v3905_v48, %v10227_v11  ;;  %v10268_v47 = vmov 0  ;;  %v10289_v11 = vld [vmem:[#allocation115_spill] sm:$0xff] }
 0x365   : > { %v10250_v41 = vsel %vm7333_vm2, 4294967295, %v10249_v41  ;;  %vm7343_vm7 = vmor %vm10254_vm12, %vm10252_vm14  ;;  %vm10263_vm2 = vnez %v10171_v63  ;;  %vm1501_vm12 = vcmp.eq.s32.totalorder %v3911_v28, %v10251_v24  ;;  %vm10266_vm14 = vcmp.eq.s32.totalorder %v3905_v48, %v10226_v54  ;;  %v10279_v54 = vld [vmem:[#allocation67_spill] sm:$0xff] }
 0x366   : > { %v10256_v37 = vsel %vm7343_vm7, 4294967295, %v10255_v37  ;;  %vm7352_vm13 = vmor %vm10259_vm9, %vm10258_vm0  ;;  %vm10267_vm9 = vnez %v10167_v39  ;;  %vm10270_vm7 = vnez %v10187_v34  ;;  %v1660_v39 = vpop.permute.xlu1 %1659  ;;  %v1708_v34 = vpop.permute.xlu0 %1707  ;;  %1975 = vperm.xlu0 %3066, %v1898_v29   ;;  %v7568_v29 = vld [vmem:[%s3279_s25 + $0xb8] sm:$0xff] }
 0x367   : > { %10257 = vst [vmem:[#allocation73_spill] sm:$0xff] %v10256_v37  ;;  %v10261_v43 = vsel %vm7352_vm13, 4294967295, %v10260_v43  ;;  %vm7361_vm1 = vmor %vm10263_vm2, %vm10262_vm11  ;;  %vm10273_vm2 = vnez %v10179_v50  ;;  %v1687_v50 = vpop.permute.xlu2 %1686  ;;  %v7443_v37 = vld [vmem:[%s3279_s25 + $0x70] sm:$0xff] }
 0x368   : > { %vm7372_vm0 = vmor %vm10267_vm9, %vm10266_vm14  ;;  %vm10276_vm14 = vnez %v10196_v10  ;;  %v1890_v18 = vadd.s32 151, %v7443_v37  ;;  %v1899_v10 = vadd.s32 151, %v7568_v29 }
 0x369   : > { %v10269_v47 = vsel %vm7372_vm0, 4294967295, %v10268_v47  ;;  %vm7378_vm13 = vmor %vm10270_vm7, %vm1515_vm15  ;;  %vm1752_vm15 = vcmp.eq.s32.totalorder %v3905_v48, %v1660_v39  ;;  %vm1753_vm7 = vcmp.eq.s32.totalorder %v3911_v28, %v1660_v39  ;;  %v10292_v39 = vmov 0 }
 0x36a   : > { %vm7384_vm11 = vmor %vm10273_vm2, %vm1265_vm10  ;;  %vm1784_vm10 = vcmp.eq.s32.totalorder %v3905_v48, %v1708_v34  ;;  %vm10300_vm0 = vnez %v10299_v2  ;;  %1951 = vperm.xlu2 %3065, %v1890_v18   ;;  %v10335_v18 = vld [vmem:[#allocation97_spill] sm:$0xff]  ;;  %v10345_v2 = vmov 0 }
 0x36b   : > { %v10275_v53 = vsel %vm7384_vm11, 4294967295, %v10274_v53  ;;  %vm7390_vm9 = vmor %vm10276_vm14, %vm1500_vm3  ;;  %vm10282_vm14 = vnez %v10202_v9  ;;  %vm1785_vm11 = vcmp.eq.s32.totalorder %v3911_v28, %v1708_v34  ;;  %v7429_v9 = vld [vmem:[%s3279_s25 + $0x68] sm:$0xff]  ;;  %v10308_v34 = vmov 0 }
 0x36c   : > { %v10278_v12 = vsel %vm7390_vm9, 4294967295, %v10277_v12  ;;  %vm7405_vm3 = vmor %vm7215_vm6, %vm1501_vm12  ;;  %v1889_v24 = vadd.s32 151, %v7429_v9 }
 0x36d   : > { %vm7411_vm9 = vmor %vm10282_vm14, %vm1752_vm15  ;;  %vm10291_vm14 = vnez %v10290_v45  ;;  %v10298_v45 = vld [vmem:[#allocation19_spill] sm:$0xff] }
 0x36e   : > { %v10284_v21 = vsel %vm7411_vm9, 4294967295, %v10283_v21  ;;  %vm7423_vm6 = vmor %vm7232_vm5, %vm1753_vm7  ;;  %vm1771_vm5 = vcmp.eq.s32.totalorder %v3911_v28, %v1687_v50  ;;  %vm10295_vm7 = vcmp.eq.s32.totalorder %v3905_v48, %v10279_v54  ;;  %1948 = vperm.xlu1 %3067, %v1889_v24   ;;  %v1666_v63 = vpop.permute.xlu1 %1665  ;;  %v10339_v24 = vld [vmem:[#allocation66_spill] sm:$0xff]  ;;  %1978 = vperm.xlu0 %3066, %v1899_v10   ;;  %v10372_v10 = vmov 0 }
 0x36f   : > { %v10287_v4 = vsel %vm7423_vm6, 4294967295, %v10286_v4  ;;  %vm7436_vm2 = vmor %vm10291_vm14, %vm1784_vm10  ;;  %vm1251_vm10 = vcmp.eq.s32.totalorder %v3911_v28, %v10289_v11  ;;  %vm1520_vm14 = vcmp.eq.s32.totalorder %v3905_v48, %v10298_v45  ;;  %vm10307_vm6 = vnez %v10238_v5 }
 0x370   : > { %10288 = vst [vmem:[#allocation80_spill] sm:$0xff] %v10287_v4  ;;  %v10293_v39 = vsel %vm7436_vm2, 4294967295, %v10292_v39  ;;  %vm7451_vm15 = vmor %vm7266_vm8, %vm10295_vm7  ;;  %vm10303_vm8 = vcmp.eq.s32.totalorder %v3911_v28, %v10279_v54  ;;  %vm10306_vm2 = vcmp.eq.s32.totalorder %v3905_v48, %v10285_v20 }
 0x371   : > { %10294 = vst [vmem:[#allocation25_spill] sm:$0xff] %v10293_v39  ;;  %vm7463_vm12 = vmor %vm10300_vm0, %vm1785_vm11  ;;  %v10301_v39 = vmov 0  ;;  %vm1521_vm0 = vcmp.eq.s32.totalorder %v3911_v28, %v10298_v45  ;;  %vm10310_vm11 = vcmp.eq.s32.totalorder %v3905_v48, %v1687_v50  ;;  %v10321_v50 = vmov 0  ;;  %v10343_v45 = vld [vmem:[#allocation13_spill] sm:$0xff] }
 0x372   : > { %v10302_v39 = vsel %vm7463_vm12, 4294967295, %v10301_v39  ;;  %vm7472_vm7 = vmor %vm7294_vm4, %vm10303_vm8  ;;  %vm10313_vm8 = vcmp.eq.s32.totalorder %v3911_v28, %v10285_v20  ;;  %vm10314_vm12 = vnez %v10247_v62  ;;  %v10333_v20 = vmov 0 }
 0x373   : > { %v10305_v3 = vsel %vm7472_vm7, 4294967295, %v10304_v3  ;;  %vm7481_vm9 = vmor %vm10307_vm6, %vm10306_vm2  ;;  %vm10317_vm6 = vcmp.eq.s32.totalorder %v3905_v48, %v10289_v11  ;;  %v10341_v11 = vmov 0  ;;  %v10360_v62 = vmov 0 }
 0x374   : > { %v10309_v34 = vsel %vm7481_vm9, 4294967295, %v10308_v34  ;;  %vm7491_vm4 = vmor %vm7361_vm1, %vm10310_vm11  ;;  %vm10318_vm9 = vnez %v10250_v41  ;;  %v10327_v41 = vmov 0 }
 0x375   : > { %v10312_v23 = vsel %vm7491_vm4, 4294967295, %v10311_v23  ;;  %vm7500_vm2 = vmor %vm10314_vm12, %vm10313_vm8  ;;  %vm10323_vm12 = vnez %v10269_v47  ;;  %vm10326_vm8 = vnez %v10261_v43  ;;  %v1717_v47 = vpop.permute.xlu0 %1716  ;;  %v1696_v43 = vpop.permute.xlu2 %1695 }
 0x376   : > { %vm7509_vm7 = vmor %vm10318_vm9, %vm10317_vm6  ;;  %v1675_v54 = vpop.permute.xlu1 %1674 }
 0x377   : > { %vm7515_vm1 = vmor %vm7378_vm13, %vm1771_vm5  ;;  %vm10329_vm13 = vnez %v10275_v53  ;;  %vm1756_vm5 = vcmp.eq.s32.totalorder %v3905_v48, %v1666_v63  ;;  %v10336_v53 = vmov 0 }
 0x378   : > { %v10322_v50 = vsel %vm7515_vm1, 4294967295, %v10321_v50  ;;  %vm7521_vm11 = vmor %vm10323_vm12, %vm1520_vm14  ;;  %vm1757_vm14 = vcmp.eq.s32.totalorder %v3911_v28, %v1666_v63  ;;  %vm1790_vm12 = vcmp.eq.s32.totalorder %v3905_v48, %v1717_v47  ;;  %v3118_v63 = vld [vmem:[%s3279_s25 + $0x80] sm:$0xff] }
 0x379   : > { %vm7527_vm4 = vmor %vm10326_vm8, %vm1251_vm10  ;;  %vm10332_vm10 = vnez %v10278_v12  ;;  %v10338_v12 = vld [vmem:[#allocation116_spill] sm:$0xff]  ;;  %vm1777_vm8 = vcmp.eq.s32.totalorder %v3911_v28, %v1696_v43 }
 0x37a   : > { %v10328_v41 = vsel %vm7527_vm4, 4294967295, %v10327_v41  ;;  %vm7533_vm9 = vmor %vm10329_vm13, %vm1521_vm0  ;;  %vm1791_vm0 = vcmp.eq.s32.totalorder %v3911_v28, %v1717_v47  ;;  %v2148_v47 = vadd.s32 153, %v3118_v63 }
 0x37b   : > { %vm7541_vm6 = vmor %vm10332_vm10, %vm1756_vm5  ;;  %vm1776_vm5 = vcmp.eq.s32.totalorder %v3905_v48, %v1696_v43  ;;  %vm10344_vm10 = vnez %v9377_v59  ;;  %v2132_v43 = vadd.s32 153, %v6328_v57  ;;  %v10350_v59 = vmov 0 }
 0x37c   : > { %v10334_v20 = vsel %vm7541_vm6, 4294967295, %v10333_v20  ;;  %vm7553_vm1 = vmor %vm7405_vm3, %vm1757_vm14  ;;  %vm10340_vm6 = vnez %v10339_v24  ;;  %vm1506_vm14 = vcmp.eq.s32.totalorder %v3905_v48, %v10343_v45  ;;  %vm1507_vm3 = vcmp.eq.s32.totalorder %v3911_v28, %v10343_v45  ;;  %v7662_v45 = vld [vmem:[%s3279_s25 + $0xc0] sm:$0xff] }
 0x37d   : > { %v10337_v53 = vsel %vm7553_vm1, 4294967295, %v10336_v53  ;;  %vm7562_vm4 = vmor %vm10340_vm6, %vm1790_vm12  ;;  %vm10347_vm6 = vcmp.eq.s32.totalorder %v3905_v48, %v10335_v18  ;;  %v1726_v0 = vpop.permute.xlu0 %1725  ;;  %v1705_v5 = vpop.permute.xlu2 %1704  ;;  %v1900_v63 = vadd.s32 151, %v7662_v45  ;;  %v10570_v57 = vmov 0 }
 0x37e   : > { %v10342_v11 = vsel %vm7562_vm4, 4294967295, %v10341_v11  ;;  %vm7577_vm13 = vmor %vm10344_vm10, %vm1791_vm0  ;;  %vm10352_vm10 = vcmp.eq.s32.totalorder %v3911_v28, %v10335_v18  ;;  %v10366_v18 = vmov 0 }
 0x37f   : > { %v10346_v2 = vsel %vm7577_vm13, 4294967295, %v10345_v2  ;;  %vm7588_vm12 = vmor %vm7451_vm15, %vm10347_vm6  ;;  %vm10353_vm13 = vnez %v10305_v3  ;;  %vm10356_vm15 = vcmp.eq.s32.totalorder %v3905_v48, %v10338_v12  ;;  %vm10357_vm6 = vnez %v10309_v34  ;;  %1981 = vperm.xlu0 %3066, %v1900_v63  }
 0x380   : > { %vm7596_vm0 = vmor %vm7521_vm11, %vm1776_vm5  ;;  %v8879_v3 = vmov 8   ;;  %vm10362_vm5 = vcmp.eq.s32.totalorder %v3911_v28, %v10338_v12  ;;  %v10370_v12 = vld [vmem:[#allocation117_spill] sm:$0xff]  ;;  %v10395_v34 = vmov 0  ;;  %v1901_v63 = vadd.s32 151, %v5630_v13 }
 0x381   : > { %v10351_v59 = vsel %vm7596_vm0, 4294967295, %v10350_v59  ;;  %vm7605_vm4 = vmor %vm10353_vm13, %vm10352_vm10  ;;  %3068 = vset.pattern.permute.xlu1 %v8879_v3  ;;  %3069 = vset.pattern.permute.xlu2 %v8879_v3  ;;  %v10403_v13 = vmov 0 }
 0x382   : > { %vm7614_vm1 = vmor %vm10357_vm6, %vm10356_vm15  ;;  %2213 = vperm.xlu1 %3068, %v2148_v47   ;;  %2165 = vperm.xlu2 %3069, %v2132_v43   ;;  %vm1796_vm15 = vcmp.eq.s32.totalorder %v3905_v48, %v1726_v0  ;;  %vm1797_vm6 = vcmp.eq.s32.totalorder %v3911_v28, %v1726_v0  ;;  %v3120_v47 = vld [vmem:[%s3279_s25 + $0x88] sm:$0xff] }
 0x383   : > { %vm7620_vm11 = vmor %vm7533_vm9, %vm1777_vm8  ;;  %vm10365_vm9 = vnez %v10328_v41  ;;  %v10368_v41 = vmov 0  ;;  %v2149_v43 = vadd.s32 153, %v3120_v47  ;;  %v10386_v47 = vmov 0 }
 0x384   : > { %v10361_v62 = vsel %vm7620_vm11, 4294967295, %v10360_v62  ;;  %vm1570_vm13 = vmor %vm7509_vm7, %vm1506_vm14  ;;  %vm1762_vm7 = vcmp.eq.s32.totalorder %v3905_v48, %v1675_v54  ;;  %vm1763_vm14 = vcmp.eq.s32.totalorder %v3911_v28, %v1675_v54  ;;  %vm10371_vm11 = vnez %v9483_v38  ;;  %v3121_v54 = vld [vmem:[%s3279_s25 + $0x8] sm:$0xff] }
 0x385   : > { %vm7632_vm10 = vmor %vm7500_vm2, %vm10362_vm5  ;;  %v10376_v38 = vmov 0  ;;  %v2133_v0 = vadd.s32 153, %v3121_v54  ;;  %v1735_v24 = vpop.permute.xlu0 %1734  ;;  %v1714_v4 = vpop.permute.xlu2 %1713 }
 0x386   : > { %vm1571_vm8 = vmor %vm10365_vm9, %vm1507_vm3  ;;  %vm1782_vm3 = vcmp.eq.s32.totalorder %v3905_v48, %v1705_v5  ;;  %vm1262_vm9 = vcmp.eq.s32.totalorder %v3905_v48, %v10370_v12 }
 0x387   : > { %vm7641_vm2 = vmor %vm1570_vm13, %vm1762_vm7  ;;  %vm1783_vm13 = vcmp.eq.s32.totalorder %v3911_v28, %v1705_v5  ;;  %vm1512_vm7 = vcmp.eq.s32.totalorder %v3905_v48, %v5168_v49  ;;  %v10380_v5 = vmov 0  ;;  %1984 = vperm.xlu0 %3066, %v1901_v63   ;;  %v10421_v63 = vmov 0 }
 0x388   : > { %v10367_v18 = vsel %vm7641_vm2, 4294967295, %v10366_v18  ;;  %vm7647_vm5 = vmor %vm1571_vm8, %vm1763_vm14  ;;  %vm1263_vm8 = vcmp.eq.s32.totalorder %v3911_v28, %v10370_v12  ;;  %vm10375_vm14 = vnez %v9498_v26  ;;  %v10384_v12 = vld [vmem:[#allocation94_spill] sm:$0xff]  ;;  %v10413_v26 = vmov 0 }
 0x389   : > { %v10369_v41 = vsel %vm7647_vm5, 4294967295, %v10368_v41  ;;  %vm7656_vm0 = vmor %vm10371_vm11, %vm1796_vm15  ;;  %vm1513_vm11 = vcmp.eq.s32.totalorder %v3911_v28, %v5168_v49  ;;  %vm10379_vm15 = vnez %v9392_v22  ;;  %v1684_v49 = vpop.permute.xlu1 %1683 }
 0x38a   : > { %v10373_v10 = vsel %vm7656_vm0, 4294967295, %v10372_v10  ;;  %vm7671_vm5 = vmor %vm10375_vm14, %vm1797_vm6  ;;  %vm10385_vm6 = vnez %v10384_v12  ;;  %2216 = vperm.xlu1 %3068, %v2149_v43   ;;  %2168 = vperm.xlu2 %3069, %v2133_v0   ;;  %v10399_v43 = vmov 0  ;;  %v2150_v0 = vadd.s32 153, %v6605_v7  ;;  %v7777_v12 = vld [vmem:[%s3279_s25 + $0xd0] sm:$0xff] }
 0x38b   : > { %10374 = vst [vmem:[#allocation100_spill] sm:$0xff] %v10373_v10  ;;  %v10377_v38 = vsel %vm7671_vm5, 4294967295, %v10376_v38  ;;  %vm7681_vm0 = vmor %vm10379_vm15, %vm1782_vm3  ;;  %v1902_v22 = vadd.s32 151, %v7777_v12  ;;  %v2541_v10 = vld [vmem:[%s8705_s1 + $0xc8] sm:$0xff] }
 0x38c   : > { %10378 = vst [vmem:[#allocation75_spill] sm:$0xff] %v10377_v38  ;;  %v10381_v5 = vsel %vm7681_vm0, 4294967295, %v10380_v5  ;;  %vm7687_vm2 = vmor %vm7588_vm12, %vm1262_vm9  ;;  %vm1768_vm9 = vcmp.eq.s32.totalorder %v3905_v48, %v1684_v49 }
 0x38d   : > { %vm7693_vm14 = vmor %vm10385_vm6, %vm1783_vm13  ;;  %vm1769_vm13 = vcmp.eq.s32.totalorder %v3911_v28, %v1684_v49  ;;  %vm1518_vm6 = vcmp.eq.s32.totalorder %v3905_v48, %v5513_v44  ;;  %v10417_v49 = vmov 0 }
 0x38e   : > { %v10387_v47 = vsel %vm7693_vm14, 4294967295, %v10386_v47  ;;  %vm1576_vm5 = vmor %vm7614_vm1, %vm1512_vm7 }
 0x38f   : > { %vm7701_vm3 = vmor %vm7605_vm4, %vm1263_vm8  ;;  %vm1802_vm4 = vcmp.eq.s32.totalorder %v3905_v48, %v1735_v24  ;;  %vm1803_vm8 = vcmp.eq.s32.totalorder %v3911_v28, %v1735_v24  ;;  %v3123_v24 = vld [vmem:[%s3279_s25 + $0x98] sm:$0xff]  ;;  %1987 = vperm.xlu0 %3066, %v1902_v22  }
 0x390   : > { %vm1577_vm12 = vmor %vm7632_vm10, %vm1513_vm11  ;;  %vm1788_vm10 = vcmp.eq.s32.totalorder %v3905_v48, %v1714_v4  ;;  %vm10394_vm11 = vnez %v9606_v52  ;;  %v2134_v52 = vadd.s32 153, %v6563_v58  ;;  %v2547_v22 = vld [vmem:[%s8705_s1 + $0xf8] sm:$0xff] }
 0x391   : > { %vm7709_vm1 = vmor %vm1576_vm5, %vm1768_vm9  ;;  %vm1789_vm5 = vcmp.eq.s32.totalorder %v3911_v28, %v1714_v4  ;;  %v1693_v7 = vpop.permute.xlu1 %1692  ;;  %v2151_v4 = vadd.s32 153, %v3123_v24  ;;  %v10437_v24 = vmov 0  ;;  %2661 = vmatpush.msra.mxu1 %v2547_v22  ;;  %2977 = vmatpush.msra.mxu3 %v2547_v22  ;;  %v10450_v22 = vmov 0 }
 0x392   : > { %vm7715_vm7 = vmor %vm1577_vm12, %vm1769_vm13  ;;  %vm10398_vm12 = vnez %v9617_v61  ;;  %vm1519_vm13 = vcmp.eq.s32.totalorder %v3911_v28, %v5513_v44  ;;  %v10406_v61 = vmov 0  ;;  %2219 = vperm.xlu1 %3068, %v2150_v0   ;;  %2171 = vperm.xlu2 %3069, %v2134_v52   ;;  %v10425_v0 = vmov 0 }
 0x393   : > { %vm7722_vm15 = vmor %vm10394_vm11, %vm1802_vm4  ;;  %vm10402_vm4 = vnez %v9512_v16  ;;  %v1744_v16 = vpop.permute.xlu0 %1743  ;;  %v10430_v52 = vmov 0 }
 0x394   : > { %v10396_v34 = vsel %vm7722_vm15, 4294967295, %v10395_v34  ;;  %vm7732_vm9 = vmor %vm10398_vm12, %vm1803_vm8  ;;  %vm10405_vm15 = vnez %v9533_v14  ;;  %v1723_v14 = vpop.permute.xlu2 %1722 }
 0x395   : > { %10397 = vst [vmem:[#allocation49_spill] sm:$0xff] %v10396_v34  ;;  %v10400_v43 = vsel %vm7732_vm9, 4294967295, %v10399_v43  ;;  %vm7742_vm11 = vmor %vm10402_vm4, %vm1788_vm10  ;;  %vm1774_vm10 = vcmp.eq.s32.totalorder %v3905_v48, %v1693_v7  ;;  %vm1775_vm4 = vcmp.eq.s32.totalorder %v3911_v28, %v1693_v7  ;;  %v10432_v7 = vld [vmem:[#allocation74_spill] sm:$0xff] }
 0x396   : > { %10401 = vst [vmem:[#allocation6_spill] sm:$0xff] %v10400_v43  ;;  %v10404_v13 = vsel %vm7742_vm11, 4294967295, %v10403_v13  ;;  %vm7748_vm14 = vmor %vm10405_vm15, %vm1789_vm5  ;;  %vm1809_vm5 = vcmp.eq.s32.totalorder %v3911_v28, %v1744_v16  ;;  %v10462_v43 = vld [vmem:[#allocation47_spill] sm:$0xff] }
 0x397   : > { %v10407_v61 = vsel %vm7748_vm14, 4294967295, %v10406_v61  ;;  %vm1582_vm8 = vmor %vm7687_vm2, %vm1518_vm6  ;;  %vm1808_vm2 = vcmp.eq.s32.totalorder %v3905_v48, %v1744_v16  ;;  %v10434_v16 = vmov 0 }
 0x398   : > { %vm1583_vm12 = vmor %vm7701_vm3, %vm1519_vm13  ;;  %vm1794_vm3 = vcmp.eq.s32.totalorder %v3905_v48, %v1723_v14  ;;  %vm10412_vm13 = vnez %v9727_v46  ;;  %v2135_v46 = vadd.s32 153, %v6609_v8  ;;  %v10428_v8 = vld [vmem:[#allocation22_spill] sm:$0xff] }
 0x399   : > { %vm7758_vm15 = vmor %vm1582_vm8, %vm1774_vm10  ;;  %vm1795_vm8 = vcmp.eq.s32.totalorder %v3911_v28, %v1723_v14  ;;  %vm10416_vm10 = vnez %v9744_v40  ;;  %v1702_v40 = vpop.permute.xlu1 %1701  ;;  %v2531_v14 = vld [vmem:[%s8705_s1 + $0x78] sm:$0xff] }
 0x39a   : > { %vm7764_vm6 = vmor %vm1583_vm12, %vm1775_vm4  ;;  %vm10420_vm4 = vnez %v9630_v55  ;;  %2222 = vperm.xlu1 %3068, %v2151_v4   ;;  %2174 = vperm.xlu2 %3069, %v2135_v46   ;;  %v7831_v4 = vld [vmem:[%s3279_s25 + $0xd8] sm:$0xff] }
 0x39b   : > { %vm7771_vm9 = vmor %vm10412_vm13, %vm1808_vm2  ;;  %vm10424_vm13 = vnez %v9651_v27  ;;  %v7810_v27 = vpop.permute.xlu0 %1912  ;;  %v1903_v46 = vadd.s32 151, %v7831_v4  ;;  %2548 = vmatpush.msra.mxu0 %v2531_v14  ;;  %2961 = vmatpush.msra.mxu2 %v2531_v14  ;;  %v10448_v14 = vld [vmem:[#allocation21_spill] sm:$0xff] }
 0x39c   : > { %v10414_v26 = vsel %vm7771_vm9, 4294967295, %v10413_v26  ;;  %vm7782_vm12 = vmor %vm10416_vm10, %vm1809_vm5  ;;  %vm1780_vm5 = vcmp.eq.s32.totalorder %v3905_v48, %v1702_v40  ;;  %vm1781_vm10 = vcmp.eq.s32.totalorder %v3911_v28, %v1702_v40  ;;  %v1732_v55 = vpop.permute.xlu2 %1731  ;;  %v10440_v40 = vld [vmem:[#allocation32_spill] sm:$0xff] }
 0x39d   : > { %10415 = vst [vmem:[#allocation50_spill] sm:$0xff] %v10414_v26  ;;  %v10418_v49 = vsel %vm7782_vm12, 4294967295, %v10417_v49  ;;  %vm7790_vm2 = vmor %vm10420_vm4, %vm1794_vm3  ;;  %vm10429_vm3 = vnez %v10428_v8  ;;  %vm10433_vm12 = vnez %v10432_v7  ;;  %v3125_v8 = vld [vmem:[%s3279_s25 + $0xa0] sm:$0xff]  ;;  %1990 = vperm.xlu0 %3066, %v1903_v46   ;;  %v10452_v46 = vld [vmem:[#allocation35_spill] sm:$0xff]  ;;  %v2153_v26 = vadd.s32 153, %v7281_v51 }
 0x39e   : > { %10419 = vst [vmem:[#allocation60_spill] sm:$0xff] %v10418_v49  ;;  %v10422_v63 = vsel %vm7790_vm2, 4294967295, %v10421_v63  ;;  %vm7796_vm9 = vmor %vm10424_vm13, %vm1795_vm8  ;;  %vm1800_vm8 = vcmp.eq.s32.totalorder %v3905_v48, %v1732_v55  ;;  %vm1801_vm13 = vcmp.eq.s32.totalorder %v3911_v28, %v1732_v55  ;;  %v10442_v55 = vmov 0  ;;  %v2527_v51 = vld [vmem:[%s8705_s1 + $0x58] sm:$0xff] }
 0x39f   : > { %10423 = vst [vmem:[#allocation76_spill] sm:$0xff] %v10422_v63  ;;  %v10426_v0 = vsel %vm7796_vm9, 4294967295, %v10425_v0  ;;  %vm7804_vm4 = vmor %vm10429_vm3, %vm1780_vm5  ;;  %vm10436_vm5 = vnez %v9760_v1  ;;  %v2152_v7 = vadd.s32 153, %v3125_v8  ;;  %v2136_v1 = vadd.s32 153, %v6811_v15  ;;  %v10457_v8 = vld [vmem:[#allocation24_spill] sm:$0xff]  ;;  %v2521_v63 = vld [vmem:[%s8705_s1 + $0x28] sm:$0xff] }
 0x3a0   : > { %10427 = vst [vmem:[#allocation101_spill] sm:$0xff] %v10426_v0  ;;  %v10431_v52 = vsel %vm7804_vm4, 4294967295, %v10430_v52  ;;  %vm7814_vm9 = vmor %vm10433_vm12, %vm1781_vm10  ;;  %vm10441_vm12 = vnez %v10440_v40  ;;  %v10446_v40 = vmov 0  ;;  %vm10449_vm2 = vnez %v10448_v14  ;;  %v2545_v14 = vld [vmem:[%s8705_s1 + $0xe8] sm:$0xff]  ;;  %v2540_v0 = vld [vmem:[%s8705_s1 + $0xc0] sm:$0xff] }
 0x3a1   : > { %v10435_v16 = vsel %vm7814_vm9, 4294967295, %v10434_v16  ;;  %vm7826_vm3 = vmor %vm10436_vm5, %vm1800_vm8  ;;  %v1711_v3 = vpop.permute.xlu1 %1710 }
 0x3a2   : > { %v10438_v24 = vsel %vm7826_vm3, 4294967295, %v10437_v24  ;;  %vm7836_vm10 = vmor %vm10441_vm12, %vm1801_vm13  ;;  %2225 = vperm.xlu1 %3068, %v2152_v7   ;;  %vm1786_vm8 = vcmp.eq.s32.totalorder %v3905_v48, %v1711_v3  ;;  %vm1787_vm5 = vcmp.eq.s32.totalorder %v3911_v28, %v1711_v3  ;;  %2177 = vperm.xlu2 %3069, %v2136_v1   ;;  %vm10445_vm13 = vnez %v9821_v17  ;;  %v2530_v17 = vld [vmem:[%s8705_s1 + $0x70] sm:$0xff]  ;;  %v2529_v1 = vld [vmem:[%s8705_s1 + $0x68] sm:$0xff] }
 0x3a3   : > { %10439 = vst [vmem:[#allocation83_spill] sm:$0xff] %v10438_v24  ;;  %v10443_v55 = vsel %vm7836_vm10, 4294967295, %v10442_v55  ;;  %vm7846_vm12 = vmor %vm10445_vm13, %vm1786_vm8  ;;  %v1928_v15 = vpop.permute.xlu0 %1927  ;;  %v2546_v3 = vld [vmem:[%s8705_s1 + $0xf0] sm:$0xff]  ;;  %vm10453_vm8 = vnez %v10452_v46  ;;  %v1904_v7 = vadd.s32 151, %v10457_v8  ;;  %2549 = vmatpush.msra.mxu0 %v2530_v17  ;;  %v10459_v46 = vmov 0  ;;  %2962 = vmatpush.msra.mxu2 %v2530_v17 }
 0x3a4   : > { %10444 = vst [vmem:[#allocation28_spill] sm:$0xff] %v10443_v55  ;;  %v1741_v49 = vpop.permute.xlu2 %1740  ;;  %v10447_v40 = vsel %vm7846_vm12, 4294967295, %v10446_v40  ;;  %vm7854_vm14 = vmor %vm10449_vm2, %vm1787_vm5  ;;  %vm2016_vm11 = vcmp.eq.s32.totalorder %v3905_v48, %v1928_v15  ;;  %vm2017_vm2 = vcmp.eq.s32.totalorder %v3911_v28, %v1928_v15  ;;  %2662 = vmatpush.msra.mxu1 %v2546_v3  ;;  %vm10458_vm5 = vnez %v9858_v56  ;;  %2978 = vmatpush.msra.mxu3 %v2546_v3  ;;  %v2543_v15 = vld [vmem:[%s8705_s1 + $0xd8] sm:$0xff]  ;;  %v10469_v3 = vld [vmem:[#allocation69_spill] sm:$0xff] }
 0x3a5   : > { %vm1806_vm10 = vcmp.eq.s32.totalorder %v3905_v48, %v1741_v49  ;;  %vm1807_vm3 = vcmp.eq.s32.totalorder %v3911_v28, %v1741_v49  ;;  %v10451_v22 = vsel %vm7854_vm14, 4294967295, %v10450_v22  ;;  %v10454_v49 = vmov 0  ;;  %2550 = vmatpush.msra.mxu0 %v2529_v1  ;;  %2963 = vmatpush.msra.mxu2 %v2529_v1  ;;  %v3128_v24 = vld [vmem:[%s3279_s25 + $0x30] sm:$0xff] }
 0x3a6   : > { %vm7867_vm13 = vmor %vm10453_vm8, %vm1806_vm10  ;;  %v2137_v8 = vadd.s32 153, %v6845_v35  ;;  %2663 = vmatpush.msra.mxu1 %v2545_v14  ;;  %vm10463_vm8 = vnez %v10462_v43  ;;  %v10464_v56 = vmov 0  ;;  %v2544_v35 = vld [vmem:[%s8705_s1 + $0xe0] sm:$0xff]  ;;  %2979 = vmatpush.msra.mxu3 %v2545_v14  ;;  %v10467_v43 = vmov 0  ;;  %v10473_v14 = vld [vmem:[#allocation46_spill] sm:$0xff] }
 0x3a7   : > { %v10455_v49 = vsel %vm7867_vm13, 4294967295, %v10454_v49  ;;  %vm7881_vm10 = vmor %vm10458_vm5, %vm1807_vm3  ;;  %vm10466_vm5 = vnez %v9965_v6  ;;  %1993 = vperm.xlu0 %3066, %v1904_v7   ;;  %v2526_v6 = vld [vmem:[%s8705_s1 + $0x50] sm:$0xff]  ;;  %v10471_v7 = vmov 0  ;;  %vm10474_vm13 = vnez %v10473_v14 }
 0x3a8   : > { %10456 = vst [vmem:[#allocation30_spill] sm:$0xff] %v10455_v49  ;;  %v10460_v46 = vsel %vm7881_vm10, 4294967295, %v10459_v46  ;;  %v2528_v49 = vld [vmem:[%s8705_s1 + $0x60] sm:$0xff]  ;;  %vm7894_vm3 = vmor %vm10463_vm8, %vm2016_vm11  ;;  %2664 = vmatpush.msra.mxu1 %v2544_v35  ;;  %v3127_v14 = vld [vmem:[%s3279_s25 + $0xb0] sm:$0xff]  ;;  %v2138_v38 = vadd.s32 153, %v3128_v24  ;;  %2980 = vmatpush.msra.mxu3 %v2544_v35  ;;  %v10479_v24 = vmov 0 }
 0x3a9   : > { %10461 = vst [vmem:[#allocation52_spill] sm:$0xff] %v10460_v46  ;;  %v10465_v56 = vsel %vm7894_vm3, 4294967295, %v10464_v56  ;;  %vm7908_vm10 = vmor %vm10466_vm5, %vm2017_vm2  ;;  %v1720_v17 = vpop.permute.xlu1 %1719  ;;  %2551 = vmatpush.msra.mxu0 %v2528_v49  ;;  %vm10470_vm2 = vnez %v10469_v3  ;;  %v2525_v3 = vld [vmem:[%s8705_s1 + $0x48] sm:$0xff]  ;;  %2964 = vmatpush.msra.mxu2 %v2528_v49  ;;  %v2154_v55 = vadd.s32 153, %v3127_v14  ;;  %v2524_v49 = vld [vmem:[%s8705_s1 + $0x40] sm:$0xff] }
 0x3aa   : > { %v10468_v43 = vsel %vm7908_vm10, 4294967295, %v10467_v43  ;;  %2228 = vperm.xlu1 %3068, %v2153_v26   ;;  %vm1792_vm11 = vcmp.eq.s32.totalorder %v3905_v48, %v1720_v17  ;;  %vm1793_vm8 = vcmp.eq.s32.totalorder %v3911_v28, %v1720_v17  ;;  %2180 = vperm.xlu2 %3069, %v2137_v8   ;;  %v10475_v8 = vmov 0  ;;  %v2542_v17 = vld [vmem:[%s8705_s1 + $0xd0] sm:$0xff]  ;;  %v7942_v46 = vld [vmem:[%s3279_s25 + $0xe8] sm:$0xff] }
 0x3ab   : > { %vm7922_vm5 = vmor %vm10470_vm2, %vm1792_vm11  ;;  %v1937_v26 = vpop.permute.xlu0 %1936  ;;  %2552 = vmatpush.msra.mxu0 %v2527_v51  ;;  %v1905_v34 = vadd.s32 151, %v7942_v46  ;;  %2665 = vmatpush.msra.mxu1 %v2543_v15  ;;  %v2522_v14 = vld [vmem:[%s8705_s1 + $0x30] sm:$0xff] }
 0x3ac   : > { %v10472_v7 = vsel %vm7922_vm5, 4294967295, %v10471_v7  ;;  %v7926_v1 = vpop.permute.xlu2 %1909  ;;  %vm7930_vm10 = vmor %vm10474_vm13, %vm1793_vm8  ;;  %vm2022_vm11 = vcmp.eq.s32.totalorder %v3905_v48, %v1937_v26  ;;  %vm2023_vm13 = vcmp.eq.s32.totalorder %v3911_v28, %v1937_v26  ;;  %2965 = vmatpush.msra.mxu2 %v2527_v51  ;;  %2981 = vmatpush.msra.mxu3 %v2543_v15  ;;  %vm10478_vm8 = vnez %v10049_v25  ;;  %v2523_v25 = vld [vmem:[%s8705_s1 + $0x38] sm:$0xff] }
 0x3ad   : > { %v10476_v8 = vsel %vm7930_vm10, 4294967295, %v10475_v8  ;;  %2553 = vmatpush.msra.mxu0 %v2526_v6  ;;  %2666 = vmatpush.msra.mxu1 %v2542_v17  ;;  %vm7961_vm2 = vmor %vm10478_vm8, %vm2022_vm11  ;;  %vm10482_vm10 = vnez %v10060_v36  ;;  %v10483_v51 = vmov 0  ;;  %v10486_v36 = vld [vmem:[#allocation70_spill] sm:$0xff]  ;;  %v10488_v15 = vmov 0 }
 0x3ae   : > { %10477 = vst [vmem:[#allocation102_spill] sm:$0xff] %v10476_v8  ;;  %2966 = vmatpush.msra.mxu2 %v2526_v6  ;;  %v10480_v24 = vsel %vm7961_vm2, 4294967295, %v10479_v24  ;;  %vm7969_vm5 = vmor %vm10482_vm10, %vm2023_vm13  ;;  %vm10487_vm10 = vnez %v10486_v36  ;;  %v10493_v26 = vmov 0  ;;  %2982 = vmatpush.msra.mxu3 %v2542_v17  ;;  %v8005_v36 = vld [vmem:[%s3279_s25 + $0xf0] sm:$0xff]  ;;  %v10497_v17 = vmov 0  ;;  %v10534_v8 = vld [vmem:[#allocation12_spill] sm:$0xff] }
 0x3af   : > { %2554 = vmatpush.msra.mxu0 %v2525_v3  ;;  %10481 = vst [vmem:[#allocation78_spill] sm:$0xff] %v10480_v24  ;;  %1996 = vperm.xlu0 %3066, %v1905_v34   ;;  %v10484_v51 = vsel %vm7969_vm5, 4294967295, %v10483_v51  ;;  %v2539_v34 = vld [vmem:[%s8705_s1 + $0xb8] sm:$0xff]  ;;  %v2533_v24 = vld [vmem:[%s8705_s1 + $0x88] sm:$0xff] }
 0x3b0   : > { %2667 = vmatpush.msra.mxu1 %v2541_v10  ;;  %10485 = vst [vmem:[#allocation33_spill] sm:$0xff] %v10484_v51  ;;  %2967 = vmatpush.msra.mxu2 %v2525_v3  ;;  %v10506_v51 = vmov 0 }
 0x3b1   : > { %v1729_v35 = vpop.permute.xlu1 %1728  ;;  %2555 = vmatpush.msra.mxu0 %v2524_v49  ;;  %2983 = vmatpush.msra.mxu3 %v2541_v10  ;;  %v10499_v10 = vld [vmem:[#allocation27_spill] sm:$0xff] }
 0x3b2   : > { %2231 = vperm.xlu1 %3068, %v2154_v55   ;;  %vm1798_vm3 = vcmp.eq.s32.totalorder %v3905_v48, %v1729_v35  ;;  %vm1799_vm11 = vcmp.eq.s32.totalorder %v3911_v28, %v1729_v35  ;;  %2183 = vperm.xlu2 %3069, %v2138_v38   ;;  %v10491_v38 = vld [vmem:[#allocation98_spill] sm:$0xff]  ;;  %v2538_v35 = vld [vmem:[%s8705_s1 + $0xb0] sm:$0xff] }
 0x3b3   : > { %vm7983_vm13 = vmor %vm10487_vm10, %vm1798_vm3  ;;  %v1946_v55 = vpop.permute.xlu0 %1945  ;;  %2668 = vmatpush.msra.mxu1 %v2540_v0  ;;  %vm10492_vm8 = vnez %v10491_v38  ;;  %v1906_v38 = vadd.s32 151, %v8005_v36  ;;  %2556 = vmatpush.msra.mxu0 %v2523_v25  ;;  %vm10496_vm10 = vnez %v10092_v32  ;;  %v10501_v32 = vmov 0 }
 0x3b4   : > { %v10489_v15 = vsel %vm7983_vm13, 4294967295, %v10488_v15  ;;  %v7987_v6 = vpop.permute.xlu2 %1918  ;;  %vm7991_vm5 = vmor %vm10492_vm8, %vm1799_vm11  ;;  %vm2028_vm3 = vcmp.eq.s32.totalorder %v3905_v48, %v1946_v55  ;;  %2968 = vmatpush.msra.mxu2 %v2524_v49  ;;  %2984 = vmatpush.msra.mxu3 %v2540_v0  ;;  %vm10500_vm11 = vnez %v10499_v10  ;;  %v2536_v0 = vld [vmem:[%s8705_s1 + $0xa0] sm:$0xff]  ;;  %v2519_v49 = vld [vmem:[%s8705_s1 + $0x18] sm:$0xff]  ;;  %v10516_v10 = vmov 0 }
 0x3b5   : > { %10490 = vst [vmem:[#allocation53_spill] sm:$0xff] %v10489_v15  ;;  %v10494_v26 = vsel %vm7991_vm5, 4294967295, %v10493_v26  ;;  %vm2011_vm2 = vcmp.eq.s32.totalorder %v3911_v28, %v7987_v6  ;;  %2669 = vmatpush.msra.mxu1 %v2539_v34  ;;  %v2139_v15 = vadd.s32 153, %v7044_v33  ;;  %2557 = vmatpush.msra.mxu0 %v2522_v14  ;;  %v2537_v33 = vld [vmem:[%s8705_s1 + $0xa8] sm:$0xff]  ;;  %vm8035_vm5 = vmor %vm10500_vm11, %vm2028_vm3 }
 0x3b6   : > { %10495 = vst [vmem:[#allocation79_spill] sm:$0xff] %v10494_v26  ;;  %v2155_v26 = vadd.s32 153, %v7568_v29  ;;  %vm8019_vm8 = vmor %vm10496_vm10, %vm2011_vm2  ;;  %v8029_v29 = vld [vmem:[%s8705_s1 + $0x20] sm:$0xff]  ;;  %v10502_v32 = vsel %vm8035_vm5, 4294967295, %v10501_v32  ;;  %vm10504_vm2 = vcmp.eq.s32.totalorder %v3911_v28, %v1946_v55  ;;  %vm10505_vm10 = vnez %v10150_v31  ;;  %v10509_v31 = vld [vmem:[#allocation96_spill] sm:$0xff]  ;;  %2969 = vmatpush.msra.mxu2 %v2523_v25  ;;  %2985 = vmatpush.msra.mxu3 %v2539_v34 }
 0x3b7   : > { %2670 = vmatpush.msra.mxu1 %v2538_v35  ;;  %v10498_v17 = vsel %vm8019_vm8, 4294967295, %v10497_v17  ;;  %10503 = vst [vmem:[#allocation7_spill] sm:$0xff] %v10502_v32  ;;  %1999 = vperm.xlu0 %3066, %v1906_v38   ;;  %vm8043_vm13 = vmor %vm10505_vm10, %vm10504_vm2  ;;  %vm10510_vm11 = vnez %v10509_v31  ;;  %v10511_v55 = vmov 0  ;;  %v2518_v31 = vld [vmem:[%s8705_s1 + $0x10] sm:$0xff]  ;;  %v2517_v25 = vld [vmem:[%s8705_s1 + $0x8] sm:$0xff]  ;;  %v10523_v34 = vmov 0 }
 0x3b8   : > { %2558 = vmatpush.msra.mxu0 %v2521_v63  ;;  %v10507_v51 = vsel %vm8043_vm13, 4294967295, %v10506_v51  ;;  %v2534_v32 = vld [vmem:[%s8705_s1 + $0x90] sm:$0xff]  ;;  %2970 = vmatpush.msra.mxu2 %v2522_v14 }
 0x3b9   : > { %v1738_v3 = vpop.permute.xlu1 %1737  ;;  %10508 = vst [vmem:[#allocation86_spill] sm:$0xff] %v10507_v51  ;;  %2671 = vmatpush.msra.mxu1 %v2537_v33  ;;  %2986 = vmatpush.msra.mxu3 %v2538_v35  ;;  %v10529_v35 = vld [vmem:[#allocation38_spill] sm:$0xff] }
 0x3ba   : > { %2234 = vperm.xlu1 %3068, %v2155_v26   ;;  %vm1804_vm14 = vcmp.eq.s32.totalorder %v3905_v48, %v1738_v3  ;;  %vm1805_vm3 = vcmp.eq.s32.totalorder %v3911_v28, %v1738_v3  ;;  %2186 = vperm.xlu2 %3069, %v2139_v15   ;;  %v10514_v15 = vld [vmem:[#allocation23_spill] sm:$0xff]  ;;  %v2535_v3 = vld [vmem:[%s8705_s1 + $0x98] sm:$0xff] }
 0x3bb   : > { %vm8057_vm2 = vmor %vm10510_vm11, %vm1804_vm14  ;;  %v8061_v26 = vpop.permute.xlu0 %1957  ;;  %2559 = vmatpush.msra.mxu0 %v8029_v29  ;;  %vm10515_vm10 = vnez %v10514_v15  ;;  %2672 = vmatpush.msra.mxu1 %v2536_v0  ;;  %v2156_v15 = vadd.s32 153, %v7662_v45  ;;  %vm10519_vm11 = vnez %v10161_v19  ;;  %v2516_v19 = vld [vmem:[%s8705_s1] sm:$0xff] }
 0x3bc   : > { %v10512_v55 = vsel %vm8057_vm2, 4294967295, %v10511_v55  ;;  %v1925_v38 = vpop.permute.xlu2 %1924  ;;  %vm8066_vm13 = vmor %vm10515_vm10, %vm1805_vm3  ;;  %2971 = vmatpush.msra.mxu2 %v2521_v63  ;;  %v10526_v63 = vmov 0  ;;  %2987 = vmatpush.msra.mxu3 %v2537_v33  ;;  %v10538_v33 = vld [vmem:[#allocation48_spill] sm:$0xff] }
 0x3bd   : > { %10513 = vst [vmem:[#allocation9_spill] sm:$0xff] %v10512_v55  ;;  %v10517_v10 = vsel %vm8066_vm13, 4294967295, %v10516_v10  ;;  %vm2014_vm14 = vcmp.eq.s32.totalorder %v3905_v48, %v1925_v38  ;;  %v8078_v55 = vld [vmem:[%s3279_s25 + $0xf8] sm:$0xff]  ;;  %2560 = vmatpush.msra.mxu0 %v2519_v49  ;;  %vm2015_vm3 = vcmp.eq.s32.totalorder %v3911_v28, %v1925_v38  ;;  %2673 = vmatpush.msra.mxu1 %v2535_v3  ;;  %vm10522_vm13 = vnez %v10175_v60  ;;  %v2532_v60 = vld [vmem:[%s8705_s1 + $0x80] sm:$0xff] }
 0x3be   : > { %10518 = vst [vmem:[#allocation31_spill] sm:$0xff] %v10517_v10  ;;  %v1907_v51 = vadd.s32 151, %v8078_v55  ;;  %v2140_v10 = vadd.s32 153, %v7069_v30  ;;  %vm8097_vm10 = vmor %vm10519_vm11, %vm2014_vm14  ;;  %v10520_v30 = vmov 0  ;;  %vm10530_vm11 = vnez %v10529_v35  ;;  %2972 = vmatpush.msra.mxu2 %v8029_v29  ;;  %2988 = vmatpush.msra.mxu3 %v2536_v0 }
 0x3bf   : > { %2561 = vmatpush.msra.mxu0 %v2518_v31  ;;  %v10521_v30 = vsel %vm8097_vm10, 4294967295, %v10520_v30  ;;  %2674 = vmatpush.msra.mxu1 %v2534_v32  ;;  %vm8105_vm2 = vmor %vm10522_vm13, %vm2015_vm3  ;;  %vm10525_vm13 = vnez %v10209_v42  ;;  %v10531_v38 = vmov 0  ;;  %v3131_v42 = vld [vmem:[%s3279_s25 + $0xc8] sm:$0xff]  ;;  %v10542_v29 = vmov 8  }
 0x3c0   : > { %2002 = vperm.xlu0 %3066, %v1907_v51   ;;  %v10524_v34 = vsel %vm8105_vm2, 4294967295, %v10523_v34  ;;  %2973 = vmatpush.msra.mxu2 %v2519_v49  ;;  %v2158_v49 = vadd.s32 153, %v7777_v12  ;;  %vm2005_vm10 = vcmp.eq.s32.totalorder %v3911_v28, %v7926_v1 }
 0x3c1   : > { %v1747_v45 = vpop.permute.xlu1 %1746  ;;  %2562 = vmatpush.msra.mxu0 %v2517_v25  ;;  %2675 = vmatpush.msra.mxu1 %v2533_v24 }
 0x3c2   : > { %2237 = vperm.xlu1 %3068, %v2156_v15   ;;  %vm1810_vm5 = vcmp.eq.s32.totalorder %v3905_v48, %v1747_v45  ;;  %vm1811_vm14 = vcmp.eq.s32.totalorder %v3911_v28, %v1747_v45  ;;  %2189 = vperm.xlu2 %3069, %v2140_v10   ;;  %v2157_v10 = vadd.s32 153, %v3131_v42  ;;  %v3132_v15 = vld [vmem:[%s3279_s25 + $0x48] sm:$0xff] }
 0x3c3   : > { %vm8119_vm3 = vmor %vm10525_vm13, %vm1810_vm5  ;;  %v8123_v51 = vpop.permute.xlu0 %1960  ;;  %2563 = vmatpush.msra.mxu0 %v2516_v19  ;;  %2676 = vmatpush.msra.mxu1 %v2532_v60  ;;  %v2141_v45 = vadd.s32 153, %v3132_v15 }
 0x3c4   : > { %v10527_v63 = vsel %vm8119_vm3, 4294967295, %v10526_v63  ;;  %v1934_v14 = vpop.permute.xlu2 %1933  ;;  %vm8127_vm12 = vmor %vm10530_vm11, %vm1811_vm14  ;;  %vm10535_vm14 = vnez %v10534_v8  ;;  %2989 = vmatpush.msra.mxu3 %v2535_v3  ;;  %vm10539_vm11 = vnez %v10538_v33  ;;  %2974 = vmatpush.msra.mxu2 %v2518_v31  ;;  %v10543_v3 = vld [vmem:[#allocation72_spill] sm:$0xff]  ;;  %vm10547_vm3 = vnez %v10322_v50  ;;  %v3134_v33 = vld [vmem:[%s3279_s25 + $0xe0] sm:$0xff] }
 0x3c5   : > { %10528 = vst [vmem:[#allocation34_spill] sm:$0xff] %v10527_v63  ;;  %v10532_v38 = vsel %vm8127_vm12, 4294967295, %v10531_v38  ;;  %vm2020_vm2 = vcmp.eq.s32.totalorder %v3905_v48, %v1934_v14  ;;  %vm2021_vm5 = vcmp.eq.s32.totalorder %v3911_v28, %v1934_v14  ;;  %v8137_v63 = vld [vmem:[%s3279_s25 + $0x78] sm:$0xff]  ;;  %v10540_v14 = vmov 0 }
 0x3c6   : > { %10533 = vst [vmem:[#allocation55_spill] sm:$0xff] %v10532_v38  ;;  %v2147_v35 = vadd.s32 153, %v8137_v63  ;;  %vm8142_vm13 = vmor %vm10535_vm14, %vm2020_vm2  ;;  %v10536_v38 = vmov 0  ;;  %2990 = vmatpush.msra.mxu3 %v2534_v32  ;;  %2975 = vmatpush.msra.mxu2 %v2517_v25  ;;  %v2142_v15 = vadd.s32 153, %v10543_v3  ;;  %vm10544_vm14 = vnez %v10312_v23  ;;  %v10550_v25 = vld [vmem:[#allocation99_spill] sm:$0xff] }
 0x3c7   : > { %v10537_v38 = vsel %vm8142_vm13, 4294967295, %v10536_v38  ;;  %vm8148_vm12 = vmor %vm10539_vm11, %vm2021_vm5  ;;  %v10548_v32 = vmov 0  ;;  %v2159_v23 = vadd.s32 153, %v7831_v4  ;;  %v2143_v50 = vadd.s32 153, %v10550_v25 }
 0x3c8   : > { %v10541_v14 = vsel %vm8148_vm12, 4294967295, %v10540_v14  ;;  %3071 = vset.pattern.permute.xlu0 %v10542_v29  ;;  %2991 = vmatpush.msra.mxu3 %v2533_v24  ;;  %v3135_v29 = vld [vmem:[%s3279_s25 + $0x60] sm:$0xff]  ;;  %s135_s25 = sand.u32 1, %s3190_s10  }
 0x3c9   : > { %v8153_v0 = vpop.permute.xlu1 %1915  ;;  %2210 = vperm.xlu0 %3071, %v2147_v35   ;;  %2976 = vmatpush.msra.mxu2 %v2516_v19  ;;  %v10552_v19 = vmov 0  ;;  %s2888_s8 = sshll.u32 %s135_s25, 8  ;;  %s2807_s26 = scalar_lea.sflag [#allocation3], %s135_s25 }
 0x3ca   : > { %2240 = vperm.xlu1 %3068, %v2157_v10   ;;  %2192 = vperm.xlu2 %3069, %v2141_v45   ;;  %v10545_v10 = vmov 0  ;;  %v10557_v45 = vld [vmem:[#allocation54_spill] sm:$0xff]  ;;  %s8614_s14 = scalar_lea.vmem [#allocation2], %s2888_s8 }
 0x3cb   : > { %v8155_v42 = vpop.permute.xlu0 %1963  ;;  %2992 = vmatpush.msra.mxu3 %v2532_v60  ;;  %v10555_v60 = vmov 0  ;;  %s2819_s23 = sshll.u32 %s8614_s14, 4  ;;  %s2820_s23 = int_to_ptr.vmem [resolvable:$true] %s2819_s23 }
 0x3cc   : > { %v1943_v8 = vpop.permute.xlu2 %1942 }
 0x3cd   : > { %vm2026_vm2 = vcmp.eq.s32.totalorder %v3905_v48, %v1943_v8  ;;  %vm2027_vm5 = vcmp.eq.s32.totalorder %v3911_v28, %v1943_v8  ;;  %v2144_v8 = vadd.s32 153, %v3135_v29  ;;  %v2146_v29 = vadd.s32 153, %v7443_v37  ;;  %v10576_v37 = vld [vmem:[#allocation77_spill] sm:$0xff] }
 0x3ce   : > { %vm8163_vm11 = vmor %vm10544_vm14, %vm2026_vm2  ;;  %vm2004_vm14 = vcmp.eq.s32.totalorder %v3905_v48, %v7926_v1  ;;  %v2160_v1 = vadd.s32 153, %v3134_v33 }
 0x3cf   : > { %v10546_v10 = vsel %vm8163_vm11, 4294967295, %v10545_v10  ;;  %vm8169_vm12 = vmor %vm10547_vm3, %vm2027_vm5  ;;  %vm10551_vm3 = vnez %v10351_v59 }
 0x3d0   : > { %v10549_v32 = vsel %vm8169_vm12, 4294967295, %v10548_v32  ;;  %vm10554_vm12 = vnez %v10361_v62  ;;  %v10559_v62 = vld [vmem:[#allocation15_spill] sm:$0xff] }
 0x3d1   : > { %v8173_v12 = vpop.permute.xlu1 %1921 }
 0x3d2   : > { %2243 = vperm.xlu1 %3068, %v2158_v49   ;;  %2195 = vperm.xlu2 %3069, %v2142_v15   ;;  %v3209_v49 = vmov 0.0  }
 0x3d3   : > { %v8175_v31 = vpop.permute.xlu0 %1966 }
 0x3d4   : > { %v1952_v24 = vpop.permute.xlu2 %1951 }
 0x3d5   : > { %vm2032_vm13 = vcmp.eq.s32.totalorder %v3905_v48, %v1952_v24  ;;  %vm2033_vm2 = vcmp.eq.s32.totalorder %v3911_v28, %v1952_v24 }
 0x3d6   : > { %vm8183_vm5 = vmor %vm10551_vm3, %vm2032_vm13  ;;  %vm10558_vm13 = vnez %v10557_v45  ;;  %v2145_v45 = vadd.s32 153, %v7429_v9 }
 0x3d7   : > { %v10553_v19 = vsel %vm8183_vm5, 4294967295, %v10552_v19  ;;  %vm8191_vm11 = vmor %vm10554_vm12, %vm2033_vm2  ;;  %vm10560_vm2 = vnez %v10559_v62 }
 0x3d8   : > { %v10556_v60 = vsel %vm8191_vm11, 4294967295, %v10555_v60  ;;  %vm2068_vm3 = vmor %vm10558_vm13, %vm2004_vm14  ;;  %vm2006_vm14 = vcmp.eq.s32.totalorder %v3905_v48, %v7810_v27  ;;  %vm2007_vm13 = vcmp.eq.s32.totalorder %v3911_v28, %v7810_v27  ;;  %v10565_v27 = vld [vmem:[#allocation10_spill] sm:$0xff] }
 0x3d9   : > { %v8197_v59 = vpop.permute.xlu1 %1930  ;;  %vm2069_vm11 = vmor %vm10560_vm2, %vm2005_vm10 }
 0x3da   : > { %2246 = vperm.xlu1 %3068, %v2159_v23   ;;  %2198 = vperm.xlu2 %3069, %v2143_v50   ;;  %v10561_v23 = vld [vmem:[#allocation45_spill] sm:$0xff] }
 0x3db   : > { %v8201_v35 = vpop.permute.xlu0 %1969 }
 0x3dc   : > { %v2166_v4 = vpop.permute.xlu2 %2165 }
 0x3dd   : > { %vm2260_vm5 = vcmp.eq.s32.totalorder %v3905_v48, %v2166_v4  ;;  %vm2261_vm12 = vcmp.eq.s32.totalorder %v3911_v28, %v2166_v4  ;;  %v2161_v4 = vadd.s32 153, %v7942_v46 }
 0x3de   : > { %vm2324_vm0 = vmor %vm2068_vm3, %vm2260_vm5  ;;  %vm10562_vm5 = vnez %v10561_v23 }
 0x3df   : > { %v2891_v3 = vsel %vm2324_vm0, 1.0, %v3209_v49  ;;  %vm2325_vm8 = vmor %vm2069_vm11, %vm2261_vm12  ;;  %vm10566_vm12 = vnez %v10565_v27 }
 0x3e0   : > { %2564 = vmatmul.f32.vlgmr.msra.gmra.mxu0 %v2891_v3  ;;  %v2892_v15 = vsel %vm2325_vm8, 1.0, %v3209_v49  ;;  %vm2070_vm3 = vmor %vm10562_vm5, %vm2006_vm14  ;;  %vm2008_vm14 = vcmp.eq.s32.totalorder %v3905_v48, %v8153_v0  ;;  %vm10569_vm5 = vnez %v10284_v21  ;;  %v2162_v21 = vadd.s32 153, %v8005_v36 }
 0x3e1   : > { %2677 = vmatmul.f32.vlgmr.msra.gmra.mxu1 %v2892_v15  ;;  %v1940_v24 = vpop.permute.xlu1 %1939  ;;  %vm2071_vm2 = vmor %vm10566_vm12, %vm2007_vm13  ;;  %v10574_v36 = vmov 0 }
 0x3e2   : > { %2249 = vperm.xlu1 %3068, %v2160_v1   ;;  %2201 = vperm.xlu2 %3069, %v2144_v8   ;;  %vm2024_vm10 = vcmp.eq.s32.totalorder %v3905_v48, %v1940_v24  ;;  %vm2025_vm9 = vcmp.eq.s32.totalorder %v3911_v28, %v1940_v24  ;;  %v10567_v1 = vmov 0  ;;  %v1891_v24 = vadd.s32 151, %v8137_v63 }
 0x3e3   : > { %vm8220_vm0 = vmor %vm7709_vm1, %vm2024_vm10  ;;  %v8231_v62 = vpop.permute.xlu0 %1972  ;;  %vm2009_vm10 = vcmp.eq.s32.totalorder %v3911_v28, %v8153_v0  ;;  %v10572_v0 = vld [vmem:[#allocation80_spill] sm:$0xff] }
 0x3e4   : > { %v2169_v25 = vpop.permute.xlu2 %2168  ;;  %vm8239_vm13 = vmor %vm7715_vm7, %vm2025_vm9 }
 0x3e5   : > { %vm2262_vm8 = vcmp.eq.s32.totalorder %v3905_v48, %v2169_v25  ;;  %vm2263_vm11 = vcmp.eq.s32.totalorder %v3911_v28, %v2169_v25  ;;  %v10568_v1 = vsel %vm8239_vm13, 4294967295, %v10567_v1  ;;  %v10586_v25 = vmov 7  }
 0x3e6   : > { %vm2326_vm4 = vmor %vm2070_vm3, %vm2262_vm8 }
 0x3e7   : > { %v2893_v54 = vsel %vm2326_vm4, 1.0, %v3209_v49  ;;  %vm2327_vm1 = vmor %vm2071_vm2, %vm2263_vm11  ;;  %vm10573_vm11 = vnez %v10572_v0 }
 0x3e8   : > { %2567 = vmatmul.f32.gmra.mxu0 %v2893_v54  ;;  %v2894_v33 = vsel %vm2327_vm1, 1.0, %v3209_v49  ;;  %vm2072_vm3 = vmor %vm10569_vm5, %vm2008_vm14  ;;  %vm2010_vm14 = vcmp.eq.s32.totalorder %v3905_v48, %v7987_v6  ;;  %vm2037_vm5 = vcmp.eq.s32.totalorder %v3911_v28, %v8061_v26  ;;  %v10592_v54 = vld [vmem:[#allocation25_spill] sm:$0xff] }
 0x3e9   : > { %2680 = vmatmul.f32.gmra.mxu1 %v2894_v33  ;;  %v1949_v9 = vpop.permute.xlu1 %1948  ;;  %vm2073_vm12 = vmor %vm10573_vm11, %vm2009_vm10 }
 0x3ea   : > { %2252 = vperm.xlu1 %3068, %v2161_v4   ;;  %2204 = vperm.xlu2 %3069, %v2145_v45   ;;  %vm2030_vm4 = vcmp.eq.s32.totalorder %v3905_v48, %v1949_v9  ;;  %vm2031_vm2 = vcmp.eq.s32.totalorder %v3911_v28, %v1949_v9 }
 0x3eb   : > { %vm8250_vm8 = vmor %vm7758_vm15, %vm2030_vm4  ;;  %vm2036_vm4 = vcmp.eq.s32.totalorder %v3905_v48, %v8061_v26  ;;  %v8267_v3 = vpop.permute.xlu0 %1975  ;;  %v2163_v26 = vadd.s32 153, %v8078_v55 }
 0x3ec   : > { %v2172_v46 = vpop.permute.xlu2 %2171  ;;  %v10571_v57 = vsel %vm8250_vm8, 4294967295, %v10570_v57  ;;  %vm8271_vm10 = vmor %vm7764_vm6, %vm2031_vm2  ;;  %vm2040_vm8 = vcmp.eq.s32.totalorder %v3905_v48, %v8155_v42 }
 0x3ed   : > { %vm2264_vm7 = vcmp.eq.s32.totalorder %v3905_v48, %v2172_v46  ;;  %vm2265_vm9 = vcmp.eq.s32.totalorder %v3911_v28, %v2172_v46  ;;  %v10575_v36 = vsel %vm8271_vm10, 4294967295, %v10574_v36 }
 0x3ee   : > { %vm2328_vm1 = vmor %vm2072_vm3, %vm2264_vm7  ;;  %vm10577_vm3 = vnez %v10576_v37 }
 0x3ef   : > { %v2895_v44 = vsel %vm2328_vm1, 1.0, %v3209_v49  ;;  %vm2329_vm15 = vmor %vm2073_vm12, %vm2265_vm9  ;;  %vm10578_vm9 = vnez %v10431_v52  ;;  %vm10579_vm1 = vnez %v10435_v16 }
 0x3f0   : > { %2570 = vmatmul.f32.gmra.mxu0 %v2895_v44  ;;  %v2896_v8 = vsel %vm2329_vm15, 1.0, %v3209_v49  ;;  %vm2074_vm7 = vmor %vm10577_vm3, %vm2010_vm14 }
 0x3f1   : > { %2683 = vmatmul.f32.gmra.mxu1 %v2896_v8  ;;  %vm2100_vm11 = vmor %vm10578_vm9, %vm2036_vm4  ;;  %vm2038_vm4 = vcmp.eq.s32.totalorder %v3905_v48, %v8123_v51  ;;  %vm2039_vm9 = vcmp.eq.s32.totalorder %v3911_v28, %v8123_v51 }
 0x3f2   : > { %2255 = vperm.xlu1 %3068, %v2162_v21   ;;  %2207 = vperm.xlu2 %3069, %v2146_v29   ;;  %vm8286_vm15 = vmor %vm10579_vm1, %vm2037_vm5  ;;  %vm10582_vm5 = vnez %v10498_v17 }
 0x3f3   : > { %v8318_v63 = vpop.permute.xlu0 %1978 }
 0x3f4   : > { %v2214_v6 = vpop.permute.xlu1 %2213  ;;  %v2175_v15 = vpop.permute.xlu2 %2174 }
 0x3f5   : > { %vm2292_vm12 = vcmp.eq.s32.totalorder %v3905_v48, %v2214_v6  ;;  %vm2266_vm6 = vcmp.eq.s32.totalorder %v3905_v48, %v2175_v15  ;;  %vm2267_vm2 = vcmp.eq.s32.totalorder %v3911_v28, %v2175_v15  ;;  %vm2293_vm10 = vcmp.eq.s32.totalorder %v3911_v28, %v2214_v6  ;;  %v10614_v15 = vld [vmem:[#allocation33_spill] sm:$0xff] }
 0x3f6   : > { %vm2330_vm14 = vmor %vm2074_vm7, %vm2266_vm6  ;;  %vm2012_vm7 = vcmp.eq.s32.totalorder %v3905_v48, %v8173_v12  ;;  %vm10583_vm6 = vnez %v10381_v5 }
 0x3f7   : > { %v2897_v52 = vsel %vm2330_vm14, 1.0, %v3209_v49  ;;  %vm2356_vm3 = vmor %vm2100_vm11, %vm2292_vm12  ;;  %vm2013_vm12 = vcmp.eq.s32.totalorder %v3911_v28, %v8173_v12  ;;  %vm10590_vm14 = vnez %v10334_v20 }
 0x3f8   : > { %2573 = vmatmul.f32.gmra.mxu0 %v2897_v52  ;;  %v2923_v16 = vsel %vm2356_vm3, 1.0, %v3209_v49  ;;  %vm2331_vm1 = vmor %vm10582_vm5, %vm2267_vm2 }
 0x3f9   : > { %2612 = vmatmul.f32.vlgmr.msra.gmra.mxu2 %v2923_v16  ;;  %v2898_v55 = vsel %vm2331_vm1, 1.0, %v3209_v49  ;;  %vm2357_vm11 = vmor %vm8286_vm15, %vm2293_vm10  ;;  %vm10587_vm10 = vnez %v10387_v47 }
 0x3fa   : > { %2686 = vmatmul.f32.gmra.mxu1 %v2898_v55  ;;  %v2924_v23 = vsel %vm2357_vm11, 1.0, %v3209_v49  ;;  %2258 = vperm.xlu1 %3068, %v2163_v26   ;;  %vm8314_vm2 = vmor %vm10583_vm6, %vm2038_vm4 }
 0x3fb   : > { %2725 = vmatmul.f32.vlgmr.msra.gmra.mxu3 %v2924_v23  ;;  %3070 = vset.pattern.permute.xlu2 %v10586_v25  ;;  %vm8326_vm15 = vmor %vm10587_vm10, %vm2039_vm9  ;;  %vm10591_vm9 = vnez %v10337_v53  ;;  %v8358_v33 = vpop.permute.xlu0 %1981  ;;  %v10618_v23 = vld [vmem:[#allocation101_spill] sm:$0xff] }
 0x3fc   : > { %1954 = vperm.xlu2 %3070, %v1891_v24   ;;  %v2217_v5 = vpop.permute.xlu1 %2216  ;;  %v2178_v4 = vpop.permute.xlu2 %2177  ;;  %vm2076_vm4 = vmor %vm10590_vm14, %vm2012_vm7  ;;  %v10616_v24 = vld [vmem:[#allocation76_spill] sm:$0xff] }
 0x3fd   : > { %vm2294_vm3 = vcmp.eq.s32.totalorder %v3905_v48, %v2217_v5  ;;  %vm2268_vm5 = vcmp.eq.s32.totalorder %v3905_v48, %v2178_v4  ;;  %vm2269_vm1 = vcmp.eq.s32.totalorder %v3911_v28, %v2178_v4  ;;  %vm2077_vm11 = vmor %vm10591_vm9, %vm2013_vm12  ;;  %vm2295_vm6 = vcmp.eq.s32.totalorder %v3911_v28, %v2217_v5  ;;  %v10621_v4 = vld [vmem:[#allocation100_spill] sm:$0xff] }
 0x3fe   : > { %vm2332_vm10 = vmor %vm2076_vm4, %vm2268_vm5  ;;  %vm2041_vm4 = vcmp.eq.s32.totalorder %v3911_v28, %v8155_v42  ;;  %vm10594_vm9 = vnez %v10302_v39 }
 0x3ff   : > { %v2899_v47 = vsel %vm2332_vm10, 1.0, %v3209_v49  ;;  %vm2358_vm7 = vmor %vm8314_vm2, %vm2294_vm3  ;;  %vm10593_vm2 = vnez %v10592_v54  ;;  %vm10595_vm10 = vnez %v10521_v30  ;;  %v10627_v54 = vld [vmem:[#allocation53_spill] sm:$0xff] }
 0x400   : > { %2576 = vmatmul.f32.gmra.mxu0 %v2899_v47  ;;  %v2925_v20 = vsel %vm2358_vm7, 1.0, %v3209_v49  ;;  %vm2333_vm14 = vmor %vm2077_vm11, %vm2269_vm1 }
 0x401   : > { %2615 = vmatmul.f32.gmra.mxu2 %v2925_v20  ;;  %v2900_v51 = vsel %vm2333_vm14, 1.0, %v3209_v49  ;;  %vm2359_vm12 = vmor %vm8326_vm15, %vm2295_vm6 }
 0x402   : > { %2689 = vmatmul.f32.gmra.mxu1 %v2900_v51  ;;  %v2926_v53 = vsel %vm2359_vm12, 1.0, %v3209_v49  ;;  %vm2104_vm3 = vmor %vm10593_vm2, %vm2040_vm8  ;;  %vm10596_vm8 = vnez %v10524_v34  ;;  %vm2042_vm2 = vcmp.eq.s32.totalorder %v3905_v48, %v8175_v31 }
 0x403   : > { %2728 = vmatmul.f32.gmra.mxu3 %v2926_v53  ;;  %vm2105_vm11 = vmor %vm10594_vm9, %vm2041_vm4  ;;  %vm2043_vm9 = vcmp.eq.s32.totalorder %v3911_v28, %v8175_v31  ;;  %v8390_v34 = vpop.permute.xlu0 %1984 }
 0x404   : > { %v2220_v12 = vpop.permute.xlu1 %2219  ;;  %v2181_v45 = vpop.permute.xlu2 %2180 }
 0x405   : > { %vm2296_vm5 = vcmp.eq.s32.totalorder %v3905_v48, %v2220_v12  ;;  %vm2270_vm1 = vcmp.eq.s32.totalorder %v3905_v48, %v2181_v45  ;;  %vm2271_vm15 = vcmp.eq.s32.totalorder %v3911_v28, %v2181_v45  ;;  %vm2297_vm6 = vcmp.eq.s32.totalorder %v3911_v28, %v2220_v12 }
 0x406   : > { %vm2334_vm7 = vmor %vm10595_vm10, %vm2270_vm1 }
 0x407   : > { %v2901_v42 = vsel %vm2334_vm7, 1.0, %v3209_v49  ;;  %vm2360_vm14 = vmor %vm2104_vm3, %vm2296_vm5  ;;  %vm10597_vm3 = vnez %v10447_v40 }
 0x408   : > { %2579 = vmatmul.f32.gmra.mxu0 %v2901_v42  ;;  %v2927_v9 = vsel %vm2360_vm14, 1.0, %v3209_v49  ;;  %vm2335_vm12 = vmor %vm10596_vm8, %vm2271_vm15  ;;  %vm10599_vm14 = vnez %v10465_v56 }
 0x409   : > { %2618 = vmatmul.f32.gmra.mxu2 %v2927_v9  ;;  %v2902_v39 = vsel %vm2335_vm12, 1.0, %v3209_v49  ;;  %vm2361_vm4 = vmor %vm2105_vm11, %vm2297_vm6  ;;  %vm10598_vm11 = vnez %v10451_v22  ;;  %vm2018_vm12 = vcmp.eq.s32.totalorder %v3905_v48, %v8197_v59 }
 0x40a   : > { %2692 = vmatmul.f32.gmra.mxu1 %v2902_v39  ;;  %v2928_v30 = vsel %vm2361_vm4, 1.0, %v3209_v49  ;;  %vm2106_vm5 = vmor %vm10597_vm3, %vm2042_vm2  ;;  %vm2044_vm4 = vcmp.eq.s32.totalorder %v3905_v48, %v8201_v35  ;;  %v10633_v39 = vld [vmem:[#allocation86_spill] sm:$0xff] }
 0x40b   : > { %2731 = vmatmul.f32.gmra.mxu3 %v2928_v30  ;;  %vm2107_vm6 = vmor %vm10598_vm11, %vm2043_vm9  ;;  %vm10600_vm9 = vnez %v10468_v43 }
 0x40c   : > { %v2223_v46 = vpop.permute.xlu1 %2222  ;;  %v2184_v0 = vpop.permute.xlu2 %2183 }
 0x40d   : > { %vm2298_vm1 = vcmp.eq.s32.totalorder %v3905_v48, %v2223_v46  ;;  %vm2272_vm15 = vcmp.eq.s32.totalorder %v3905_v48, %v2184_v0  ;;  %vm2273_vm10 = vcmp.eq.s32.totalorder %v3911_v28, %v2184_v0  ;;  %vm2299_vm7 = vcmp.eq.s32.totalorder %v3911_v28, %v2223_v46 }
 0x40e   : > { %vm2336_vm8 = vmor %vm10599_vm14, %vm2272_vm15  ;;  %vm2019_vm15 = vcmp.eq.s32.totalorder %v3911_v28, %v8197_v59  ;;  %vm2045_vm14 = vcmp.eq.s32.totalorder %v3911_v28, %v8201_v35 }
 0x40f   : > { %v2903_v40 = vsel %vm2336_vm8, 1.0, %v3209_v49  ;;  %vm2362_vm2 = vmor %vm2106_vm5, %vm2298_vm1  ;;  %vm10601_vm5 = vnez %v10367_v18 }
 0x410   : > { %2582 = vmatmul.f32.gmra.mxu0 %v2903_v40  ;;  %v2929_v22 = vsel %vm2362_vm2, 1.0, %v3209_v49  ;;  %vm2337_vm3 = vmor %vm10600_vm9, %vm2273_vm10  ;;  %vm10602_vm10 = vnez %v10404_v13 }
 0x411   : > { %2621 = vmatmul.f32.gmra.mxu2 %v2929_v22  ;;  %v2904_v56 = vsel %vm2337_vm3, 1.0, %v3209_v49  ;;  %vm2363_vm11 = vmor %vm2107_vm6, %vm2299_vm7  ;;  %vm10603_vm6 = vnez %v10369_v41  ;;  %v8423_v41 = vpop.permute.xlu0 %1987  ;;  %v10635_v22 = vld [vmem:[#allocation83_spill] sm:$0xff] }
 0x412   : > { %2695 = vmatmul.f32.gmra.mxu1 %v2904_v56  ;;  %v2930_v31 = vsel %vm2363_vm11, 1.0, %v3209_v49  ;;  %vm2082_vm1 = vmor %vm10601_vm5, %vm2018_vm12  ;;  %vm10604_vm11 = vnez %v10407_v61  ;;  %v10637_v56 = vld [vmem:[#allocation28_spill] sm:$0xff] }
 0x413   : > { %2734 = vmatmul.f32.gmra.mxu3 %v2930_v31  ;;  %vm2108_vm8 = vmor %vm10602_vm10, %vm2044_vm4 }
 0x414   : > { %v2226_v43 = vpop.permute.xlu1 %2225  ;;  %v2187_v21 = vpop.permute.xlu2 %2186  ;;  %vm2083_vm7 = vmor %vm10603_vm6, %vm2019_vm15  ;;  %vm2046_vm15 = vcmp.eq.s32.totalorder %v3905_v48, %v8231_v62 }
 0x415   : > { %vm2300_vm2 = vcmp.eq.s32.totalorder %v3905_v48, %v2226_v43  ;;  %vm2274_vm9 = vcmp.eq.s32.totalorder %v3905_v48, %v2187_v21  ;;  %vm2275_vm3 = vcmp.eq.s32.totalorder %v3911_v28, %v2187_v21  ;;  %vm2109_vm13 = vmor %vm10604_vm11, %vm2045_vm14  ;;  %vm2301_vm12 = vcmp.eq.s32.totalorder %v3911_v28, %v2226_v43 }
 0x416   : > { %vm2338_vm5 = vmor %vm2082_vm1, %vm2274_vm9  ;;  %vm2047_vm14 = vcmp.eq.s32.totalorder %v3911_v28, %v8231_v62  ;;  %vm10605_vm1 = vnez %v10342_v11 }
 0x417   : > { %v2905_v18 = vsel %vm2338_vm5, 1.0, %v3209_v49  ;;  %vm2364_vm4 = vmor %vm2108_vm8, %vm2300_vm2 }
 0x418   : > { %2585 = vmatmul.f32.gmra.mxu0 %v2905_v18  ;;  %v2931_v13 = vsel %vm2364_vm4, 1.0, %v3209_v49  ;;  %vm2339_vm10 = vmor %vm2083_vm7, %vm2275_vm3 }
 0x419   : > { %2624 = vmatmul.f32.gmra.mxu2 %v2931_v13  ;;  %v2906_v59 = vsel %vm2339_vm10, 1.0, %v3209_v49  ;;  %vm2365_vm6 = vmor %vm2109_vm13, %vm2301_vm12  ;;  %vm10606_vm13 = vnez %v10346_v2  ;;  %vm10607_vm12 = vnez %v10537_v38  ;;  %vm10608_vm10 = vnez %v10541_v14  ;;  %v8449_v44 = vpop.permute.xlu0 %1990  ;;  %v10610_v14 = vld [vmem:[#allocation102_spill] sm:$0xff] }
 0x41a   : > { %2698 = vmatmul.f32.gmra.mxu1 %v2906_v59  ;;  %v2932_v61 = vsel %vm2365_vm6, 1.0, %v3209_v49  ;;  %vm2110_vm8 = vmor %vm10605_vm1, %vm2046_vm15  ;;  %vm2048_vm6 = vcmp.eq.s32.totalorder %v3905_v48, %v8267_v3  ;;  %vm2049_vm1 = vcmp.eq.s32.totalorder %v3911_v28, %v8267_v3  ;;  %v10612_v3 = vld [vmem:[#allocation78_spill] sm:$0xff] }
 0x41b   : > { %2737 = vmatmul.f32.gmra.mxu3 %v2932_v61  ;;  %vm2111_vm3 = vmor %vm10606_vm13, %vm2047_vm14  ;;  %v10643_v59 = vld [vmem:[#allocation6_spill] sm:$0xff] }
 0x41c   : > { %v2229_v35 = vpop.permute.xlu1 %2228  ;;  %v2190_v29 = vpop.permute.xlu2 %2189 }
 0x41d   : > { %vm2302_vm7 = vcmp.eq.s32.totalorder %v3905_v48, %v2229_v35  ;;  %vm2276_vm2 = vcmp.eq.s32.totalorder %v3905_v48, %v2190_v29  ;;  %vm2277_vm9 = vcmp.eq.s32.totalorder %v3911_v28, %v2190_v29  ;;  %vm2303_vm11 = vcmp.eq.s32.totalorder %v3911_v28, %v2229_v35 }
 0x41e   : > { %vm2340_vm5 = vmor %vm10607_vm12, %vm2276_vm2 }
 0x41f   : > { %v2907_v62 = vsel %vm2340_vm5, 1.0, %v3209_v49  ;;  %vm2366_vm4 = vmor %vm2110_vm8, %vm2302_vm7  ;;  %vm10609_vm8 = vnez %v10472_v7  ;;  %vm10613_vm5 = vnez %v10612_v3 }
 0x420   : > { %2588 = vmatmul.f32.gmra.mxu0 %v2907_v62  ;;  %v2933_v11 = vsel %vm2366_vm4, 1.0, %v3209_v49  ;;  %vm2341_vm15 = vmor %vm10608_vm10, %vm2277_vm9 }
 0x421   : > { %2627 = vmatmul.f32.gmra.mxu2 %v2933_v11  ;;  %v2908_v2 = vsel %vm2341_vm15, 1.0, %v3209_v49  ;;  %vm2367_vm14 = vmor %vm2111_vm3, %vm2303_vm11  ;;  %vm10611_vm3 = vnez %v10610_v14  ;;  %vm10615_vm15 = vnez %v10614_v15  ;;  %v8473_v55 = vpop.permute.xlu0 %1993  ;;  %v10653_v14 = vld [vmem:[#allocation73_spill] sm:$0xff]  ;;  %v10655_v15 = vld [vmem:[#allocation30_spill] sm:$0xff] }
 0x422   : > { %2701 = vmatmul.f32.gmra.mxu1 %v2908_v2  ;;  %v2934_v38 = vsel %vm2367_vm14, 1.0, %v3209_v49  ;;  %vm2112_vm7 = vmor %vm10609_vm8, %vm2048_vm6  ;;  %vm2050_vm14 = vcmp.eq.s32.totalorder %v3905_v48, %v8318_v63  ;;  %vm2051_vm8 = vcmp.eq.s32.totalorder %v3911_v28, %v8318_v63  ;;  %v10647_v2 = vld [vmem:[#allocation9_spill] sm:$0xff] }
 0x423   : > { %2740 = vmatmul.f32.gmra.mxu3 %v2934_v38  ;;  %vm2113_vm11 = vmor %vm10611_vm3, %vm2049_vm1 }
 0x424   : > { %v2232_v8 = vpop.permute.xlu1 %2231  ;;  %v2193_v37 = vpop.permute.xlu2 %2192 }
 0x425   : > { %vm2304_vm2 = vcmp.eq.s32.totalorder %v3905_v48, %v2232_v8  ;;  %vm2278_vm9 = vcmp.eq.s32.totalorder %v3905_v48, %v2193_v37  ;;  %vm2279_vm13 = vcmp.eq.s32.totalorder %v3911_v28, %v2193_v37  ;;  %vm2305_vm12 = vcmp.eq.s32.totalorder %v3911_v28, %v2232_v8  ;;  %v10651_v8 = vld [vmem:[#allocation57_spill] sm:$0xff] }
 0x426   : > { %vm2342_vm4 = vmor %vm10613_vm5, %vm2278_vm9 }
 0x427   : > { %v2909_v6 = vsel %vm2342_vm4, 1.0, %v3209_v49  ;;  %vm2368_vm10 = vmor %vm2112_vm7, %vm2304_vm2  ;;  %vm10617_vm7 = vnez %v10616_v24 }
 0x428   : > { %2591 = vmatmul.f32.gmra.mxu0 %v2909_v6  ;;  %v2935_v7 = vsel %vm2368_vm10, 1.0, %v3209_v49  ;;  %vm2343_vm6 = vmor %vm10615_vm15, %vm2279_vm13  ;;  %vm10620_vm15 = vnez %v10568_v1  ;;  %v10623_v1 = vld [vmem:[#allocation75_spill] sm:$0xff] }
 0x429   : > { %2630 = vmatmul.f32.gmra.mxu2 %v2935_v7  ;;  %v2910_v58 = vsel %vm2343_vm6, 1.0, %v3209_v49  ;;  %vm2369_vm1 = vmor %vm2113_vm11, %vm2305_vm12  ;;  %vm10619_vm11 = vnez %v10618_v23  ;;  %v8503_v47 = vpop.permute.xlu0 %1996 }
 0x42a   : > { %2704 = vmatmul.f32.gmra.mxu1 %v2910_v58  ;;  %v2936_v26 = vsel %vm2369_vm1, 1.0, %v3209_v49  ;;  %vm2114_vm2 = vmor %vm10617_vm7, %vm2050_vm14  ;;  %vm2052_vm14 = vcmp.eq.s32.totalorder %v3905_v48, %v8358_v33 }
 0x42b   : > { %2743 = vmatmul.f32.gmra.mxu3 %v2936_v26  ;;  %vm2115_vm12 = vmor %vm10619_vm11, %vm2051_vm8  ;;  %vm2053_vm8 = vcmp.eq.s32.totalorder %v3911_v28, %v8358_v33  ;;  %v10631_v33 = vld [vmem:[#allocation7_spill] sm:$0xff]  ;;  %v10657_v26 = vld [vmem:[#allocation52_spill] sm:$0xff] }
 0x42c   : > { %v2235_v52 = vpop.permute.xlu1 %2234  ;;  %v2196_v16 = vpop.permute.xlu2 %2195 }
 0x42d   : > { %vm2306_vm9 = vcmp.eq.s32.totalorder %v3905_v48, %v2235_v52  ;;  %vm2280_vm13 = vcmp.eq.s32.totalorder %v3905_v48, %v2196_v16  ;;  %vm2281_vm3 = vcmp.eq.s32.totalorder %v3911_v28, %v2196_v16  ;;  %vm2307_vm5 = vcmp.eq.s32.totalorder %v3911_v28, %v2235_v52 }
 0x42e   : > { %vm2344_vm4 = vmor %vm8220_vm0, %vm2280_vm13  ;;  %vm10622_vm0 = vnez %v10621_v4 }
 0x42f   : > { %v2911_v17 = vsel %vm2344_vm4, 1.0, %v3209_v49  ;;  %vm2370_vm10 = vmor %vm2114_vm2, %vm2306_vm9 }
 0x430   : > { %2594 = vmatmul.f32.gmra.mxu0 %v2911_v17  ;;  %v2937_v63 = vsel %vm2370_vm10, 1.0, %v3209_v49  ;;  %vm2345_vm6 = vmor %vm10620_vm15, %vm2281_vm3  ;;  %vm10624_vm3 = vnez %v10623_v1  ;;  %vm10626_vm15 = vnez %v10549_v32  ;;  %v10629_v32 = vld [vmem:[#allocation79_spill] sm:$0xff]  ;;  %v10659_v17 = vld [vmem:[#allocation50_spill] sm:$0xff] }
 0x431   : > { %2633 = vmatmul.f32.gmra.mxu2 %v2937_v63  ;;  %v2912_v25 = vsel %vm2345_vm6, 1.0, %v3209_v49  ;;  %vm2371_vm1 = vmor %vm2115_vm12, %vm2307_vm5  ;;  %vm10625_vm5 = vnez %v10546_v10  ;;  %v8531_v30 = vpop.permute.xlu0 %1999 }
 0x432   : > { %2707 = vmatmul.f32.gmra.mxu1 %v2912_v25  ;;  %v2938_v50 = vsel %vm2371_vm1, 1.0, %v3209_v49  ;;  %vm2116_vm7 = vmor %vm10622_vm0, %vm2052_vm14  ;;  %vm2054_vm14 = vcmp.eq.s32.totalorder %v3905_v48, %v8390_v34  ;;  %vm10628_vm0 = vnez %v10627_v54  ;;  %v10661_v25 = vld [vmem:[#allocation60_spill] sm:$0xff] }
 0x433   : > { %2746 = vmatmul.f32.gmra.mxu3 %v2938_v50  ;;  %vm2117_vm11 = vmor %vm10624_vm3, %vm2053_vm8  ;;  %vm2055_vm8 = vcmp.eq.s32.totalorder %v3911_v28, %v8390_v34  ;;  %vm10630_vm3 = vnez %v10629_v32 }
 0x434   : > { %v2238_v27 = vpop.permute.xlu1 %2237  ;;  %v2199_v5 = vpop.permute.xlu2 %2198 }
 0x435   : > { %vm2308_vm2 = vcmp.eq.s32.totalorder %v3905_v48, %v2238_v27  ;;  %vm2282_vm9 = vcmp.eq.s32.totalorder %v3905_v48, %v2199_v5  ;;  %vm2283_vm13 = vcmp.eq.s32.totalorder %v3911_v28, %v2199_v5  ;;  %vm2309_vm12 = vcmp.eq.s32.totalorder %v3911_v28, %v2238_v27 }
 0x436   : > { %vm2346_vm4 = vmor %vm10625_vm5, %vm2282_vm9  ;;  %vm10632_vm5 = vnez %v10631_v33 }
 0x437   : > { %v2913_v20 = vsel %vm2346_vm4, 1.0, %v3209_v49  ;;  %vm2372_vm10 = vmor %vm2116_vm7, %vm2308_vm2 }
 0x438   : > { %2597 = vmatmul.f32.gmra.mxu0 %v2913_v20  ;;  %v2939_v51 = vsel %vm2372_vm10, 1.0, %v3209_v49  ;;  %vm2347_vm6 = vmor %vm10626_vm15, %vm2283_vm13  ;;  %vm10634_vm15 = vnez %v10633_v39 }
 0x439   : > { %2636 = vmatmul.f32.gmra.mxu2 %v2939_v51  ;;  %v2914_v53 = vsel %vm2347_vm6, 1.0, %v3209_v49  ;;  %vm2373_vm1 = vmor %vm2117_vm11, %vm2309_vm12  ;;  %v8557_v18 = vpop.permute.xlu0 %2002  ;;  %v10665_v51 = vld [vmem:[#allocation55_spill] sm:$0xff] }
 0x43a   : > { %2710 = vmatmul.f32.gmra.mxu1 %v2914_v53  ;;  %v2940_v10 = vsel %vm2373_vm1, 1.0, %v3209_v49  ;;  %vm2118_vm7 = vmor %vm10628_vm0, %vm2054_vm14  ;;  %vm2056_vm14 = vcmp.eq.s32.totalorder %v3905_v48, %v8423_v41  ;;  %vm10636_vm0 = vnez %v10635_v22 }
 0x43b   : > { %2749 = vmatmul.f32.gmra.mxu3 %v2940_v10  ;;  %vm2119_vm11 = vmor %vm10630_vm3, %vm2055_vm8  ;;  %vm2057_vm8 = vcmp.eq.s32.totalorder %v3911_v28, %v8423_v41  ;;  %vm10638_vm3 = vnez %v10637_v56 }
 0x43c   : > { %v2241_v12 = vpop.permute.xlu1 %2240  ;;  %v2202_v45 = vpop.permute.xlu2 %2201 }
 0x43d   : > { %vm2310_vm2 = vcmp.eq.s32.totalorder %v3905_v48, %v2241_v12  ;;  %vm2284_vm9 = vcmp.eq.s32.totalorder %v3905_v48, %v2202_v45  ;;  %vm2285_vm13 = vcmp.eq.s32.totalorder %v3911_v28, %v2202_v45  ;;  %vm2311_vm12 = vcmp.eq.s32.totalorder %v3911_v28, %v2241_v12 }
 0x43e   : > { %vm2348_vm4 = vmor %vm10632_vm5, %vm2284_vm9  ;;  %vm10639_vm5 = vnez %v10571_v57 }
 0x43f   : > { %v2915_v42 = vsel %vm2348_vm4, 1.0, %v3209_v49  ;;  %vm2374_vm10 = vmor %vm2118_vm7, %vm2310_vm2 }
 0x440   : > { %2600 = vmatmul.f32.gmra.mxu0 %v2915_v42  ;;  %v2941_v9 = vsel %vm2374_vm10, 1.0, %v3209_v49  ;;  %vm2349_vm6 = vmor %vm10634_vm15, %vm2285_vm13  ;;  %vm10640_vm15 = vnez %v10575_v36  ;;  %v10641_v36 = vld [vmem:[#allocation49_spill] sm:$0xff] }
 0x441   : > { %2639 = vmatmul.f32.gmra.mxu2 %v2941_v9  ;;  %v2916_v46 = vsel %vm2349_vm6, 1.0, %v3209_v49  ;;  %vm2375_vm1 = vmor %vm2119_vm11, %vm2311_vm12  ;;  %v2211_v11 = vpop.permute.xlu0 %2210 }
 0x442   : > { %2713 = vmatmul.f32.gmra.mxu1 %v2916_v46  ;;  %v2942_v0 = vsel %vm2375_vm1, 1.0, %v3209_v49  ;;  %vm2120_vm7 = vmor %vm10636_vm0, %vm2056_vm14  ;;  %vm2058_vm14 = vcmp.eq.s32.totalorder %v3905_v48, %v8449_v44  ;;  %vm10642_vm0 = vnez %v10641_v36 }
 0x443   : > { %2752 = vmatmul.f32.gmra.mxu3 %v2942_v0  ;;  %vm2121_vm11 = vmor %vm10638_vm3, %vm2057_vm8  ;;  %vm2059_vm8 = vcmp.eq.s32.totalorder %v3911_v28, %v8449_v44  ;;  %vm10644_vm3 = vnez %v10643_v59 }
 0x444   : > { %v2244_v34 = vpop.permute.xlu1 %2243  ;;  %v2205_v40 = vpop.permute.xlu2 %2204 }
 0x445   : > { %vm2312_vm2 = vcmp.eq.s32.totalorder %v3905_v48, %v2244_v34  ;;  %vm2286_vm9 = vcmp.eq.s32.totalorder %v3905_v48, %v2205_v40  ;;  %vm2287_vm13 = vcmp.eq.s32.totalorder %v3911_v28, %v2205_v40  ;;  %vm2313_vm12 = vcmp.eq.s32.totalorder %v3911_v28, %v2244_v34 }
 0x446   : > { %vm2350_vm4 = vmor %vm10639_vm5, %vm2286_vm9  ;;  %vm10645_vm5 = vnez %v10553_v19 }
 0x447   : > { %v2917_v31 = vsel %vm2350_vm4, 1.0, %v3209_v49  ;;  %vm2376_vm10 = vmor %vm2120_vm7, %vm2312_vm2 }
 0x448   : > { %2603 = vmatmul.f32.gmra.mxu0 %v2917_v31  ;;  %v2943_v43 = vsel %vm2376_vm10, 1.0, %v3209_v49  ;;  %vm2351_vm6 = vmor %vm10640_vm15, %vm2287_vm13  ;;  %vm10646_vm15 = vnez %v10556_v60  ;;  %v10649_v60 = vld [vmem:[#allocation31_spill] sm:$0xff] }
 0x449   : > { %2642 = vmatmul.f32.gmra.mxu2 %v2943_v43  ;;  %v2918_v21 = vsel %vm2351_vm6, 1.0, %v3209_v49  ;;  %vm2377_vm1 = vmor %vm2121_vm11, %vm2313_vm12 }
 0x44a   : > { %2716 = vmatmul.f32.gmra.mxu1 %v2918_v21  ;;  %v2944_v57 = vsel %vm2377_vm1, 1.0, %v3209_v49  ;;  %vm2122_vm7 = vmor %vm10642_vm0, %vm2058_vm14  ;;  %vm2060_vm14 = vcmp.eq.s32.totalorder %v3905_v48, %v8473_v55  ;;  %vm10648_vm0 = vnez %v10647_v2 }
 0x44b   : > { %2755 = vmatmul.f32.gmra.mxu3 %v2944_v57  ;;  %vm2123_vm11 = vmor %vm10644_vm3, %vm2059_vm8  ;;  %vm2061_vm8 = vcmp.eq.s32.totalorder %v3911_v28, %v8473_v55 }
 0x44c   : > { %v2247_v13 = vpop.permute.xlu1 %2246  ;;  %v2208_v41 = vpop.permute.xlu2 %2207 }
 0x44d   : > { %vm2314_vm2 = vcmp.eq.s32.totalorder %v3905_v48, %v2247_v13  ;;  %vm2288_vm9 = vcmp.eq.s32.totalorder %v3905_v48, %v2208_v41  ;;  %vm2289_vm13 = vcmp.eq.s32.totalorder %v3911_v28, %v2208_v41  ;;  %vm2315_vm12 = vcmp.eq.s32.totalorder %v3911_v28, %v2247_v13 }
 0x44e   : > { %vm2352_vm4 = vmor %vm10645_vm5, %vm2288_vm9 }
 0x44f   : > { %v2919_v61 = vsel %vm2352_vm4, 1.0, %v3209_v49  ;;  %vm2378_vm10 = vmor %vm2122_vm7, %vm2314_vm2  ;;  %vm2290_vm4 = vcmp.eq.s32.totalorder %v3905_v48, %v2211_v11 }
 0x450   : > { %2606 = vmatmul.f32.gmra.mxu0 %v2919_v61  ;;  %v2945_v35 = vsel %vm2378_vm10, 1.0, %v3209_v49  ;;  %vm2353_vm6 = vmor %vm10646_vm15, %vm2289_vm13  ;;  %vm10650_vm13 = vnez %v10649_v60  ;;  %vm10652_vm15 = vnez %v10651_v8 }
 0x451   : > { %2645 = vmatmul.f32.gmra.mxu2 %v2945_v35  ;;  %v2920_v29 = vsel %vm2353_vm6, 1.0, %v3209_v49  ;;  %vm2379_vm1 = vmor %vm2123_vm11, %vm2315_vm12 }
 0x452   : > { %2719 = vmatmul.f32.gmra.mxu1 %v2920_v29  ;;  %v2946_v19 = vsel %vm2379_vm1, 1.0, %v3209_v49  ;;  %vm2124_vm7 = vmor %vm10648_vm0, %vm2060_vm14  ;;  %vm2291_vm14 = vcmp.eq.s32.totalorder %v3911_v28, %v2211_v11  ;;  %vm2062_vm1 = vcmp.eq.s32.totalorder %v3905_v48, %v8503_v47 }
 0x453   : > { %2758 = vmatmul.f32.gmra.mxu3 %v2946_v19  ;;  %vm2125_vm3 = vmor %vm10650_vm13, %vm2061_vm8  ;;  %vm10654_vm8 = vnez %v10653_v14  ;;  %vm10656_vm13 = vnez %v10655_v15 }
 0x454   : > { %v2250_v62 = vpop.permute.xlu1 %2249 }
 0x455   : > { %vm2316_vm2 = vcmp.eq.s32.totalorder %v3905_v48, %v2250_v62  ;;  %vm2317_vm9 = vcmp.eq.s32.totalorder %v3911_v28, %v2250_v62 }
 0x456   : > { %v1955_v38 = vpop.permute.xlu2 %1954  ;;  %vm2380_vm11 = vmor %vm2124_vm7, %vm2316_vm2  ;;  %vm2063_vm7 = vcmp.eq.s32.totalorder %v3911_v28, %v8503_v47  ;;  %v10663_v47 = vld [vmem:[#allocation34_spill] sm:$0xff] }
 0x457   : > { %vm2034_vm12 = vcmp.eq.s32.totalorder %v3905_v48, %v1955_v38  ;;  %vm2035_vm5 = vcmp.eq.s32.totalorder %v3911_v28, %v1955_v38  ;;  %v2947_v44 = vsel %vm2380_vm11, 1.0, %v3209_v49  ;;  %vm2381_vm10 = vmor %vm2125_vm3, %vm2317_vm9 }
 0x458   : > { %vm2098_vm6 = vmor %vm10652_vm15, %vm2034_vm12  ;;  %v2948_v37 = vsel %vm2381_vm10, 1.0, %v3209_v49 }
 0x459   : > { %vm2099_vm0 = vmor %vm10654_vm8, %vm2035_vm5  ;;  %2648 = vmatmul.f32.gmra.mxu2 %v2947_v44  ;;  %vm10658_vm5 = vnez %v10657_v26 }
 0x45a   : > { %vm2354_vm2 = vmor %vm2098_vm6, %vm2290_vm4  ;;  %vm2064_vm6 = vcmp.eq.s32.totalorder %v3905_v48, %v8531_v30 }
 0x45b   : > { %2761 = vmatmul.f32.gmra.mxu3 %v2948_v37  ;;  %v2921_v3 = vsel %vm2354_vm2, 1.0, %v3209_v49  ;;  %vm2355_vm9 = vmor %vm2099_vm0, %vm2291_vm14  ;;  %vm2065_vm14 = vcmp.eq.s32.totalorder %v3911_v28, %v8531_v30  ;;  %vm10662_vm2 = vnez %v10661_v25 }
 0x45c   : > { %2609 = vmatmul.f32.gmra.mxu0 %v2921_v3  ;;  %v2922_v6 = vsel %vm2355_vm9, 1.0, %v3209_v49  ;;  %v2253_v7 = vpop.permute.xlu1 %2252  ;;  %vm2126_vm3 = vmor %vm10656_vm13, %vm2062_vm1  ;;  %vm10660_vm1 = vnez %v10659_v17 }
 0x45d   : > { %2722 = vmatmul.f32.gmra.mxu1 %v2922_v6  ;;  %vm2318_vm11 = vcmp.eq.s32.totalorder %v3905_v48, %v2253_v7  ;;  %vm2319_vm12 = vcmp.eq.s32.totalorder %v3911_v28, %v2253_v7  ;;  %v2565_v58 = vpop.f32.mrf.mxu0  ;;  %vm2127_vm4 = vmor %vm10658_vm5, %vm2063_vm7  ;;  %vm10664_vm5 = vnez %v10663_v47 }
 0x45e   : > { %v2678_v52 = vpop.f32.mrf.mxu1  ;;  %vm2382_vm10 = vmor %vm2126_vm3, %vm2318_vm11  ;;  %vm2066_vm11 = vcmp.eq.s32.totalorder %v3905_v48, %v8557_v18 }
 0x45f   : > { %v2679_v16 = vadd.f32 %v2678_v52, %v2565_v58  ;;  %v2949_v24 = vsel %vm2382_vm10, 1.0, %v3209_v49  ;;  %vm2383_vm15 = vmor %vm2127_vm4, %vm2319_vm12  ;;  %vm2067_vm12 = vcmp.eq.s32.totalorder %v3911_v28, %v8557_v18 }
 0x460   : > { %v2950_v55 = vsel %vm2383_vm15, 1.0, %v3209_v49  ;;  %vm2128_vm8 = vmor %vm10660_vm1, %vm2064_vm6  ;;  %vm10666_vm6 = vnez %v10665_v51 }
 0x461   : > { %2774 = vst [vmem:[%s8614_s14] sm:$0xff] %v2679_v16  ;;  %2651 = vmatmul.f32.gmra.mxu2 %v2949_v24  ;;  %vm2129_vm9 = vmor %vm10662_vm2, %vm2065_vm14 }
 0x462   : > { %vm2130_vm4 = vmor %vm10664_vm5, %vm2066_vm11 }
 0x463   : > { %2764 = vmatmul.f32.gmra.mxu3 %v2950_v55  ;;  %vm2131_vm14 = vmor %vm10666_vm6, %vm2067_vm12 }
 0x464   : > { %v2256_v23 = vpop.permute.xlu1 %2255 }
 0x465   : > { %vm2320_vm0 = vcmp.eq.s32.totalorder %v3905_v48, %v2256_v23  ;;  %vm2321_vm7 = vcmp.eq.s32.totalorder %v3911_v28, %v2256_v23  ;;  %v2568_v63 = vpop.f32.mrf.mxu0 }
 0x466   : > { %v2681_v50 = vpop.f32.mrf.mxu1  ;;  %vm2384_vm13 = vmor %vm2128_vm8, %vm2320_vm0 }
 0x467   : > { %v2682_v27 = vadd.f32 %v2681_v50, %v2568_v63  ;;  %v2951_v5 = vsel %vm2384_vm13, 1.0, %v3209_v49  ;;  %vm2385_vm3 = vmor %vm2129_vm9, %vm2321_vm7 }
 0x468   : > { %v2952_v4 = vsel %vm2385_vm3, 1.0, %v3209_v49 }
 0x469   : > { %2775 = vst [vmem:[%s8614_s14 + $0x8] sm:$0xff] %v2682_v27  ;;  %2654 = vmatmul.f32.gmra.mxu2 %v2951_v5 }
 0x46b   : > { %2767 = vmatmul.f32.gmra.mxu3 %v2952_v4 }
 0x46c   : > { %v2259_v1 = vpop.permute.xlu1 %2258 }
 0x46d   : > { %vm2322_vm10 = vcmp.eq.s32.totalorder %v3905_v48, %v2259_v1  ;;  %vm2323_vm15 = vcmp.eq.s32.totalorder %v3911_v28, %v2259_v1  ;;  %v2571_v20 = vpop.f32.mrf.mxu0 }
 0x46e   : > { %v2684_v53 = vpop.f32.mrf.mxu1  ;;  %vm2386_vm1 = vmor %vm2130_vm4, %vm2322_vm10 }
 0x46f   : > { %v2685_v10 = vadd.f32 %v2684_v53, %v2571_v20  ;;  %v2953_v12 = vsel %vm2386_vm1, 1.0, %v3209_v49  ;;  %vm2387_vm8 = vmor %vm2131_vm14, %vm2323_vm15 }
 0x470   : > { %v2954_v45 = vsel %vm2387_vm8, 1.0, %v3209_v49 }
 0x471   : > { %2776 = vst [vmem:[%s8614_s14 + $0x10] sm:$0xff] %v2685_v10  ;;  %2657 = vmatmul.f32.gmra.mxu2 %v2953_v12 }
 0x473   : > { %2770 = vmatmul.f32.gmra.mxu3 %v2954_v45 }
 0x475   : > { %v2574_v48 = vpop.f32.mrf.mxu0 }
 0x477   : > { %v2687_v54 = vpop.f32.mrf.mxu1 }
 0x478   : > { %v2688_v28 = vadd.f32 %v2687_v54, %v2574_v48 }
 0x47a   : > { %2777 = vst [vmem:[%s8614_s14 + $0x18] sm:$0xff] %v2688_v28 }
 0x47c   : > { %v2613_v32 = vpop.f32.mrf.mxu2 }
 0x47d   : > { %v2577_v33 = vpop.f32.mrf.mxu0 }
 0x47e   : > { %v2726_v42 = vpop.f32.mrf.mxu3 }
 0x47f   : > { %v2727_v9 = vadd.f32 %v2726_v42, %v2613_v32  ;;  %v2690_v39 = vpop.f32.mrf.mxu1 }
 0x480   : > { %v2691_v30 = vadd.f32 %v2690_v39, %v2577_v33 }
 0x481   : > { %2790 = vst [vmem:[%s8614_s14 + $0x80] sm:$0xff] %v2727_v9 }
 0x482   : > { %2778 = vst [vmem:[%s8614_s14 + $0x20] sm:$0xff] %v2691_v30 }
 0x484   : > { %v2616_v49 = vpop.f32.mrf.mxu2 }
 0x485   : > { %v2580_v46 = vpop.f32.mrf.mxu0 }
 0x486   : > { %v2729_v0 = vpop.f32.mrf.mxu3 }
 0x487   : > { %v2730_v34 = vadd.f32 %v2729_v0, %v2616_v49  ;;  %v2693_v40 = vpop.f32.mrf.mxu1 }
 0x488   : > { %v2694_v22 = vadd.f32 %v2693_v40, %v2580_v46 }
 0x489   : > { %2791 = vst [vmem:[%s8614_s14 + $0x88] sm:$0xff] %v2730_v34 }
 0x48a   : > { %2779 = vst [vmem:[%s8614_s14 + $0x28] sm:$0xff] %v2694_v22 }
 0x48c   : > { %v2619_v56 = vpop.f32.mrf.mxu2 }
 0x48d   : > { %v2583_v31 = vpop.f32.mrf.mxu0 }
 0x48e   : > { %v2732_v43 = vpop.f32.mrf.mxu3 }
 0x48f   : > { %v2733_v21 = vadd.f32 %v2732_v43, %v2619_v56  ;;  %v2696_v57 = vpop.f32.mrf.mxu1 }
 0x490   : > { %v2697_v18 = vadd.f32 %v2696_v57, %v2583_v31 }
 0x491   : > { %2792 = vst [vmem:[%s8614_s14 + $0x90] sm:$0xff] %v2733_v21 }
 0x492   : > { %2780 = vst [vmem:[%s8614_s14 + $0x30] sm:$0xff] %v2697_v18 }
 0x494   : > { %v2622_v13 = vpop.f32.mrf.mxu2 }
 0x495   : > { %v2586_v41 = vpop.f32.mrf.mxu0 }
 0x496   : > { %v2735_v36 = vpop.f32.mrf.mxu3 }
 0x497   : > { %v2736_v59 = vadd.f32 %v2735_v36, %v2622_v13  ;;  %v2699_v61 = vpop.f32.mrf.mxu1 }
 0x498   : > { %v2700_v35 = vadd.f32 %v2699_v61, %v2586_v41 }
 0x499   : > { %2793 = vst [vmem:[%s8614_s14 + $0x98] sm:$0xff] %v2736_v59 }
 0x49a   : > { %2781 = vst [vmem:[%s8614_s14 + $0x38] sm:$0xff] %v2700_v35 }
 0x49c   : > { %v2625_v29 = vpop.f32.mrf.mxu2 }
 0x49d   : > { %v2589_v19 = vpop.f32.mrf.mxu0 }
 0x49e   : > { %v2738_v62 = vpop.f32.mrf.mxu3 }
 0x49f   : > { %v2739_v11 = vadd.f32 %v2738_v62, %v2625_v29  ;;  %v2702_v2 = vpop.f32.mrf.mxu1 }
 0x4a0   : > { %v2703_v60 = vadd.f32 %v2702_v2, %v2589_v19 }
 0x4a1   : > { %2794 = vst [vmem:[%s8614_s14 + $0xa0] sm:$0xff] %v2739_v11 }
 0x4a2   : > { %2782 = vst [vmem:[%s8614_s14 + $0x40] sm:$0xff] %v2703_v60 }
 0x4a4   : > { %v2628_v38 = vpop.f32.mrf.mxu2 }
 0x4a5   : > { %v2592_v44 = vpop.f32.mrf.mxu0 }
 0x4a6   : > { %v2741_v8 = vpop.f32.mrf.mxu3 }
 0x4a7   : > { %v2742_v37 = vadd.f32 %v2741_v8, %v2628_v38  ;;  %v2705_v14 = vpop.f32.mrf.mxu1 }
 0x4a8   : > { %v2706_v3 = vadd.f32 %v2705_v14, %v2592_v44 }
 0x4a9   : > { %2795 = vst [vmem:[%s8614_s14 + $0xa8] sm:$0xff] %v2742_v37 }
 0x4aa   : > { %2783 = vst [vmem:[%s8614_s14 + $0x48] sm:$0xff] %v2706_v3 }
 0x4ac   : > { %v2631_v6 = vpop.f32.mrf.mxu2 }
 0x4ad   : > { %v2595_v7 = vpop.f32.mrf.mxu0 }
 0x4ae   : > { %v2744_v15 = vpop.f32.mrf.mxu3 }
 0x4af   : > { %v2745_v58 = vadd.f32 %v2744_v15, %v2631_v6  ;;  %v2708_v26 = vpop.f32.mrf.mxu1 }
 0x4b0   : > { %v2709_v52 = vadd.f32 %v2708_v26, %v2595_v7 }
 0x4b1   : > { %2796 = vst [vmem:[%s8614_s14 + $0xb0] sm:$0xff] %v2745_v58 }
 0x4b2   : > { %2784 = vst [vmem:[%s8614_s14 + $0x50] sm:$0xff] %v2709_v52 }
 0x4b4   : > { %v2634_v16 = vpop.f32.mrf.mxu2 }
 0x4b5   : > { %v2598_v24 = vpop.f32.mrf.mxu0 }
 0x4b6   : > { %v2747_v55 = vpop.f32.mrf.mxu3 }
 0x4b7   : > { %v2748_v23 = vadd.f32 %v2747_v55, %v2634_v16  ;;  %v2711_v17 = vpop.f32.mrf.mxu1 }
 0x4b8   : > { %v2712_v63 = vadd.f32 %v2711_v17, %v2598_v24 }
 0x4b9   : > { %2797 = vst [vmem:[%s8614_s14 + $0xb8] sm:$0xff] %v2748_v23 }
 0x4ba   : > { %2785 = vst [vmem:[%s8614_s14 + $0x58] sm:$0xff] %v2712_v63 }
 0x4bc   : > { %v2637_v25 = vpop.f32.mrf.mxu2 }
 0x4bd   : > { %v2601_v50 = vpop.f32.mrf.mxu0 }
 0x4be   : > { %v2750_v27 = vpop.f32.mrf.mxu3 }
 0x4bf   : > { %v2751_v5 = vadd.f32 %v2750_v27, %v2637_v25  ;;  %v2714_v4 = vpop.f32.mrf.mxu1 }
 0x4c0   : > { %v2715_v1 = vadd.f32 %v2714_v4, %v2601_v50 }
 0x4c1   : > { %2798 = vst [vmem:[%s8614_s14 + $0xc0] sm:$0xff] %v2751_v5 }
 0x4c2   : > { %2786 = vst [vmem:[%s8614_s14 + $0x60] sm:$0xff] %v2715_v1 }
 0x4c4   : > { %v2640_v47 = vpop.f32.mrf.mxu2 }
 0x4c5   : > { %v2604_v20 = vpop.f32.mrf.mxu0 }
 0x4c6   : > { %v2753_v51 = vpop.f32.mrf.mxu3 }
 0x4c7   : > { %v2754_v53 = vadd.f32 %v2753_v51, %v2640_v47  ;;  %v2717_v10 = vpop.f32.mrf.mxu1 }
 0x4c8   : > { %v2718_v12 = vadd.f32 %v2717_v10, %v2604_v20 }
 0x4c9   : > { %2799 = vst [vmem:[%s8614_s14 + $0xc8] sm:$0xff] %v2754_v53 }
 0x4ca   : > { %2787 = vst [vmem:[%s8614_s14 + $0x68] sm:$0xff] %v2718_v12 }
 0x4cc   : > { %v2643_v45 = vpop.f32.mrf.mxu2 }
 0x4cd   : > { %v2607_v48 = vpop.f32.mrf.mxu0 }
 0x4ce   : > { %v2756_v54 = vpop.f32.mrf.mxu3 }
 0x4cf   : > { %v2757_v28 = vadd.f32 %v2756_v54, %v2643_v45  ;;  %v2720_v32 = vpop.f32.mrf.mxu1 }
 0x4d0   : > { %v2721_v33 = vadd.f32 %v2720_v32, %v2607_v48 }
 0x4d1   : > { %2800 = vst [vmem:[%s8614_s14 + $0xd0] sm:$0xff] %v2757_v28 }
 0x4d2   : > { %2788 = vst [vmem:[%s8614_s14 + $0x70] sm:$0xff] %v2721_v33 }
 0x4d4   : > { %v2646_v42 = vpop.f32.mrf.mxu2 }
 0x4d6   : > { %v2759_v9 = vpop.f32.mrf.mxu3 }
 0x4d7   : > { %v2760_v39 = vadd.f32 %v2759_v9, %v2646_v42 }
 0x4d9   : > { %2801 = vst [vmem:[%s8614_s14 + $0xd8] sm:$0xff] %v2760_v39  ;;  %v2610_v30 = vpop.f32.mrf.mxu0 }
 0x4da   : > { %v2723_v49 = vpop.f32.mrf.mxu1 }
 0x4db   : > { %v2724_v46 = vadd.f32 %v2723_v49, %v2610_v30 }
 0x4dc   : > { %v2649_v0 = vpop.f32.mrf.mxu2 }
 0x4dd   : > { %2789 = vst [vmem:[%s8614_s14 + $0x78] sm:$0xff] %v2724_v46 }
 0x4de   : > { %v2762_v34 = vpop.f32.mrf.mxu3 }
 0x4df   : > { %v2763_v40 = vadd.f32 %v2762_v34, %v2649_v0 }
 0x4e1   : > { %2802 = vst [vmem:[%s8614_s14 + $0xe0] sm:$0xff] %v2763_v40 }
 0x4e4   : > { %v2652_v22 = vpop.f32.mrf.mxu2 }
 0x4e6   : > { %v2765_v56 = vpop.f32.mrf.mxu3 }
 0x4e7   : > { %v2766_v31 = vadd.f32 %v2765_v56, %v2652_v22 }
 0x4e9   : > { %2803 = vst [vmem:[%s8614_s14 + $0xe8] sm:$0xff] %v2766_v31 }
 0x4ec   : > { %v2655_v43 = vpop.f32.mrf.mxu2 }
 0x4ee   : > { %v2768_v21 = vpop.f32.mrf.mxu3 }
 0x4ef   : > { %v2769_v57 = vadd.f32 %v2768_v21, %v2655_v43 }
 0x4f1   : > { %2804 = vst [vmem:[%s8614_s14 + $0xf0] sm:$0xff] %v2769_v57 }
 0x4f4   : > { %v2658_v18 = vpop.f32.mrf.mxu2 }
 0x4f6   : > { %v2771_v13 = vpop.f32.mrf.mxu3 }
 0x4f7   : > { %v2772_v41 = vadd.f32 %v2771_v13, %v2658_v18 }
 0x4f9   : > { %2805 = vst [vmem:[%s8614_s14 + $0xf8] sm:$0xff] %v2772_v41 }
 0x4fa   : > { %3163 = shalt.err (!%p3160_p3)
}
 0x4fb   : > { %s3210_s5 = smov 128   ;;  %s3211_s6 = smov 8  }
 0x4fc   : > { %2993 = dma.vmem_to_hbm [thread:$0]  (%p3265_p5), %s2820_s23, 4096, %s2822_s24, %s2807_s26, %s3210_s5, %s3210_s5, %s3211_s6  }
 0x4fd PF: > { %p2999_p4 = scmp.ge.s32.totalorder %s3198_s12, 2  ;;  %s2836_s7 = sand.u32 1, %s3186_s9  }
 0x4fe   : > { %s2837_s25 = scalar_lea.sflag [#allocation3], %s2836_s7 }
 0x4ff   : > { %p2996_p7 = pnand %p2999_p4, %p3269_p6 }
 0x501   : > { %p2997_p8 = pneg %p2996_p7 }
 0x503   : > { %3181 = dma.done.wait (%p2997_p8), %s2837_s25, 4096  }
 0x504   : > { %3183 = vsyncadd (%p2997_p8), %s2837_s25, 4294963200  ;;  %p12_p9 = scmp.ge.s32.totalorder %s3252_s15, 4   ;;  %s10667_s9 = smov %s3190_s10 }
 0x505   : > { %s10668_s10 = smov %s3194_s11  ;;  %s10669_s11 = smov %s3263_s18 }
 0x506   : > { %s10670_s12 = smov %s3252_s15  ;;  %14 = sbr.rel (!%p12_p9) target bundleno = 3 (0x3), region = 63 }
 0x50b   :  { %2843 = vsyncpa [#allocation3], 1 }
 0x50c   :  { %2845 = vsyncpa [#allocation3 + $0x1], 1 }

</bundles_post_ra>
